<compile_context>
chip_gen: v5e
topology: v5e:2x2
jax: 0.10.0
libtpu: 0.0.40
codegen_flags: <defaults>
</compile_context>

<pallas_src>
import numpy as np
import jax
import jax.numpy as jnp
from jax.experimental import pallas as pl
from jax.experimental.pallas import tpu as pltpu


def fno_block_kernel(x_ref, fcos_ref, fsin_ref, wr_ref, wi_ref,
                     icos_ref, isin_ref, bias_ref, o_ref):
    C, O, M = wr_ref.shape
    bt = x_ref.shape[1] // C                   # batch elements packed into rows

    xs = x_ref[0]                              # (bt*C, N), batch-major rows

    # Truncated forward rfft as two dense matmuls with separate Re / Im bases
    # (no post-matmul lane slicing or concatenation -> no relayout copies).
    xr = jnp.dot(xs, fcos_ref[...], preferred_element_type=jnp.float32)   # (bt*C, M)
    xi = jnp.dot(xs, fsin_ref[...], preferred_element_type=jnp.float32)   # (bt*C, M)

    for b in range(bt):
        # Per-mode complex channel mixing einsum('ix,iox->ox'), accumulated one
        # input channel at a time: the live set stays at a few (O, M) vregs and the
        # full (C, O, M) product is never materialised (no spill).  Conv residual
        # A = I + W is already folded into wr/wi on the host.
        re_acc = jnp.zeros((O, M), jnp.float32)
        im_acc = jnp.zeros((O, M), jnp.float32)
        for c in range(C):
            r = b * C + c
            xr_c = xr[r:r + 1, :]              # (1, M) -> sublane broadcast
            xi_c = xi[r:r + 1, :]
            wr_c = wr_ref[c]                   # (O, M) VMEM view load
            wi_c = wi_ref[c]
            re_acc = re_acc + (xr_c * wr_c - xi_c * wi_c)
            im_acc = im_acc + (xr_c * wi_c + xi_c * wr_c)

        # Truncated irfft (Hermitian-folded) as two matmuls, then bias + ReLU.
        y = (jnp.dot(re_acc, icos_ref[...], preferred_element_type=jnp.float32) +
             jnp.dot(im_acc, isin_ref[...], preferred_element_type=jnp.float32))
        o_ref[0, b * O:(b + 1) * O, :] = jnp.maximum(y + bias_ref[...], 0.0)


def fno_block(x, wr, wi, conv_w, conv_b, modes, batch_tile=1):
    """x: (B, C, N) f32; wr/wi: (C, O, modes) f32 (real/imag spectral weights);
    conv_w: (O, C) f32 (1x1 conv weight, kernel dim squeezed); conv_b: (O,) f32."""
    B, C, N = x.shape
    O = conv_w.shape[0]
    # The residual fold A = I + conv_w requires out_channels == in_channels.
    assert O == conv_w.shape[1] == C, "FNOBlock residual fold needs O == C"
    bt = batch_tile
    assert B % bt == 0
    G = B // bt
    M = max(8, ((modes + 7) // 8) * 8)         # pad mode axis to a multiple of 8

    # ---- DFT bases (numpy; parameter/glue setup stays outside the kernel) ----
    n = np.arange(N)[:, None].astype(np.float64)
    k = np.arange(M)[None, :].astype(np.float64)
    theta = 2.0 * np.pi * n * k / N                                    # (N, M)
    fcos = np.cos(theta).astype(np.float32)                            # Re fwd basis
    fsin = (-np.sin(theta)).astype(np.float32)                         # Im fwd basis
    # irfft Hermitian folding: c_0 = 1, c_k = 2 (0<k<N/2), c_{N/2} = 1; zero padded.
    ck = np.where(np.arange(M) == 0, 1.0, 2.0)
    if N % 2 == 0 and modes == N // 2 + 1:
        ck[N // 2] = 1.0
    ck = np.where(np.arange(M) < modes, ck, 0.0)
    icos = ((ck[:, None] / N) * np.cos(theta.T)).astype(np.float32)    # (M, N)
    isin = (-(ck[:, None] / N) * np.sin(theta.T)).astype(np.float32)   # (M, N)

    # Fold the 1x1 conv + residual into the spectral weights:
    #   relu(y + W y + b) = relu((I+W) irfft(mix(rfft x)) + b)
    #                     = relu(irfft(mix_{A-folded}(rfft x)) + b).
    a = conv_w + jnp.eye(O, dtype=conv_w.dtype)
    wr_f = jnp.einsum('po,iom->ipm', a, wr)                            # (C, O, modes)
    wi_f = jnp.einsum('po,iom->ipm', a, wi)
    pad = M - modes
    wr_f = jnp.pad(wr_f, ((0, 0), (0, 0), (0, pad)))                   # (C, O, M)
    wi_f = jnp.pad(wi_f, ((0, 0), (0, 0), (0, pad)))
    bias2d = conv_b.reshape(O, 1)

    # Pure reshape (no transpose, no HBM round trip): batch packed into matmul rows.
    x_slab = x.reshape(G, bt * C, N)

    out = pl.pallas_call(
        fno_block_kernel,
        out_shape=jax.ShapeDtypeStruct((G, bt * O, N), jnp.float32),
        grid=(G,),
        in_specs=[
            pl.BlockSpec((1, bt * C, N), lambda g: (g, 0, 0)),         # x rows slab
            pl.BlockSpec((N, M), lambda g: (0, 0)),                    # fwd Re basis
            pl.BlockSpec((N, M), lambda g: (0, 0)),                    # fwd Im basis
            pl.BlockSpec((C, O, M), lambda g: (0, 0, 0)),              # folded wr
            pl.BlockSpec((C, O, M), lambda g: (0, 0, 0)),              # folded wi
            pl.BlockSpec((M, N), lambda g: (0, 0)),                    # inv Re basis
            pl.BlockSpec((M, N), lambda g: (0, 0)),                    # inv Im basis
            pl.BlockSpec((O, 1), lambda g: (0, 0)),                    # conv bias
        ],
        out_specs=pl.BlockSpec((1, bt * O, N), lambda g: (g, 0, 0)),
        compiler_params=pltpu.CompilerParams(
            dimension_semantics=("parallel",)),                        # v7x: 2 TCs
    )(x_slab, jnp.asarray(fcos), jnp.asarray(fsin), wr_f, wi_f,
      jnp.asarray(icos), jnp.asarray(isin), bias2d)

    # Pure reshape back to (B, O, N).
    return out.reshape(B, O, N)


def fno_block_reference(x, wr, wi, conv_w, conv_b, modes):
    """Pure-JAX reference matching the PyTorch forward (uses jnp.fft)."""
    B, C, N = x.shape
    O = conv_w.shape[0]
    x_ft = jnp.fft.rfft(x, axis=-1)
    w = (wr + 1j * wi).astype(jnp.complex64)
    mix = jnp.einsum('bix,iox->box', x_ft[:, :, :modes], w)
    out_ft = jnp.zeros((B, O, N // 2 + 1), jnp.complex64).at[:, :, :modes].set(mix)
    y = jnp.fft.irfft(out_ft, n=N, axis=-1)
    z = jnp.einsum('oi,bin->bon', conv_w, y) + conv_b[None, :, None]
    return jnp.maximum(y + z, 0.0)


if __name__ == "__main__":
    B, width, N, modes = 2, 32, 64, 12

    key = jax.random.PRNGKey(0)
    k1, k2, k3, k4, k5 = jax.random.split(key, 5)

    # SpectralConv1d weights: scale * rand(in, out, modes) complex (deterministic init).
    scale = 1.0 / (width * width)
    wr = scale * jax.random.uniform(k1, (width, width, modes), jnp.float32)
    wi = scale * jax.random.uniform(k2, (width, width, modes), jnp.float32)
    # Conv1d(width, width, 1) weight (kernel dim squeezed) and bias.
    conv_w = jax.random.uniform(k3, (width, width), jnp.float32, minval=-0.1, maxval=0.1)
    conv_b = jax.random.uniform(k4, (width,), jnp.float32, minval=-0.1, maxval=0.1)

    x = jax.random.normal(k5, (B, width, N), jnp.float32)

    out = fno_block(x, wr, wi, conv_w, conv_b, modes)
    out = jax.block_until_ready(out)

    ref = jax.block_until_ready(fno_block_reference(x, wr, wi, conv_w, conv_b, modes))
    assert out.shape == ref.shape == (B, width, N)
    np.testing.assert_allclose(np.asarray(out), np.asarray(ref), atol=3e-4, rtol=3e-4)

    print("KERNEL_OK")
</pallas_src>

<mosaic_0001>
module attributes {stable_mosaic.version = 11 : i64} {
  func.func @fno_block_kernel(%arg0: i32, %arg1: memref<1x32x64xf32, #tpu.memory_space<vmem>>, %arg2: memref<64x16xf32, #tpu.memory_space<vmem>>, %arg3: memref<64x16xf32, #tpu.memory_space<vmem>>, %arg4: memref<32x32x16xf32, #tpu.memory_space<vmem>>, %arg5: memref<32x32x16xf32, #tpu.memory_space<vmem>>, %arg6: memref<16x64xf32, #tpu.memory_space<vmem>>, %arg7: memref<16x64xf32, #tpu.memory_space<vmem>>, %arg8: memref<32x1xf32, #tpu.memory_space<vmem>>, %arg9: memref<1x32x64xf32, #tpu.memory_space<vmem>>) attributes {dimension_semantics = [#tpu.dimension_semantics<parallel>], iteration_bounds = array<i64: 2>, scalar_prefetch = 0 : i64, scratch_operands = 0 : i64, tpu.core_type = #tpu.core_type<tc>, window_params = [{transform_indices = @transform_0, window_bounds = array<i64: 1, 32, 64>}, {pipeline_mode = #tpu.pipeline_mode<synchronous>, transform_indices = @transform_1, window_bounds = array<i64: 64, 16>}, {pipeline_mode = #tpu.pipeline_mode<synchronous>, transform_indices = @transform_2, window_bounds = array<i64: 64, 16>}, {pipeline_mode = #tpu.pipeline_mode<synchronous>, transform_indices = @transform_3, window_bounds = array<i64: 32, 32, 16>}, {pipeline_mode = #tpu.pipeline_mode<synchronous>, transform_indices = @transform_4, window_bounds = array<i64: 32, 32, 16>}, {pipeline_mode = #tpu.pipeline_mode<synchronous>, transform_indices = @transform_5, window_bounds = array<i64: 16, 64>}, {pipeline_mode = #tpu.pipeline_mode<synchronous>, transform_indices = @transform_6, window_bounds = array<i64: 16, 64>}, {pipeline_mode = #tpu.pipeline_mode<synchronous>, transform_indices = @transform_7, window_bounds = array<i64: 32, 1>}, {transform_indices = @transform_8, window_bounds = array<i64: 1, 32, 64>}]} {
    %c0 = arith.constant 0 : index
    %c0_0 = arith.constant 0 : index
    %c0_1 = arith.constant 0 : index
    %0 = vector.load %arg1[%c0, %c0_0, %c0_1] : memref<1x32x64xf32, #tpu.memory_space<vmem>>, vector<1x32x64xf32>
    %1 = vector.shape_cast %0 : vector<1x32x64xf32> to vector<32x64xf32>
    %c0_2 = arith.constant 0 : index
    %c0_3 = arith.constant 0 : index
    %2 = vector.load %arg2[%c0_2, %c0_3] : memref<64x16xf32, #tpu.memory_space<vmem>>, vector<64x16xf32>
    %cst = arith.constant dense<0.000000e+00> : vector<32x16xf32>
    %3 = tpu.matmul %1, %2, %cst {dimension_numbers = #tpu.dot_dimension_numbers<[1], [0], [0], [1], [0, 0, 1, 1], [], []>} : vector<32x64xf32>, vector<64x16xf32>, vector<32x16xf32> -> vector<32x16xf32>
    %c0_4 = arith.constant 0 : index
    %c0_5 = arith.constant 0 : index
    %4 = vector.load %arg3[%c0_4, %c0_5] : memref<64x16xf32, #tpu.memory_space<vmem>>, vector<64x16xf32>
    %cst_6 = arith.constant dense<0.000000e+00> : vector<32x16xf32>
    %5 = tpu.matmul %1, %4, %cst_6 {dimension_numbers = #tpu.dot_dimension_numbers<[1], [0], [0], [1], [0, 0, 1, 1], [], []>} : vector<32x64xf32>, vector<64x16xf32>, vector<32x16xf32> -> vector<32x16xf32>
    %cst_7 = arith.constant 0.000000e+00 : f32
    %6 = vector.broadcast %cst_7 : f32 to vector<32x16xf32>
    %cst_8 = arith.constant 0.000000e+00 : f32
    %7 = vector.broadcast %cst_8 : f32 to vector<32x16xf32>
    %8 = vector.extract_strided_slice %3 {offsets = [0, 0], sizes = [1, 16], strides = [1, 1]} : vector<32x16xf32> to vector<1x16xf32>
    %9 = vector.extract_strided_slice %5 {offsets = [0, 0], sizes = [1, 16], strides = [1, 1]} : vector<32x16xf32> to vector<1x16xf32>
    %c0_9 = arith.constant 0 : index
    %c0_10 = arith.constant 0 : index
    %c0_11 = arith.constant 0 : index
    %10 = vector.load %arg4[%c0_9, %c0_10, %c0_11] : memref<32x32x16xf32, #tpu.memory_space<vmem>>, vector<1x32x16xf32>
    %11 = vector.shape_cast %10 : vector<1x32x16xf32> to vector<32x16xf32>
    %c0_12 = arith.constant 0 : index
    %c0_13 = arith.constant 0 : index
    %c0_14 = arith.constant 0 : index
    %12 = vector.load %arg5[%c0_12, %c0_13, %c0_14] : memref<32x32x16xf32, #tpu.memory_space<vmem>>, vector<1x32x16xf32>
    %13 = vector.shape_cast %12 : vector<1x32x16xf32> to vector<32x16xf32>
    %14 = vector.broadcast %8 : vector<1x16xf32> to vector<32x16xf32>
    %15 = arith.mulf %14, %11 : vector<32x16xf32>
    %16 = vector.broadcast %9 : vector<1x16xf32> to vector<32x16xf32>
    %17 = arith.mulf %16, %13 : vector<32x16xf32>
    %18 = arith.subf %15, %17 : vector<32x16xf32>
    %19 = arith.addf %6, %18 : vector<32x16xf32>
    %20 = vector.broadcast %8 : vector<1x16xf32> to vector<32x16xf32>
    %21 = arith.mulf %20, %13 : vector<32x16xf32>
    %22 = vector.broadcast %9 : vector<1x16xf32> to vector<32x16xf32>
    %23 = arith.mulf %22, %11 : vector<32x16xf32>
    %24 = arith.addf %21, %23 : vector<32x16xf32>
    %25 = arith.addf %7, %24 : vector<32x16xf32>
    %26 = vector.extract_strided_slice %3 {offsets = [1, 0], sizes = [1, 16], strides = [1, 1]} : vector<32x16xf32> to vector<1x16xf32>
    %27 = vector.extract_strided_slice %5 {offsets = [1, 0], sizes = [1, 16], strides = [1, 1]} : vector<32x16xf32> to vector<1x16xf32>
    %c1 = arith.constant 1 : index
    %c0_15 = arith.constant 0 : index
    %c0_16 = arith.constant 0 : index
    %28 = vector.load %arg4[%c1, %c0_15, %c0_16] : memref<32x32x16xf32, #tpu.memory_space<vmem>>, vector<1x32x16xf32>
    %29 = vector.shape_cast %28 : vector<1x32x16xf32> to vector<32x16xf32>
    %c1_17 = arith.constant 1 : index
    %c0_18 = arith.constant 0 : index
    %c0_19 = arith.constant 0 : index
    %30 = vector.load %arg5[%c1_17, %c0_18, %c0_19] : memref<32x32x16xf32, #tpu.memory_space<vmem>>, vector<1x32x16xf32>
    %31 = vector.shape_cast %30 : vector<1x32x16xf32> to vector<32x16xf32>
    %32 = vector.broadcast %26 : vector<1x16xf32> to vector<32x16xf32>
    %33 = arith.mulf %32, %29 : vector<32x16xf32>
    %34 = vector.broadcast %27 : vector<1x16xf32> to vector<32x16xf32>
    %35 = arith.mulf %34, %31 : vector<32x16xf32>
    %36 = arith.subf %33, %35 : vector<32x16xf32>
    %37 = arith.addf %19, %36 : vector<32x16xf32>
    %38 = vector.broadcast %26 : vector<1x16xf32> to vector<32x16xf32>
    %39 = arith.mulf %38, %31 : vector<32x16xf32>
    %40 = vector.broadcast %27 : vector<1x16xf32> to vector<32x16xf32>
    %41 = arith.mulf %40, %29 : vector<32x16xf32>
    %42 = arith.addf %39, %41 : vector<32x16xf32>
    %43 = arith.addf %25, %42 : vector<32x16xf32>
    %44 = vector.extract_strided_slice %3 {offsets = [2, 0], sizes = [1, 16], strides = [1, 1]} : vector<32x16xf32> to vector<1x16xf32>
    %45 = vector.extract_strided_slice %5 {offsets = [2, 0], sizes = [1, 16], strides = [1, 1]} : vector<32x16xf32> to vector<1x16xf32>
    %c2 = arith.constant 2 : index
    %c0_20 = arith.constant 0 : index
    %c0_21 = arith.constant 0 : index
    %46 = vector.load %arg4[%c2, %c0_20, %c0_21] : memref<32x32x16xf32, #tpu.memory_space<vmem>>, vector<1x32x16xf32>
    %47 = vector.shape_cast %46 : vector<1x32x16xf32> to vector<32x16xf32>
    %c2_22 = arith.constant 2 : index
    %c0_23 = arith.constant 0 : index
    %c0_24 = arith.constant 0 : index
    %48 = vector.load %arg5[%c2_22, %c0_23, %c0_24] : memref<32x32x16xf32, #tpu.memory_space<vmem>>, vector<1x32x16xf32>
    %49 = vector.shape_cast %48 : vector<1x32x16xf32> to vector<32x16xf32>
    %50 = vector.broadcast %44 : vector<1x16xf32> to vector<32x16xf32>
    %51 = arith.mulf %50, %47 : vector<32x16xf32>
    %52 = vector.broadcast %45 : vector<1x16xf32> to vector<32x16xf32>
    %53 = arith.mulf %52, %49 : vector<32x16xf32>
    %54 = arith.subf %51, %53 : vector<32x16xf32>
    %55 = arith.addf %37, %54 : vector<32x16xf32>
    %56 = vector.broadcast %44 : vector<1x16xf32> to vector<32x16xf32>
    %57 = arith.mulf %56, %49 : vector<32x16xf32>
    %58 = vector.broadcast %45 : vector<1x16xf32> to vector<32x16xf32>
    %59 = arith.mulf %58, %47 : vector<32x16xf32>
    %60 = arith.addf %57, %59 : vector<32x16xf32>
    %61 = arith.addf %43, %60 : vector<32x16xf32>
    %62 = vector.extract_strided_slice %3 {offsets = [3, 0], sizes = [1, 16], strides = [1, 1]} : vector<32x16xf32> to vector<1x16xf32>
    %63 = vector.extract_strided_slice %5 {offsets = [3, 0], sizes = [1, 16], strides = [1, 1]} : vector<32x16xf32> to vector<1x16xf32>
    %c3 = arith.constant 3 : index
    %c0_25 = arith.constant 0 : index
    %c0_26 = arith.constant 0 : index
    %64 = vector.load %arg4[%c3, %c0_25, %c0_26] : memref<32x32x16xf32, #tpu.memory_space<vmem>>, vector<1x32x16xf32>
    %65 = vector.shape_cast %64 : vector<1x32x16xf32> to vector<32x16xf32>
    %c3_27 = arith.constant 3 : index
    %c0_28 = arith.constant 0 : index
    %c0_29 = arith.constant 0 : index
    %66 = vector.load %arg5[%c3_27, %c0_28, %c0_29] : memref<32x32x16xf32, #tpu.memory_space<vmem>>, vector<1x32x16xf32>
    %67 = vector.shape_cast %66 : vector<1x32x16xf32> to vector<32x16xf32>
    %68 = vector.broadcast %62 : vector<1x16xf32> to vector<32x16xf32>
    %69 = arith.mulf %68, %65 : vector<32x16xf32>
    %70 = vector.broadcast %63 : vector<1x16xf32> to vector<32x16xf32>
    %71 = arith.mulf %70, %67 : vector<32x16xf32>
    %72 = arith.subf %69, %71 : vector<32x16xf32>
    %73 = arith.addf %55, %72 : vector<32x16xf32>
    %74 = vector.broadcast %62 : vector<1x16xf32> to vector<32x16xf32>
    %75 = arith.mulf %74, %67 : vector<32x16xf32>
    %76 = vector.broadcast %63 : vector<1x16xf32> to vector<32x16xf32>
    %77 = arith.mulf %76, %65 : vector<32x16xf32>
    %78 = arith.addf %75, %77 : vector<32x16xf32>
    %79 = arith.addf %61, %78 : vector<32x16xf32>
    %80 = vector.extract_strided_slice %3 {offsets = [4, 0], sizes = [1, 16], strides = [1, 1]} : vector<32x16xf32> to vector<1x16xf32>
    %81 = vector.extract_strided_slice %5 {offsets = [4, 0], sizes = [1, 16], strides = [1, 1]} : vector<32x16xf32> to vector<1x16xf32>
    %c4 = arith.constant 4 : index
    %c0_30 = arith.constant 0 : index
    %c0_31 = arith.constant 0 : index
    %82 = vector.load %arg4[%c4, %c0_30, %c0_31] : memref<32x32x16xf32, #tpu.memory_space<vmem>>, vector<1x32x16xf32>
    %83 = vector.shape_cast %82 : vector<1x32x16xf32> to vector<32x16xf32>
    %c4_32 = arith.constant 4 : index
    %c0_33 = arith.constant 0 : index
    %c0_34 = arith.constant 0 : index
    %84 = vector.load %arg5[%c4_32, %c0_33, %c0_34] : memref<32x32x16xf32, #tpu.memory_space<vmem>>, vector<1x32x16xf32>
    %85 = vector.shape_cast %84 : vector<1x32x16xf32> to vector<32x16xf32>
    %86 = vector.broadcast %80 : vector<1x16xf32> to vector<32x16xf32>
    %87 = arith.mulf %86, %83 : vector<32x16xf32>
    %88 = vector.broadcast %81 : vector<1x16xf32> to vector<32x16xf32>
    %89 = arith.mulf %88, %85 : vector<32x16xf32>
    %90 = arith.subf %87, %89 : vector<32x16xf32>
    %91 = arith.addf %73, %90 : vector<32x16xf32>
    %92 = vector.broadcast %80 : vector<1x16xf32> to vector<32x16xf32>
    %93 = arith.mulf %92, %85 : vector<32x16xf32>
    %94 = vector.broadcast %81 : vector<1x16xf32> to vector<32x16xf32>
    %95 = arith.mulf %94, %83 : vector<32x16xf32>
    %96 = arith.addf %93, %95 : vector<32x16xf32>
    %97 = arith.addf %79, %96 : vector<32x16xf32>
    %98 = vector.extract_strided_slice %3 {offsets = [5, 0], sizes = [1, 16], strides = [1, 1]} : vector<32x16xf32> to vector<1x16xf32>
    %99 = vector.extract_strided_slice %5 {offsets = [5, 0], sizes = [1, 16], strides = [1, 1]} : vector<32x16xf32> to vector<1x16xf32>
    %c5 = arith.constant 5 : index
    %c0_35 = arith.constant 0 : index
    %c0_36 = arith.constant 0 : index
    %100 = vector.load %arg4[%c5, %c0_35, %c0_36] : memref<32x32x16xf32, #tpu.memory_space<vmem>>, vector<1x32x16xf32>
    %101 = vector.shape_cast %100 : vector<1x32x16xf32> to vector<32x16xf32>
    %c5_37 = arith.constant 5 : index
    %c0_38 = arith.constant 0 : index
    %c0_39 = arith.constant 0 : index
    %102 = vector.load %arg5[%c5_37, %c0_38, %c0_39] : memref<32x32x16xf32, #tpu.memory_space<vmem>>, vector<1x32x16xf32>
    %103 = vector.shape_cast %102 : vector<1x32x16xf32> to vector<32x16xf32>
    %104 = vector.broadcast %98 : vector<1x16xf32> to vector<32x16xf32>
    %105 = arith.mulf %104, %101 : vector<32x16xf32>
    %106 = vector.broadcast %99 : vector<1x16xf32> to vector<32x16xf32>
    %107 = arith.mulf %106, %103 : vector<32x16xf32>
    %108 = arith.subf %105, %107 : vector<32x16xf32>
    %109 = arith.addf %91, %108 : vector<32x16xf32>
    %110 = vector.broadcast %98 : vector<1x16xf32> to vector<32x16xf32>
    %111 = arith.mulf %110, %103 : vector<32x16xf32>
    %112 = vector.broadcast %99 : vector<1x16xf32> to vector<32x16xf32>
    %113 = arith.mulf %112, %101 : vector<32x16xf32>
    %114 = arith.addf %111, %113 : vector<32x16xf32>
    %115 = arith.addf %97, %114 : vector<32x16xf32>
    %116 = vector.extract_strided_slice %3 {offsets = [6, 0], sizes = [1, 16], strides = [1, 1]} : vector<32x16xf32> to vector<1x16xf32>
    %117 = vector.extract_strided_slice %5 {offsets = [6, 0], sizes = [1, 16], strides = [1, 1]} : vector<32x16xf32> to vector<1x16xf32>
    %c6 = arith.constant 6 : index
    %c0_40 = arith.constant 0 : index
    %c0_41 = arith.constant 0 : index
    %118 = vector.load %arg4[%c6, %c0_40, %c0_41] : memref<32x32x16xf32, #tpu.memory_space<vmem>>, vector<1x32x16xf32>
    %119 = vector.shape_cast %118 : vector<1x32x16xf32> to vector<32x16xf32>
    %c6_42 = arith.constant 6 : index
    %c0_43 = arith.constant 0 : index
    %c0_44 = arith.constant 0 : index
    %120 = vector.load %arg5[%c6_42, %c0_43, %c0_44] : memref<32x32x16xf32, #tpu.memory_space<vmem>>, vector<1x32x16xf32>
    %121 = vector.shape_cast %120 : vector<1x32x16xf32> to vector<32x16xf32>
    %122 = vector.broadcast %116 : vector<1x16xf32> to vector<32x16xf32>
    %123 = arith.mulf %122, %119 : vector<32x16xf32>
    %124 = vector.broadcast %117 : vector<1x16xf32> to vector<32x16xf32>
    %125 = arith.mulf %124, %121 : vector<32x16xf32>
    %126 = arith.subf %123, %125 : vector<32x16xf32>
    %127 = arith.addf %109, %126 : vector<32x16xf32>
    %128 = vector.broadcast %116 : vector<1x16xf32> to vector<32x16xf32>
    %129 = arith.mulf %128, %121 : vector<32x16xf32>
    %130 = vector.broadcast %117 : vector<1x16xf32> to vector<32x16xf32>
    %131 = arith.mulf %130, %119 : vector<32x16xf32>
    %132 = arith.addf %129, %131 : vector<32x16xf32>
    %133 = arith.addf %115, %132 : vector<32x16xf32>
    %134 = vector.extract_strided_slice %3 {offsets = [7, 0], sizes = [1, 16], strides = [1, 1]} : vector<32x16xf32> to vector<1x16xf32>
    %135 = vector.extract_strided_slice %5 {offsets = [7, 0], sizes = [1, 16], strides = [1, 1]} : vector<32x16xf32> to vector<1x16xf32>
    %c7 = arith.constant 7 : index
    %c0_45 = arith.constant 0 : index
    %c0_46 = arith.constant 0 : index
    %136 = vector.load %arg4[%c7, %c0_45, %c0_46] : memref<32x32x16xf32, #tpu.memory_space<vmem>>, vector<1x32x16xf32>
    %137 = vector.shape_cast %136 : vector<1x32x16xf32> to vector<32x16xf32>
    %c7_47 = arith.constant 7 : index
    %c0_48 = arith.constant 0 : index
    %c0_49 = arith.constant 0 : index
    %138 = vector.load %arg5[%c7_47, %c0_48, %c0_49] : memref<32x32x16xf32, #tpu.memory_space<vmem>>, vector<1x32x16xf32>
    %139 = vector.shape_cast %138 : vector<1x32x16xf32> to vector<32x16xf32>
    %140 = vector.broadcast %134 : vector<1x16xf32> to vector<32x16xf32>
    %141 = arith.mulf %140, %137 : vector<32x16xf32>
    %142 = vector.broadcast %135 : vector<1x16xf32> to vector<32x16xf32>
    %143 = arith.mulf %142, %139 : vector<32x16xf32>
    %144 = arith.subf %141, %143 : vector<32x16xf32>
    %145 = arith.addf %127, %144 : vector<32x16xf32>
    %146 = vector.broadcast %134 : vector<1x16xf32> to vector<32x16xf32>
    %147 = arith.mulf %146, %139 : vector<32x16xf32>
    %148 = vector.broadcast %135 : vector<1x16xf32> to vector<32x16xf32>
    %149 = arith.mulf %148, %137 : vector<32x16xf32>
    %150 = arith.addf %147, %149 : vector<32x16xf32>
    %151 = arith.addf %133, %150 : vector<32x16xf32>
    %152 = vector.extract_strided_slice %3 {offsets = [8, 0], sizes = [1, 16], strides = [1, 1]} : vector<32x16xf32> to vector<1x16xf32>
    %153 = vector.extract_strided_slice %5 {offsets = [8, 0], sizes = [1, 16], strides = [1, 1]} : vector<32x16xf32> to vector<1x16xf32>
    %c8 = arith.constant 8 : index
    %c0_50 = arith.constant 0 : index
    %c0_51 = arith.constant 0 : index
    %154 = vector.load %arg4[%c8, %c0_50, %c0_51] : memref<32x32x16xf32, #tpu.memory_space<vmem>>, vector<1x32x16xf32>
    %155 = vector.shape_cast %154 : vector<1x32x16xf32> to vector<32x16xf32>
    %c8_52 = arith.constant 8 : index
    %c0_53 = arith.constant 0 : index
    %c0_54 = arith.constant 0 : index
    %156 = vector.load %arg5[%c8_52, %c0_53, %c0_54] : memref<32x32x16xf32, #tpu.memory_space<vmem>>, vector<1x32x16xf32>
    %157 = vector.shape_cast %156 : vector<1x32x16xf32> to vector<32x16xf32>
    %158 = vector.broadcast %152 : vector<1x16xf32> to vector<32x16xf32>
    %159 = arith.mulf %158, %155 : vector<32x16xf32>
    %160 = vector.broadcast %153 : vector<1x16xf32> to vector<32x16xf32>
    %161 = arith.mulf %160, %157 : vector<32x16xf32>
    %162 = arith.subf %159, %161 : vector<32x16xf32>
    %163 = arith.addf %145, %162 : vector<32x16xf32>
    %164 = vector.broadcast %152 : vector<1x16xf32> to vector<32x16xf32>
    %165 = arith.mulf %164, %157 : vector<32x16xf32>
    %166 = vector.broadcast %153 : vector<1x16xf32> to vector<32x16xf32>
    %167 = arith.mulf %166, %155 : vector<32x16xf32>
    %168 = arith.addf %165, %167 : vector<32x16xf32>
    %169 = arith.addf %151, %168 : vector<32x16xf32>
    %170 = vector.extract_strided_slice %3 {offsets = [9, 0], sizes = [1, 16], strides = [1, 1]} : vector<32x16xf32> to vector<1x16xf32>
    %171 = vector.extract_strided_slice %5 {offsets = [9, 0], sizes = [1, 16], strides = [1, 1]} : vector<32x16xf32> to vector<1x16xf32>
    %c9 = arith.constant 9 : index
    %c0_55 = arith.constant 0 : index
    %c0_56 = arith.constant 0 : index
    %172 = vector.load %arg4[%c9, %c0_55, %c0_56] : memref<32x32x16xf32, #tpu.memory_space<vmem>>, vector<1x32x16xf32>
    %173 = vector.shape_cast %172 : vector<1x32x16xf32> to vector<32x16xf32>
    %c9_57 = arith.constant 9 : index
    %c0_58 = arith.constant 0 : index
    %c0_59 = arith.constant 0 : index
    %174 = vector.load %arg5[%c9_57, %c0_58, %c0_59] : memref<32x32x16xf32, #tpu.memory_space<vmem>>, vector<1x32x16xf32>
    %175 = vector.shape_cast %174 : vector<1x32x16xf32> to vector<32x16xf32>
    %176 = vector.broadcast %170 : vector<1x16xf32> to vector<32x16xf32>
    %177 = arith.mulf %176, %173 : vector<32x16xf32>
    %178 = vector.broadcast %171 : vector<1x16xf32> to vector<32x16xf32>
    %179 = arith.mulf %178, %175 : vector<32x16xf32>
    %180 = arith.subf %177, %179 : vector<32x16xf32>
    %181 = arith.addf %163, %180 : vector<32x16xf32>
    %182 = vector.broadcast %170 : vector<1x16xf32> to vector<32x16xf32>
    %183 = arith.mulf %182, %175 : vector<32x16xf32>
    %184 = vector.broadcast %171 : vector<1x16xf32> to vector<32x16xf32>
    %185 = arith.mulf %184, %173 : vector<32x16xf32>
    %186 = arith.addf %183, %185 : vector<32x16xf32>
    %187 = arith.addf %169, %186 : vector<32x16xf32>
    %188 = vector.extract_strided_slice %3 {offsets = [10, 0], sizes = [1, 16], strides = [1, 1]} : vector<32x16xf32> to vector<1x16xf32>
    %189 = vector.extract_strided_slice %5 {offsets = [10, 0], sizes = [1, 16], strides = [1, 1]} : vector<32x16xf32> to vector<1x16xf32>
    %c10 = arith.constant 10 : index
    %c0_60 = arith.constant 0 : index
    %c0_61 = arith.constant 0 : index
    %190 = vector.load %arg4[%c10, %c0_60, %c0_61] : memref<32x32x16xf32, #tpu.memory_space<vmem>>, vector<1x32x16xf32>
    %191 = vector.shape_cast %190 : vector<1x32x16xf32> to vector<32x16xf32>
    %c10_62 = arith.constant 10 : index
    %c0_63 = arith.constant 0 : index
    %c0_64 = arith.constant 0 : index
    %192 = vector.load %arg5[%c10_62, %c0_63, %c0_64] : memref<32x32x16xf32, #tpu.memory_space<vmem>>, vector<1x32x16xf32>
    %193 = vector.shape_cast %192 : vector<1x32x16xf32> to vector<32x16xf32>
    %194 = vector.broadcast %188 : vector<1x16xf32> to vector<32x16xf32>
    %195 = arith.mulf %194, %191 : vector<32x16xf32>
    %196 = vector.broadcast %189 : vector<1x16xf32> to vector<32x16xf32>
    %197 = arith.mulf %196, %193 : vector<32x16xf32>
    %198 = arith.subf %195, %197 : vector<32x16xf32>
    %199 = arith.addf %181, %198 : vector<32x16xf32>
    %200 = vector.broadcast %188 : vector<1x16xf32> to vector<32x16xf32>
    %201 = arith.mulf %200, %193 : vector<32x16xf32>
    %202 = vector.broadcast %189 : vector<1x16xf32> to vector<32x16xf32>
    %203 = arith.mulf %202, %191 : vector<32x16xf32>
    %204 = arith.addf %201, %203 : vector<32x16xf32>
    %205 = arith.addf %187, %204 : vector<32x16xf32>
    %206 = vector.extract_strided_slice %3 {offsets = [11, 0], sizes = [1, 16], strides = [1, 1]} : vector<32x16xf32> to vector<1x16xf32>
    %207 = vector.extract_strided_slice %5 {offsets = [11, 0], sizes = [1, 16], strides = [1, 1]} : vector<32x16xf32> to vector<1x16xf32>
    %c11 = arith.constant 11 : index
    %c0_65 = arith.constant 0 : index
    %c0_66 = arith.constant 0 : index
    %208 = vector.load %arg4[%c11, %c0_65, %c0_66] : memref<32x32x16xf32, #tpu.memory_space<vmem>>, vector<1x32x16xf32>
    %209 = vector.shape_cast %208 : vector<1x32x16xf32> to vector<32x16xf32>
    %c11_67 = arith.constant 11 : index
    %c0_68 = arith.constant 0 : index
    %c0_69 = arith.constant 0 : index
    %210 = vector.load %arg5[%c11_67, %c0_68, %c0_69] : memref<32x32x16xf32, #tpu.memory_space<vmem>>, vector<1x32x16xf32>
    %211 = vector.shape_cast %210 : vector<1x32x16xf32> to vector<32x16xf32>
    %212 = vector.broadcast %206 : vector<1x16xf32> to vector<32x16xf32>
    %213 = arith.mulf %212, %209 : vector<32x16xf32>
    %214 = vector.broadcast %207 : vector<1x16xf32> to vector<32x16xf32>
    %215 = arith.mulf %214, %211 : vector<32x16xf32>
    %216 = arith.subf %213, %215 : vector<32x16xf32>
    %217 = arith.addf %199, %216 : vector<32x16xf32>
    %218 = vector.broadcast %206 : vector<1x16xf32> to vector<32x16xf32>
    %219 = arith.mulf %218, %211 : vector<32x16xf32>
    %220 = vector.broadcast %207 : vector<1x16xf32> to vector<32x16xf32>
    %221 = arith.mulf %220, %209 : vector<32x16xf32>
    %222 = arith.addf %219, %221 : vector<32x16xf32>
    %223 = arith.addf %205, %222 : vector<32x16xf32>
    %224 = vector.extract_strided_slice %3 {offsets = [12, 0], sizes = [1, 16], strides = [1, 1]} : vector<32x16xf32> to vector<1x16xf32>
    %225 = vector.extract_strided_slice %5 {offsets = [12, 0], sizes = [1, 16], strides = [1, 1]} : vector<32x16xf32> to vector<1x16xf32>
    %c12 = arith.constant 12 : index
    %c0_70 = arith.constant 0 : index
    %c0_71 = arith.constant 0 : index
    %226 = vector.load %arg4[%c12, %c0_70, %c0_71] : memref<32x32x16xf32, #tpu.memory_space<vmem>>, vector<1x32x16xf32>
    %227 = vector.shape_cast %226 : vector<1x32x16xf32> to vector<32x16xf32>
    %c12_72 = arith.constant 12 : index
    %c0_73 = arith.constant 0 : index
    %c0_74 = arith.constant 0 : index
    %228 = vector.load %arg5[%c12_72, %c0_73, %c0_74] : memref<32x32x16xf32, #tpu.memory_space<vmem>>, vector<1x32x16xf32>
    %229 = vector.shape_cast %228 : vector<1x32x16xf32> to vector<32x16xf32>
    %230 = vector.broadcast %224 : vector<1x16xf32> to vector<32x16xf32>
    %231 = arith.mulf %230, %227 : vector<32x16xf32>
    %232 = vector.broadcast %225 : vector<1x16xf32> to vector<32x16xf32>
    %233 = arith.mulf %232, %229 : vector<32x16xf32>
    %234 = arith.subf %231, %233 : vector<32x16xf32>
    %235 = arith.addf %217, %234 : vector<32x16xf32>
    %236 = vector.broadcast %224 : vector<1x16xf32> to vector<32x16xf32>
    %237 = arith.mulf %236, %229 : vector<32x16xf32>
    %238 = vector.broadcast %225 : vector<1x16xf32> to vector<32x16xf32>
    %239 = arith.mulf %238, %227 : vector<32x16xf32>
    %240 = arith.addf %237, %239 : vector<32x16xf32>
    %241 = arith.addf %223, %240 : vector<32x16xf32>
    %242 = vector.extract_strided_slice %3 {offsets = [13, 0], sizes = [1, 16], strides = [1, 1]} : vector<32x16xf32> to vector<1x16xf32>
    %243 = vector.extract_strided_slice %5 {offsets = [13, 0], sizes = [1, 16], strides = [1, 1]} : vector<32x16xf32> to vector<1x16xf32>
    %c13 = arith.constant 13 : index
    %c0_75 = arith.constant 0 : index
    %c0_76 = arith.constant 0 : index
    %244 = vector.load %arg4[%c13, %c0_75, %c0_76] : memref<32x32x16xf32, #tpu.memory_space<vmem>>, vector<1x32x16xf32>
    %245 = vector.shape_cast %244 : vector<1x32x16xf32> to vector<32x16xf32>
    %c13_77 = arith.constant 13 : index
    %c0_78 = arith.constant 0 : index
    %c0_79 = arith.constant 0 : index
    %246 = vector.load %arg5[%c13_77, %c0_78, %c0_79] : memref<32x32x16xf32, #tpu.memory_space<vmem>>, vector<1x32x16xf32>
    %247 = vector.shape_cast %246 : vector<1x32x16xf32> to vector<32x16xf32>
    %248 = vector.broadcast %242 : vector<1x16xf32> to vector<32x16xf32>
    %249 = arith.mulf %248, %245 : vector<32x16xf32>
    %250 = vector.broadcast %243 : vector<1x16xf32> to vector<32x16xf32>
    %251 = arith.mulf %250, %247 : vector<32x16xf32>
    %252 = arith.subf %249, %251 : vector<32x16xf32>
    %253 = arith.addf %235, %252 : vector<32x16xf32>
    %254 = vector.broadcast %242 : vector<1x16xf32> to vector<32x16xf32>
    %255 = arith.mulf %254, %247 : vector<32x16xf32>
    %256 = vector.broadcast %243 : vector<1x16xf32> to vector<32x16xf32>
    %257 = arith.mulf %256, %245 : vector<32x16xf32>
    %258 = arith.addf %255, %257 : vector<32x16xf32>
    %259 = arith.addf %241, %258 : vector<32x16xf32>
    %260 = vector.extract_strided_slice %3 {offsets = [14, 0], sizes = [1, 16], strides = [1, 1]} : vector<32x16xf32> to vector<1x16xf32>
    %261 = vector.extract_strided_slice %5 {offsets = [14, 0], sizes = [1, 16], strides = [1, 1]} : vector<32x16xf32> to vector<1x16xf32>
    %c14 = arith.constant 14 : index
    %c0_80 = arith.constant 0 : index
    %c0_81 = arith.constant 0 : index
    %262 = vector.load %arg4[%c14, %c0_80, %c0_81] : memref<32x32x16xf32, #tpu.memory_space<vmem>>, vector<1x32x16xf32>
    %263 = vector.shape_cast %262 : vector<1x32x16xf32> to vector<32x16xf32>
    %c14_82 = arith.constant 14 : index
    %c0_83 = arith.constant 0 : index
    %c0_84 = arith.constant 0 : index
    %264 = vector.load %arg5[%c14_82, %c0_83, %c0_84] : memref<32x32x16xf32, #tpu.memory_space<vmem>>, vector<1x32x16xf32>
    %265 = vector.shape_cast %264 : vector<1x32x16xf32> to vector<32x16xf32>
    %266 = vector.broadcast %260 : vector<1x16xf32> to vector<32x16xf32>
    %267 = arith.mulf %266, %263 : vector<32x16xf32>
    %268 = vector.broadcast %261 : vector<1x16xf32> to vector<32x16xf32>
    %269 = arith.mulf %268, %265 : vector<32x16xf32>
    %270 = arith.subf %267, %269 : vector<32x16xf32>
    %271 = arith.addf %253, %270 : vector<32x16xf32>
    %272 = vector.broadcast %260 : vector<1x16xf32> to vector<32x16xf32>
    %273 = arith.mulf %272, %265 : vector<32x16xf32>
    %274 = vector.broadcast %261 : vector<1x16xf32> to vector<32x16xf32>
    %275 = arith.mulf %274, %263 : vector<32x16xf32>
    %276 = arith.addf %273, %275 : vector<32x16xf32>
    %277 = arith.addf %259, %276 : vector<32x16xf32>
    %278 = vector.extract_strided_slice %3 {offsets = [15, 0], sizes = [1, 16], strides = [1, 1]} : vector<32x16xf32> to vector<1x16xf32>
    %279 = vector.extract_strided_slice %5 {offsets = [15, 0], sizes = [1, 16], strides = [1, 1]} : vector<32x16xf32> to vector<1x16xf32>
    %c15 = arith.constant 15 : index
    %c0_85 = arith.constant 0 : index
    %c0_86 = arith.constant 0 : index
    %280 = vector.load %arg4[%c15, %c0_85, %c0_86] : memref<32x32x16xf32, #tpu.memory_space<vmem>>, vector<1x32x16xf32>
    %281 = vector.shape_cast %280 : vector<1x32x16xf32> to vector<32x16xf32>
    %c15_87 = arith.constant 15 : index
    %c0_88 = arith.constant 0 : index
    %c0_89 = arith.constant 0 : index
    %282 = vector.load %arg5[%c15_87, %c0_88, %c0_89] : memref<32x32x16xf32, #tpu.memory_space<vmem>>, vector<1x32x16xf32>
    %283 = vector.shape_cast %282 : vector<1x32x16xf32> to vector<32x16xf32>
    %284 = vector.broadcast %278 : vector<1x16xf32> to vector<32x16xf32>
    %285 = arith.mulf %284, %281 : vector<32x16xf32>
    %286 = vector.broadcast %279 : vector<1x16xf32> to vector<32x16xf32>
    %287 = arith.mulf %286, %283 : vector<32x16xf32>
    %288 = arith.subf %285, %287 : vector<32x16xf32>
    %289 = arith.addf %271, %288 : vector<32x16xf32>
    %290 = vector.broadcast %278 : vector<1x16xf32> to vector<32x16xf32>
    %291 = arith.mulf %290, %283 : vector<32x16xf32>
    %292 = vector.broadcast %279 : vector<1x16xf32> to vector<32x16xf32>
    %293 = arith.mulf %292, %281 : vector<32x16xf32>
    %294 = arith.addf %291, %293 : vector<32x16xf32>
    %295 = arith.addf %277, %294 : vector<32x16xf32>
    %296 = vector.extract_strided_slice %3 {offsets = [16, 0], sizes = [1, 16], strides = [1, 1]} : vector<32x16xf32> to vector<1x16xf32>
    %297 = vector.extract_strided_slice %5 {offsets = [16, 0], sizes = [1, 16], strides = [1, 1]} : vector<32x16xf32> to vector<1x16xf32>
    %c16 = arith.constant 16 : index
    %c0_90 = arith.constant 0 : index
    %c0_91 = arith.constant 0 : index
    %298 = vector.load %arg4[%c16, %c0_90, %c0_91] : memref<32x32x16xf32, #tpu.memory_space<vmem>>, vector<1x32x16xf32>
    %299 = vector.shape_cast %298 : vector<1x32x16xf32> to vector<32x16xf32>
    %c16_92 = arith.constant 16 : index
    %c0_93 = arith.constant 0 : index
    %c0_94 = arith.constant 0 : index
    %300 = vector.load %arg5[%c16_92, %c0_93, %c0_94] : memref<32x32x16xf32, #tpu.memory_space<vmem>>, vector<1x32x16xf32>
    %301 = vector.shape_cast %300 : vector<1x32x16xf32> to vector<32x16xf32>
    %302 = vector.broadcast %296 : vector<1x16xf32> to vector<32x16xf32>
    %303 = arith.mulf %302, %299 : vector<32x16xf32>
    %304 = vector.broadcast %297 : vector<1x16xf32> to vector<32x16xf32>
    %305 = arith.mulf %304, %301 : vector<32x16xf32>
    %306 = arith.subf %303, %305 : vector<32x16xf32>
    %307 = arith.addf %289, %306 : vector<32x16xf32>
    %308 = vector.broadcast %296 : vector<1x16xf32> to vector<32x16xf32>
    %309 = arith.mulf %308, %301 : vector<32x16xf32>
    %310 = vector.broadcast %297 : vector<1x16xf32> to vector<32x16xf32>
    %311 = arith.mulf %310, %299 : vector<32x16xf32>
    %312 = arith.addf %309, %311 : vector<32x16xf32>
    %313 = arith.addf %295, %312 : vector<32x16xf32>
    %314 = vector.extract_strided_slice %3 {offsets = [17, 0], sizes = [1, 16], strides = [1, 1]} : vector<32x16xf32> to vector<1x16xf32>
    %315 = vector.extract_strided_slice %5 {offsets = [17, 0], sizes = [1, 16], strides = [1, 1]} : vector<32x16xf32> to vector<1x16xf32>
    %c17 = arith.constant 17 : index
    %c0_95 = arith.constant 0 : index
    %c0_96 = arith.constant 0 : index
    %316 = vector.load %arg4[%c17, %c0_95, %c0_96] : memref<32x32x16xf32, #tpu.memory_space<vmem>>, vector<1x32x16xf32>
    %317 = vector.shape_cast %316 : vector<1x32x16xf32> to vector<32x16xf32>
    %c17_97 = arith.constant 17 : index
    %c0_98 = arith.constant 0 : index
    %c0_99 = arith.constant 0 : index
    %318 = vector.load %arg5[%c17_97, %c0_98, %c0_99] : memref<32x32x16xf32, #tpu.memory_space<vmem>>, vector<1x32x16xf32>
    %319 = vector.shape_cast %318 : vector<1x32x16xf32> to vector<32x16xf32>
    %320 = vector.broadcast %314 : vector<1x16xf32> to vector<32x16xf32>
    %321 = arith.mulf %320, %317 : vector<32x16xf32>
    %322 = vector.broadcast %315 : vector<1x16xf32> to vector<32x16xf32>
    %323 = arith.mulf %322, %319 : vector<32x16xf32>
    %324 = arith.subf %321, %323 : vector<32x16xf32>
    %325 = arith.addf %307, %324 : vector<32x16xf32>
    %326 = vector.broadcast %314 : vector<1x16xf32> to vector<32x16xf32>
    %327 = arith.mulf %326, %319 : vector<32x16xf32>
    %328 = vector.broadcast %315 : vector<1x16xf32> to vector<32x16xf32>
    %329 = arith.mulf %328, %317 : vector<32x16xf32>
    %330 = arith.addf %327, %329 : vector<32x16xf32>
    %331 = arith.addf %313, %330 : vector<32x16xf32>
    %332 = vector.extract_strided_slice %3 {offsets = [18, 0], sizes = [1, 16], strides = [1, 1]} : vector<32x16xf32> to vector<1x16xf32>
    %333 = vector.extract_strided_slice %5 {offsets = [18, 0], sizes = [1, 16], strides = [1, 1]} : vector<32x16xf32> to vector<1x16xf32>
    %c18 = arith.constant 18 : index
    %c0_100 = arith.constant 0 : index
    %c0_101 = arith.constant 0 : index
    %334 = vector.load %arg4[%c18, %c0_100, %c0_101] : memref<32x32x16xf32, #tpu.memory_space<vmem>>, vector<1x32x16xf32>
    %335 = vector.shape_cast %334 : vector<1x32x16xf32> to vector<32x16xf32>
    %c18_102 = arith.constant 18 : index
    %c0_103 = arith.constant 0 : index
    %c0_104 = arith.constant 0 : index
    %336 = vector.load %arg5[%c18_102, %c0_103, %c0_104] : memref<32x32x16xf32, #tpu.memory_space<vmem>>, vector<1x32x16xf32>
    %337 = vector.shape_cast %336 : vector<1x32x16xf32> to vector<32x16xf32>
    %338 = vector.broadcast %332 : vector<1x16xf32> to vector<32x16xf32>
    %339 = arith.mulf %338, %335 : vector<32x16xf32>
    %340 = vector.broadcast %333 : vector<1x16xf32> to vector<32x16xf32>
    %341 = arith.mulf %340, %337 : vector<32x16xf32>
    %342 = arith.subf %339, %341 : vector<32x16xf32>
    %343 = arith.addf %325, %342 : vector<32x16xf32>
    %344 = vector.broadcast %332 : vector<1x16xf32> to vector<32x16xf32>
    %345 = arith.mulf %344, %337 : vector<32x16xf32>
    %346 = vector.broadcast %333 : vector<1x16xf32> to vector<32x16xf32>
    %347 = arith.mulf %346, %335 : vector<32x16xf32>
    %348 = arith.addf %345, %347 : vector<32x16xf32>
    %349 = arith.addf %331, %348 : vector<32x16xf32>
    %350 = vector.extract_strided_slice %3 {offsets = [19, 0], sizes = [1, 16], strides = [1, 1]} : vector<32x16xf32> to vector<1x16xf32>
    %351 = vector.extract_strided_slice %5 {offsets = [19, 0], sizes = [1, 16], strides = [1, 1]} : vector<32x16xf32> to vector<1x16xf32>
    %c19 = arith.constant 19 : index
    %c0_105 = arith.constant 0 : index
    %c0_106 = arith.constant 0 : index
    %352 = vector.load %arg4[%c19, %c0_105, %c0_106] : memref<32x32x16xf32, #tpu.memory_space<vmem>>, vector<1x32x16xf32>
    %353 = vector.shape_cast %352 : vector<1x32x16xf32> to vector<32x16xf32>
    %c19_107 = arith.constant 19 : index
    %c0_108 = arith.constant 0 : index
    %c0_109 = arith.constant 0 : index
    %354 = vector.load %arg5[%c19_107, %c0_108, %c0_109] : memref<32x32x16xf32, #tpu.memory_space<vmem>>, vector<1x32x16xf32>
    %355 = vector.shape_cast %354 : vector<1x32x16xf32> to vector<32x16xf32>
    %356 = vector.broadcast %350 : vector<1x16xf32> to vector<32x16xf32>
    %357 = arith.mulf %356, %353 : vector<32x16xf32>
    %358 = vector.broadcast %351 : vector<1x16xf32> to vector<32x16xf32>
    %359 = arith.mulf %358, %355 : vector<32x16xf32>
    %360 = arith.subf %357, %359 : vector<32x16xf32>
    %361 = arith.addf %343, %360 : vector<32x16xf32>
    %362 = vector.broadcast %350 : vector<1x16xf32> to vector<32x16xf32>
    %363 = arith.mulf %362, %355 : vector<32x16xf32>
    %364 = vector.broadcast %351 : vector<1x16xf32> to vector<32x16xf32>
    %365 = arith.mulf %364, %353 : vector<32x16xf32>
    %366 = arith.addf %363, %365 : vector<32x16xf32>
    %367 = arith.addf %349, %366 : vector<32x16xf32>
    %368 = vector.extract_strided_slice %3 {offsets = [20, 0], sizes = [1, 16], strides = [1, 1]} : vector<32x16xf32> to vector<1x16xf32>
    %369 = vector.extract_strided_slice %5 {offsets = [20, 0], sizes = [1, 16], strides = [1, 1]} : vector<32x16xf32> to vector<1x16xf32>
    %c20 = arith.constant 20 : index
    %c0_110 = arith.constant 0 : index
    %c0_111 = arith.constant 0 : index
    %370 = vector.load %arg4[%c20, %c0_110, %c0_111] : memref<32x32x16xf32, #tpu.memory_space<vmem>>, vector<1x32x16xf32>
    %371 = vector.shape_cast %370 : vector<1x32x16xf32> to vector<32x16xf32>
    %c20_112 = arith.constant 20 : index
    %c0_113 = arith.constant 0 : index
    %c0_114 = arith.constant 0 : index
    %372 = vector.load %arg5[%c20_112, %c0_113, %c0_114] : memref<32x32x16xf32, #tpu.memory_space<vmem>>, vector<1x32x16xf32>
    %373 = vector.shape_cast %372 : vector<1x32x16xf32> to vector<32x16xf32>
    %374 = vector.broadcast %368 : vector<1x16xf32> to vector<32x16xf32>
    %375 = arith.mulf %374, %371 : vector<32x16xf32>
    %376 = vector.broadcast %369 : vector<1x16xf32> to vector<32x16xf32>
    %377 = arith.mulf %376, %373 : vector<32x16xf32>
    %378 = arith.subf %375, %377 : vector<32x16xf32>
    %379 = arith.addf %361, %378 : vector<32x16xf32>
    %380 = vector.broadcast %368 : vector<1x16xf32> to vector<32x16xf32>
    %381 = arith.mulf %380, %373 : vector<32x16xf32>
    %382 = vector.broadcast %369 : vector<1x16xf32> to vector<32x16xf32>
    %383 = arith.mulf %382, %371 : vector<32x16xf32>
    %384 = arith.addf %381, %383 : vector<32x16xf32>
    %385 = arith.addf %367, %384 : vector<32x16xf32>
    %386 = vector.extract_strided_slice %3 {offsets = [21, 0], sizes = [1, 16], strides = [1, 1]} : vector<32x16xf32> to vector<1x16xf32>
    %387 = vector.extract_strided_slice %5 {offsets = [21, 0], sizes = [1, 16], strides = [1, 1]} : vector<32x16xf32> to vector<1x16xf32>
    %c21 = arith.constant 21 : index
    %c0_115 = arith.constant 0 : index
    %c0_116 = arith.constant 0 : index
    %388 = vector.load %arg4[%c21, %c0_115, %c0_116] : memref<32x32x16xf32, #tpu.memory_space<vmem>>, vector<1x32x16xf32>
    %389 = vector.shape_cast %388 : vector<1x32x16xf32> to vector<32x16xf32>
    %c21_117 = arith.constant 21 : index
    %c0_118 = arith.constant 0 : index
    %c0_119 = arith.constant 0 : index
    %390 = vector.load %arg5[%c21_117, %c0_118, %c0_119] : memref<32x32x16xf32, #tpu.memory_space<vmem>>, vector<1x32x16xf32>
    %391 = vector.shape_cast %390 : vector<1x32x16xf32> to vector<32x16xf32>
    %392 = vector.broadcast %386 : vector<1x16xf32> to vector<32x16xf32>
    %393 = arith.mulf %392, %389 : vector<32x16xf32>
    %394 = vector.broadcast %387 : vector<1x16xf32> to vector<32x16xf32>
    %395 = arith.mulf %394, %391 : vector<32x16xf32>
    %396 = arith.subf %393, %395 : vector<32x16xf32>
    %397 = arith.addf %379, %396 : vector<32x16xf32>
    %398 = vector.broadcast %386 : vector<1x16xf32> to vector<32x16xf32>
    %399 = arith.mulf %398, %391 : vector<32x16xf32>
    %400 = vector.broadcast %387 : vector<1x16xf32> to vector<32x16xf32>
    %401 = arith.mulf %400, %389 : vector<32x16xf32>
    %402 = arith.addf %399, %401 : vector<32x16xf32>
    %403 = arith.addf %385, %402 : vector<32x16xf32>
    %404 = vector.extract_strided_slice %3 {offsets = [22, 0], sizes = [1, 16], strides = [1, 1]} : vector<32x16xf32> to vector<1x16xf32>
    %405 = vector.extract_strided_slice %5 {offsets = [22, 0], sizes = [1, 16], strides = [1, 1]} : vector<32x16xf32> to vector<1x16xf32>
    %c22 = arith.constant 22 : index
    %c0_120 = arith.constant 0 : index
    %c0_121 = arith.constant 0 : index
    %406 = vector.load %arg4[%c22, %c0_120, %c0_121] : memref<32x32x16xf32, #tpu.memory_space<vmem>>, vector<1x32x16xf32>
    %407 = vector.shape_cast %406 : vector<1x32x16xf32> to vector<32x16xf32>
    %c22_122 = arith.constant 22 : index
    %c0_123 = arith.constant 0 : index
    %c0_124 = arith.constant 0 : index
    %408 = vector.load %arg5[%c22_122, %c0_123, %c0_124] : memref<32x32x16xf32, #tpu.memory_space<vmem>>, vector<1x32x16xf32>
    %409 = vector.shape_cast %408 : vector<1x32x16xf32> to vector<32x16xf32>
    %410 = vector.broadcast %404 : vector<1x16xf32> to vector<32x16xf32>
    %411 = arith.mulf %410, %407 : vector<32x16xf32>
    %412 = vector.broadcast %405 : vector<1x16xf32> to vector<32x16xf32>
    %413 = arith.mulf %412, %409 : vector<32x16xf32>
    %414 = arith.subf %411, %413 : vector<32x16xf32>
    %415 = arith.addf %397, %414 : vector<32x16xf32>
    %416 = vector.broadcast %404 : vector<1x16xf32> to vector<32x16xf32>
    %417 = arith.mulf %416, %409 : vector<32x16xf32>
    %418 = vector.broadcast %405 : vector<1x16xf32> to vector<32x16xf32>
    %419 = arith.mulf %418, %407 : vector<32x16xf32>
    %420 = arith.addf %417, %419 : vector<32x16xf32>
    %421 = arith.addf %403, %420 : vector<32x16xf32>
    %422 = vector.extract_strided_slice %3 {offsets = [23, 0], sizes = [1, 16], strides = [1, 1]} : vector<32x16xf32> to vector<1x16xf32>
    %423 = vector.extract_strided_slice %5 {offsets = [23, 0], sizes = [1, 16], strides = [1, 1]} : vector<32x16xf32> to vector<1x16xf32>
    %c23 = arith.constant 23 : index
    %c0_125 = arith.constant 0 : index
    %c0_126 = arith.constant 0 : index
    %424 = vector.load %arg4[%c23, %c0_125, %c0_126] : memref<32x32x16xf32, #tpu.memory_space<vmem>>, vector<1x32x16xf32>
    %425 = vector.shape_cast %424 : vector<1x32x16xf32> to vector<32x16xf32>
    %c23_127 = arith.constant 23 : index
    %c0_128 = arith.constant 0 : index
    %c0_129 = arith.constant 0 : index
    %426 = vector.load %arg5[%c23_127, %c0_128, %c0_129] : memref<32x32x16xf32, #tpu.memory_space<vmem>>, vector<1x32x16xf32>
    %427 = vector.shape_cast %426 : vector<1x32x16xf32> to vector<32x16xf32>
    %428 = vector.broadcast %422 : vector<1x16xf32> to vector<32x16xf32>
    %429 = arith.mulf %428, %425 : vector<32x16xf32>
    %430 = vector.broadcast %423 : vector<1x16xf32> to vector<32x16xf32>
    %431 = arith.mulf %430, %427 : vector<32x16xf32>
    %432 = arith.subf %429, %431 : vector<32x16xf32>
    %433 = arith.addf %415, %432 : vector<32x16xf32>
    %434 = vector.broadcast %422 : vector<1x16xf32> to vector<32x16xf32>
    %435 = arith.mulf %434, %427 : vector<32x16xf32>
    %436 = vector.broadcast %423 : vector<1x16xf32> to vector<32x16xf32>
    %437 = arith.mulf %436, %425 : vector<32x16xf32>
    %438 = arith.addf %435, %437 : vector<32x16xf32>
    %439 = arith.addf %421, %438 : vector<32x16xf32>
    %440 = vector.extract_strided_slice %3 {offsets = [24, 0], sizes = [1, 16], strides = [1, 1]} : vector<32x16xf32> to vector<1x16xf32>
    %441 = vector.extract_strided_slice %5 {offsets = [24, 0], sizes = [1, 16], strides = [1, 1]} : vector<32x16xf32> to vector<1x16xf32>
    %c24 = arith.constant 24 : index
    %c0_130 = arith.constant 0 : index
    %c0_131 = arith.constant 0 : index
    %442 = vector.load %arg4[%c24, %c0_130, %c0_131] : memref<32x32x16xf32, #tpu.memory_space<vmem>>, vector<1x32x16xf32>
    %443 = vector.shape_cast %442 : vector<1x32x16xf32> to vector<32x16xf32>
    %c24_132 = arith.constant 24 : index
    %c0_133 = arith.constant 0 : index
    %c0_134 = arith.constant 0 : index
    %444 = vector.load %arg5[%c24_132, %c0_133, %c0_134] : memref<32x32x16xf32, #tpu.memory_space<vmem>>, vector<1x32x16xf32>
    %445 = vector.shape_cast %444 : vector<1x32x16xf32> to vector<32x16xf32>
    %446 = vector.broadcast %440 : vector<1x16xf32> to vector<32x16xf32>
    %447 = arith.mulf %446, %443 : vector<32x16xf32>
    %448 = vector.broadcast %441 : vector<1x16xf32> to vector<32x16xf32>
    %449 = arith.mulf %448, %445 : vector<32x16xf32>
    %450 = arith.subf %447, %449 : vector<32x16xf32>
    %451 = arith.addf %433, %450 : vector<32x16xf32>
    %452 = vector.broadcast %440 : vector<1x16xf32> to vector<32x16xf32>
    %453 = arith.mulf %452, %445 : vector<32x16xf32>
    %454 = vector.broadcast %441 : vector<1x16xf32> to vector<32x16xf32>
    %455 = arith.mulf %454, %443 : vector<32x16xf32>
    %456 = arith.addf %453, %455 : vector<32x16xf32>
    %457 = arith.addf %439, %456 : vector<32x16xf32>
    %458 = vector.extract_strided_slice %3 {offsets = [25, 0], sizes = [1, 16], strides = [1, 1]} : vector<32x16xf32> to vector<1x16xf32>
    %459 = vector.extract_strided_slice %5 {offsets = [25, 0], sizes = [1, 16], strides = [1, 1]} : vector<32x16xf32> to vector<1x16xf32>
    %c25 = arith.constant 25 : index
    %c0_135 = arith.constant 0 : index
    %c0_136 = arith.constant 0 : index
    %460 = vector.load %arg4[%c25, %c0_135, %c0_136] : memref<32x32x16xf32, #tpu.memory_space<vmem>>, vector<1x32x16xf32>
    %461 = vector.shape_cast %460 : vector<1x32x16xf32> to vector<32x16xf32>
    %c25_137 = arith.constant 25 : index
    %c0_138 = arith.constant 0 : index
    %c0_139 = arith.constant 0 : index
    %462 = vector.load %arg5[%c25_137, %c0_138, %c0_139] : memref<32x32x16xf32, #tpu.memory_space<vmem>>, vector<1x32x16xf32>
    %463 = vector.shape_cast %462 : vector<1x32x16xf32> to vector<32x16xf32>
    %464 = vector.broadcast %458 : vector<1x16xf32> to vector<32x16xf32>
    %465 = arith.mulf %464, %461 : vector<32x16xf32>
    %466 = vector.broadcast %459 : vector<1x16xf32> to vector<32x16xf32>
    %467 = arith.mulf %466, %463 : vector<32x16xf32>
    %468 = arith.subf %465, %467 : vector<32x16xf32>
    %469 = arith.addf %451, %468 : vector<32x16xf32>
    %470 = vector.broadcast %458 : vector<1x16xf32> to vector<32x16xf32>
    %471 = arith.mulf %470, %463 : vector<32x16xf32>
    %472 = vector.broadcast %459 : vector<1x16xf32> to vector<32x16xf32>
    %473 = arith.mulf %472, %461 : vector<32x16xf32>
    %474 = arith.addf %471, %473 : vector<32x16xf32>
    %475 = arith.addf %457, %474 : vector<32x16xf32>
    %476 = vector.extract_strided_slice %3 {offsets = [26, 0], sizes = [1, 16], strides = [1, 1]} : vector<32x16xf32> to vector<1x16xf32>
    %477 = vector.extract_strided_slice %5 {offsets = [26, 0], sizes = [1, 16], strides = [1, 1]} : vector<32x16xf32> to vector<1x16xf32>
    %c26 = arith.constant 26 : index
    %c0_140 = arith.constant 0 : index
    %c0_141 = arith.constant 0 : index
    %478 = vector.load %arg4[%c26, %c0_140, %c0_141] : memref<32x32x16xf32, #tpu.memory_space<vmem>>, vector<1x32x16xf32>
    %479 = vector.shape_cast %478 : vector<1x32x16xf32> to vector<32x16xf32>
    %c26_142 = arith.constant 26 : index
    %c0_143 = arith.constant 0 : index
    %c0_144 = arith.constant 0 : index
    %480 = vector.load %arg5[%c26_142, %c0_143, %c0_144] : memref<32x32x16xf32, #tpu.memory_space<vmem>>, vector<1x32x16xf32>
    %481 = vector.shape_cast %480 : vector<1x32x16xf32> to vector<32x16xf32>
    %482 = vector.broadcast %476 : vector<1x16xf32> to vector<32x16xf32>
    %483 = arith.mulf %482, %479 : vector<32x16xf32>
    %484 = vector.broadcast %477 : vector<1x16xf32> to vector<32x16xf32>
    %485 = arith.mulf %484, %481 : vector<32x16xf32>
    %486 = arith.subf %483, %485 : vector<32x16xf32>
    %487 = arith.addf %469, %486 : vector<32x16xf32>
    %488 = vector.broadcast %476 : vector<1x16xf32> to vector<32x16xf32>
    %489 = arith.mulf %488, %481 : vector<32x16xf32>
    %490 = vector.broadcast %477 : vector<1x16xf32> to vector<32x16xf32>
    %491 = arith.mulf %490, %479 : vector<32x16xf32>
    %492 = arith.addf %489, %491 : vector<32x16xf32>
    %493 = arith.addf %475, %492 : vector<32x16xf32>
    %494 = vector.extract_strided_slice %3 {offsets = [27, 0], sizes = [1, 16], strides = [1, 1]} : vector<32x16xf32> to vector<1x16xf32>
    %495 = vector.extract_strided_slice %5 {offsets = [27, 0], sizes = [1, 16], strides = [1, 1]} : vector<32x16xf32> to vector<1x16xf32>
    %c27 = arith.constant 27 : index
    %c0_145 = arith.constant 0 : index
    %c0_146 = arith.constant 0 : index
    %496 = vector.load %arg4[%c27, %c0_145, %c0_146] : memref<32x32x16xf32, #tpu.memory_space<vmem>>, vector<1x32x16xf32>
    %497 = vector.shape_cast %496 : vector<1x32x16xf32> to vector<32x16xf32>
    %c27_147 = arith.constant 27 : index
    %c0_148 = arith.constant 0 : index
    %c0_149 = arith.constant 0 : index
    %498 = vector.load %arg5[%c27_147, %c0_148, %c0_149] : memref<32x32x16xf32, #tpu.memory_space<vmem>>, vector<1x32x16xf32>
    %499 = vector.shape_cast %498 : vector<1x32x16xf32> to vector<32x16xf32>
    %500 = vector.broadcast %494 : vector<1x16xf32> to vector<32x16xf32>
    %501 = arith.mulf %500, %497 : vector<32x16xf32>
    %502 = vector.broadcast %495 : vector<1x16xf32> to vector<32x16xf32>
    %503 = arith.mulf %502, %499 : vector<32x16xf32>
    %504 = arith.subf %501, %503 : vector<32x16xf32>
    %505 = arith.addf %487, %504 : vector<32x16xf32>
    %506 = vector.broadcast %494 : vector<1x16xf32> to vector<32x16xf32>
    %507 = arith.mulf %506, %499 : vector<32x16xf32>
    %508 = vector.broadcast %495 : vector<1x16xf32> to vector<32x16xf32>
    %509 = arith.mulf %508, %497 : vector<32x16xf32>
    %510 = arith.addf %507, %509 : vector<32x16xf32>
    %511 = arith.addf %493, %510 : vector<32x16xf32>
    %512 = vector.extract_strided_slice %3 {offsets = [28, 0], sizes = [1, 16], strides = [1, 1]} : vector<32x16xf32> to vector<1x16xf32>
    %513 = vector.extract_strided_slice %5 {offsets = [28, 0], sizes = [1, 16], strides = [1, 1]} : vector<32x16xf32> to vector<1x16xf32>
    %c28 = arith.constant 28 : index
    %c0_150 = arith.constant 0 : index
    %c0_151 = arith.constant 0 : index
    %514 = vector.load %arg4[%c28, %c0_150, %c0_151] : memref<32x32x16xf32, #tpu.memory_space<vmem>>, vector<1x32x16xf32>
    %515 = vector.shape_cast %514 : vector<1x32x16xf32> to vector<32x16xf32>
    %c28_152 = arith.constant 28 : index
    %c0_153 = arith.constant 0 : index
    %c0_154 = arith.constant 0 : index
    %516 = vector.load %arg5[%c28_152, %c0_153, %c0_154] : memref<32x32x16xf32, #tpu.memory_space<vmem>>, vector<1x32x16xf32>
    %517 = vector.shape_cast %516 : vector<1x32x16xf32> to vector<32x16xf32>
    %518 = vector.broadcast %512 : vector<1x16xf32> to vector<32x16xf32>
    %519 = arith.mulf %518, %515 : vector<32x16xf32>
    %520 = vector.broadcast %513 : vector<1x16xf32> to vector<32x16xf32>
    %521 = arith.mulf %520, %517 : vector<32x16xf32>
    %522 = arith.subf %519, %521 : vector<32x16xf32>
    %523 = arith.addf %505, %522 : vector<32x16xf32>
    %524 = vector.broadcast %512 : vector<1x16xf32> to vector<32x16xf32>
    %525 = arith.mulf %524, %517 : vector<32x16xf32>
    %526 = vector.broadcast %513 : vector<1x16xf32> to vector<32x16xf32>
    %527 = arith.mulf %526, %515 : vector<32x16xf32>
    %528 = arith.addf %525, %527 : vector<32x16xf32>
    %529 = arith.addf %511, %528 : vector<32x16xf32>
    %530 = vector.extract_strided_slice %3 {offsets = [29, 0], sizes = [1, 16], strides = [1, 1]} : vector<32x16xf32> to vector<1x16xf32>
    %531 = vector.extract_strided_slice %5 {offsets = [29, 0], sizes = [1, 16], strides = [1, 1]} : vector<32x16xf32> to vector<1x16xf32>
    %c29 = arith.constant 29 : index
    %c0_155 = arith.constant 0 : index
    %c0_156 = arith.constant 0 : index
    %532 = vector.load %arg4[%c29, %c0_155, %c0_156] : memref<32x32x16xf32, #tpu.memory_space<vmem>>, vector<1x32x16xf32>
    %533 = vector.shape_cast %532 : vector<1x32x16xf32> to vector<32x16xf32>
    %c29_157 = arith.constant 29 : index
    %c0_158 = arith.constant 0 : index
    %c0_159 = arith.constant 0 : index
    %534 = vector.load %arg5[%c29_157, %c0_158, %c0_159] : memref<32x32x16xf32, #tpu.memory_space<vmem>>, vector<1x32x16xf32>
    %535 = vector.shape_cast %534 : vector<1x32x16xf32> to vector<32x16xf32>
    %536 = vector.broadcast %530 : vector<1x16xf32> to vector<32x16xf32>
    %537 = arith.mulf %536, %533 : vector<32x16xf32>
    %538 = vector.broadcast %531 : vector<1x16xf32> to vector<32x16xf32>
    %539 = arith.mulf %538, %535 : vector<32x16xf32>
    %540 = arith.subf %537, %539 : vector<32x16xf32>
    %541 = arith.addf %523, %540 : vector<32x16xf32>
    %542 = vector.broadcast %530 : vector<1x16xf32> to vector<32x16xf32>
    %543 = arith.mulf %542, %535 : vector<32x16xf32>
    %544 = vector.broadcast %531 : vector<1x16xf32> to vector<32x16xf32>
    %545 = arith.mulf %544, %533 : vector<32x16xf32>
    %546 = arith.addf %543, %545 : vector<32x16xf32>
    %547 = arith.addf %529, %546 : vector<32x16xf32>
    %548 = vector.extract_strided_slice %3 {offsets = [30, 0], sizes = [1, 16], strides = [1, 1]} : vector<32x16xf32> to vector<1x16xf32>
    %549 = vector.extract_strided_slice %5 {offsets = [30, 0], sizes = [1, 16], strides = [1, 1]} : vector<32x16xf32> to vector<1x16xf32>
    %c30 = arith.constant 30 : index
    %c0_160 = arith.constant 0 : index
    %c0_161 = arith.constant 0 : index
    %550 = vector.load %arg4[%c30, %c0_160, %c0_161] : memref<32x32x16xf32, #tpu.memory_space<vmem>>, vector<1x32x16xf32>
    %551 = vector.shape_cast %550 : vector<1x32x16xf32> to vector<32x16xf32>
    %c30_162 = arith.constant 30 : index
    %c0_163 = arith.constant 0 : index
    %c0_164 = arith.constant 0 : index
    %552 = vector.load %arg5[%c30_162, %c0_163, %c0_164] : memref<32x32x16xf32, #tpu.memory_space<vmem>>, vector<1x32x16xf32>
    %553 = vector.shape_cast %552 : vector<1x32x16xf32> to vector<32x16xf32>
    %554 = vector.broadcast %548 : vector<1x16xf32> to vector<32x16xf32>
    %555 = arith.mulf %554, %551 : vector<32x16xf32>
    %556 = vector.broadcast %549 : vector<1x16xf32> to vector<32x16xf32>
    %557 = arith.mulf %556, %553 : vector<32x16xf32>
    %558 = arith.subf %555, %557 : vector<32x16xf32>
    %559 = arith.addf %541, %558 : vector<32x16xf32>
    %560 = vector.broadcast %548 : vector<1x16xf32> to vector<32x16xf32>
    %561 = arith.mulf %560, %553 : vector<32x16xf32>
    %562 = vector.broadcast %549 : vector<1x16xf32> to vector<32x16xf32>
    %563 = arith.mulf %562, %551 : vector<32x16xf32>
    %564 = arith.addf %561, %563 : vector<32x16xf32>
    %565 = arith.addf %547, %564 : vector<32x16xf32>
    %566 = vector.extract_strided_slice %3 {offsets = [31, 0], sizes = [1, 16], strides = [1, 1]} : vector<32x16xf32> to vector<1x16xf32>
    %567 = vector.extract_strided_slice %5 {offsets = [31, 0], sizes = [1, 16], strides = [1, 1]} : vector<32x16xf32> to vector<1x16xf32>
    %c31 = arith.constant 31 : index
    %c0_165 = arith.constant 0 : index
    %c0_166 = arith.constant 0 : index
    %568 = vector.load %arg4[%c31, %c0_165, %c0_166] : memref<32x32x16xf32, #tpu.memory_space<vmem>>, vector<1x32x16xf32>
    %569 = vector.shape_cast %568 : vector<1x32x16xf32> to vector<32x16xf32>
    %c31_167 = arith.constant 31 : index
    %c0_168 = arith.constant 0 : index
    %c0_169 = arith.constant 0 : index
    %570 = vector.load %arg5[%c31_167, %c0_168, %c0_169] : memref<32x32x16xf32, #tpu.memory_space<vmem>>, vector<1x32x16xf32>
    %571 = vector.shape_cast %570 : vector<1x32x16xf32> to vector<32x16xf32>
    %572 = vector.broadcast %566 : vector<1x16xf32> to vector<32x16xf32>
    %573 = arith.mulf %572, %569 : vector<32x16xf32>
    %574 = vector.broadcast %567 : vector<1x16xf32> to vector<32x16xf32>
    %575 = arith.mulf %574, %571 : vector<32x16xf32>
    %576 = arith.subf %573, %575 : vector<32x16xf32>
    %577 = arith.addf %559, %576 : vector<32x16xf32>
    %578 = vector.broadcast %566 : vector<1x16xf32> to vector<32x16xf32>
    %579 = arith.mulf %578, %571 : vector<32x16xf32>
    %580 = vector.broadcast %567 : vector<1x16xf32> to vector<32x16xf32>
    %581 = arith.mulf %580, %569 : vector<32x16xf32>
    %582 = arith.addf %579, %581 : vector<32x16xf32>
    %583 = arith.addf %565, %582 : vector<32x16xf32>
    %c0_170 = arith.constant 0 : index
    %c0_171 = arith.constant 0 : index
    %584 = vector.load %arg6[%c0_170, %c0_171] : memref<16x64xf32, #tpu.memory_space<vmem>>, vector<16x64xf32>
    %cst_172 = arith.constant dense<0.000000e+00> : vector<32x64xf32>
    %585 = tpu.matmul %577, %584, %cst_172 {dimension_numbers = #tpu.dot_dimension_numbers<[1], [0], [0], [1], [0, 0, 1, 1], [], []>} : vector<32x16xf32>, vector<16x64xf32>, vector<32x64xf32> -> vector<32x64xf32>
    %c0_173 = arith.constant 0 : index
    %c0_174 = arith.constant 0 : index
    %586 = vector.load %arg7[%c0_173, %c0_174] : memref<16x64xf32, #tpu.memory_space<vmem>>, vector<16x64xf32>
    %cst_175 = arith.constant dense<0.000000e+00> : vector<32x64xf32>
    %587 = tpu.matmul %583, %586, %cst_175 {dimension_numbers = #tpu.dot_dimension_numbers<[1], [0], [0], [1], [0, 0, 1, 1], [], []>} : vector<32x16xf32>, vector<16x64xf32>, vector<32x64xf32> -> vector<32x64xf32>
    %588 = arith.addf %585, %587 : vector<32x64xf32>
    %c0_176 = arith.constant 0 : index
    %c0_177 = arith.constant 0 : index
    %589 = vector.load %arg8[%c0_176, %c0_177] : memref<32x1xf32, #tpu.memory_space<vmem>>, vector<32x1xf32>
    %590 = vector.broadcast %589 : vector<32x1xf32> to vector<32x64xf32>
    %591 = arith.addf %588, %590 : vector<32x64xf32>
    %cst_178 = arith.constant 0.000000e+00 : f32
    %592 = vector.broadcast %cst_178 : f32 to vector<32x64xf32>
    %593 = arith.maximumf %591, %592 : vector<32x64xf32>
    %c0_179 = arith.constant 0 : index
    %c0_180 = arith.constant 0 : index
    %c0_181 = arith.constant 0 : index
    %594 = vector.load %arg9[%c0_179, %c0_180, %c0_181] : memref<1x32x64xf32, #tpu.memory_space<vmem>>, vector<1x32x64xf32>
    %595 = vector.shape_cast %594 : vector<1x32x64xf32> to vector<32x64xf32>
    %596 = vector.shape_cast %593 : vector<32x64xf32> to vector<1x32x64xf32>
    tpu.vector_store %arg9[%c0_179, %c0_180, %c0_181], %596 {strides = array<i32>} : memref<1x32x64xf32, #tpu.memory_space<vmem>>, vector<1x32x64xf32>,
    return
  }
  func.func @transform_0(%arg0: i32) -> (i32, i32, i32) {
    %c0_i32 = arith.constant 0 : i32
    %c0_i32_0 = arith.constant 0 : i32
    %c0_i32_1 = arith.constant 0 : i32
    return %arg0, %c0_i32, %c0_i32_0 : i32, i32, i32
  }
  func.func @transform_1(%arg0: i32) -> (i32, i32) {
    %c0_i32 = arith.constant 0 : i32
    %c0_i32_0 = arith.constant 0 : i32
    %c0_i32_1 = arith.constant 0 : i32
    return %c0_i32, %c0_i32_0 : i32, i32
  }
  func.func @transform_2(%arg0: i32) -> (i32, i32) {
    %c0_i32 = arith.constant 0 : i32
    %c0_i32_0 = arith.constant 0 : i32
    %c0_i32_1 = arith.constant 0 : i32
    return %c0_i32, %c0_i32_0 : i32, i32
  }
  func.func @transform_3(%arg0: i32) -> (i32, i32, i32) {
    %c0_i32 = arith.constant 0 : i32
    %c0_i32_0 = arith.constant 0 : i32
    %c0_i32_1 = arith.constant 0 : i32
    %c0_i32_2 = arith.constant 0 : i32
    return %c0_i32, %c0_i32_0, %c0_i32_1 : i32, i32, i32
  }
  func.func @transform_4(%arg0: i32) -> (i32, i32, i32) {
    %c0_i32 = arith.constant 0 : i32
    %c0_i32_0 = arith.constant 0 : i32
    %c0_i32_1 = arith.constant 0 : i32
    %c0_i32_2 = arith.constant 0 : i32
    return %c0_i32, %c0_i32_0, %c0_i32_1 : i32, i32, i32
  }
  func.func @transform_5(%arg0: i32) -> (i32, i32) {
    %c0_i32 = arith.constant 0 : i32
    %c0_i32_0 = arith.constant 0 : i32
    %c0_i32_1 = arith.constant 0 : i32
    return %c0_i32, %c0_i32_0 : i32, i32
  }
  func.func @transform_6(%arg0: i32) -> (i32, i32) {
    %c0_i32 = arith.constant 0 : i32
    %c0_i32_0 = arith.constant 0 : i32
    %c0_i32_1 = arith.constant 0 : i32
    return %c0_i32, %c0_i32_0 : i32, i32
  }
  func.func @transform_7(%arg0: i32) -> (i32, i32) {
    %c0_i32 = arith.constant 0 : i32
    %c0_i32_0 = arith.constant 0 : i32
    %c0_i32_1 = arith.constant 0 : i32
    return %c0_i32, %c0_i32_0 : i32, i32
  }
  func.func @transform_8(%arg0: i32) -> (i32, i32, i32) {
    %c0_i32 = arith.constant 0 : i32
    %c0_i32_0 = arith.constant 0 : i32
    %c0_i32_1 = arith.constant 0 : i32
    return %arg0, %c0_i32, %c0_i32_0 : i32, i32, i32
  }
}

</mosaic_0001>

<bundles_post_ra>
// kernel: tpu_custom_call.1
= control target key start
LH: loop header
LB: loop body
LE: loop exit
PB: predicated region body
PF: predicated region fallthrough
CT: control target
= control target key end

     0   :  { %13 = vsyncpa [#allocation3], 0  ;;  %s5368_s0 = inlined_call_operand.vmem [shape: f32[2,32,64], index: 0, kind: input, shape index: {}]   ;;  %s5369_s1 = inlined_call_operand.vmem [shape: f32[64,16], index: 1, kind: input, shape index: {}]   ;;  %s5370_s2 = inlined_call_operand.vmem [shape: f32[64,16], index: 2, kind: input, shape index: {}]   ;;  %s5371_s3 = inlined_call_operand.vmem [shape: f32[32,32,16], index: 3, kind: input, shape index: {}]   ;;  %s5372_s4 = inlined_call_operand.vmem [shape: f32[32,32,16], index: 4, kind: input, shape index: {}]   ;;  %s5373_s5 = inlined_call_operand.vmem [shape: f32[16,64], index: 5, kind: input, shape index: {}]   ;;  %s5374_s6 = inlined_call_operand.vmem [shape: f32[16,64], index: 6, kind: input, shape index: {}]   ;;  %s5375_s7 = inlined_call_operand.vmem [shape: f32[32,1], index: 7, kind: input, shape index: {}]   ;;  %s5376_s8 = inlined_call_operand.hbm [shape: f32[2,32,64], index: 8, kind: output, shape index: {}]  }
   0x1   :  { %15 = vsyncpa [#allocation3 + $0x1], 0  ;;  %s2439_s27 = smov 0   ;;  %s2441_s28 = smov 0  }
   0x2   :  { %s2443_s29 = smov 0   ;;  %s2445_s30 = smov 0  }
   0x3 LB: > { %s2460_s9 = sadd.s32 4294967295, %s2389_s30   ;;  %s2002_s10 = sadd.s32 4294967294, %s2389_s30   ;;  %s2389_s30 = sphi %s2445_s30, %s6246_s30   ;;  %s2385_s29 = sphi %s2443_s29, %s6245_s29   ;;  %s2381_s28 = sphi %s2441_s28, %s6244_s28   ;;  %s2377_s27 = sphi %s2439_s27, %s6243_s27  }
   0x4   : > { %s2464_s11 = sadd.s32 1, %s2389_s30   ;;  %s201_s12 = sadd.s32 1, %s2385_s29 }
   0x5   : > { %s198_s13 = ssub.s32 %s2389_s30, %s2464_s11  ;;  %p211_p0 = scmp.ne.s32.totalorder %s2385_s29, %s2381_s28 }
   0x6   : > { %p199_p1 = scmp.eq.s32.totalorder %s198_s13, 0  ;;  %p212_p2 = scmp.eq.s32.totalorder %s2460_s9, 1 }
   0x7   : > { %p217_p3 = scmp.ne.s32.totalorder %s2381_s28, %s2377_s27  ;;  %p218_p4 = scmp.eq.s32.totalorder %s2002_s10, 1 }
   0x8   : > { %s2475_s14 = scalar_select %p199_p1, %s2385_s29, %s201_s12  }
   0x9   : > { %p2477_p5 = por %p212_p2, %p211_p0  ;;  %p2481_p6 = por %p218_p4, %p217_p3 }
   0xa   : > { %p2005_p7 = scmp.ge.s32.totalorder %s2389_s30, 1  ;;  %p265_p8 = scmp.lt.s32.totalorder %s2389_s30, 3 }
   0xc   : > { %p266_p9 = pnand %p2005_p7, %p265_p8 }
   0xe   : > { %269 = sbr.rel (%p266_p9) target bundleno = 706 (0x2c2), region = 52 }
  0x13   : > { %v315_v0 = vld [vmem:[%s5369_s1 + $0x38] sm:$0xff]  ;;  %v314_v2 = vld [vmem:[%s5369_s1 + $0x30] sm:$0xff]  ;;  %p299_p10 = scmp.lt.s32.totalorder %s2460_s9, 1  ;;  %v313_v4 = vld [vmem:[%s5369_s1 + $0x28] sm:$0xff]  ;;  %vm316_vm0 = vcmask 523264   ;;  %vm1805_vm1 = vcmask 130048  }
  0x14   : > { %v365_v1 = vld [vmem:[%s5370_s2 + $0x38] sm:$0xff]  ;;  %337 = vmatpush.msra.mxu0 %v315_v0  ;;  %v364_v3 = vld [vmem:[%s5370_s2 + $0x30] sm:$0xff]  ;;  %v363_v5 = vld [vmem:[%s5370_s2 + $0x28] sm:$0xff]  ;;  %s296_s17 = sand.u32 1, %s2381_s28   ;;  %s2279_s20 = sshll.u32 %s2460_s9, 5 }
  0x15   : > { %374 = vmatpush.msra.mxu1 %v365_v1  ;;  %s300_s13 = scalar_select %p299_p10, %s2460_s9, 1  ;;  %v312_v6 = vld [vmem:[%s5369_s1 + $0x20] sm:$0xff]  ;;  %v311_v8 = vld [vmem:[%s5369_s1 + $0x18] sm:$0xff]  ;;  %v310_v10 = vld [vmem:[%s5369_s1 + $0x10] sm:$0xff] }
  0x16   : > { %338 = vmatpush.msra.mxu0 %v314_v2  ;;  %v362_v7 = vld [vmem:[%s5370_s2 + $0x20] sm:$0xff]  ;;  %v361_v9 = vld [vmem:[%s5370_s2 + $0x18] sm:$0xff]  ;;  %v360_v11 = vld [vmem:[%s5370_s2 + $0x10] sm:$0xff]  ;;  %s2006_s18 = sshll.u32 %s296_s17, 5  ;;  %s1925_s26 = scalar_lea.sflag [#allocation3], %s296_s17 }
  0x17   : > { %375 = vmatpush.msra.mxu1 %v364_v3  ;;  %s2278_s25 = sshll.u32 %s300_s13, 5  ;;  %v309_v12 = vld [vmem:[%s5369_s1 + $0x8] sm:$0xff]  ;;  %v308_v14 = vld [vmem:[%s5369_s1] sm:$0xff]  ;;  %v2561_v23 = vld [vmem:[%s5371_s3 + $0x10] sm:$0xff]  ;;  %s298_s19 = scalar_lea.vmem [#allocation2], %s2006_s18 }
  0x18   : > { %339 = vmatpush.msra.mxu0 %v313_v4  ;;  %v359_v13 = vld [vmem:[%s5370_s2 + $0x8] sm:$0xff]  ;;  %s303_s23 = scalar_lea.vmem %s5368_s0, %s2278_s25  ;;  %v358_v15 = vld [vmem:[%s5370_s2] sm:$0xff]  ;;  %v2566_v24 = vld [vmem:[%s5371_s3 + $0x18] sm:$0xff]  ;;  %s1936_s13 = scalar_lea.hbm %s5376_s8, %s2279_s20 }
  0x19   : > { %376 = vmatpush.msra.mxu1 %v363_v5  ;;  %v304_v16 = vld [vmem:[%s303_s23] sm:$0xff]  ;;  %v305_v17 = vld [vmem:[%s303_s23 + $0x8] sm:$0xff]  ;;  %v306_v18 = vld [vmem:[%s303_s23 + $0x10] sm:$0xff]  ;;  %s1939_s24 = sshll.u32 %s1936_s13, 4  ;;  %s2347_s18 = scalar_lea.hbm %s5376_s8, 64  ;;  %s1940_s24 = int_to_ptr.hbm [resolvable:$true] %s1939_s24 }
  0x1a   : > { %340 = vmatpush.msra.mxu0 %v312_v6  ;;  %v307_v19 = vld [vmem:[%s303_s23 + $0x18] sm:$0xff]  ;;  %v2551_v21 = vld [vmem:[%s5371_s3] sm:$0xff]  ;;  %v2556_v22 = vld [vmem:[%s5371_s3 + $0x8] sm:$0xff]  ;;  %s1937_s23 = sshll.u32 %s298_s19, 4  ;;  %s2341_s9 = sshra.s32 %s1940_s24, 4  ;;  %s1938_s23 = int_to_ptr.vmem [resolvable:$true] %s1937_s23  ;;  %s2342_s9 = int_to_ptr.hbm [resolvable:$true] %s2341_s9 }
  0x1b   : > { %377 = vmatpush.msra.mxu1 %v362_v7  ;;  %v2571_v25 = vld [vmem:[%s5372_s4] sm:$0xff]  ;;  %v2576_v27 = vld [vmem:[%s5372_s4 + $0x8] sm:$0xff]  ;;  %v2581_v28 = vld [vmem:[%s5372_s4 + $0x10] sm:$0xff]  ;;  %s2343_s10 = scalar_lea.hbm %s2342_s9, 32  ;;  %p2348_p0 = scmp.lt.s32.totalorder %s2342_s9, %s5376_s8 }
  0x1c   : > { %341 = vmatpush.msra.mxu0 %v311_v8  ;;  %v2586_v29 = vld [vmem:[%s5372_s4 + $0x18] sm:$0xff]  ;;  %v2591_v30 = vld [vmem:[%s5371_s3 + $0x20] sm:$0xff]  ;;  %v2596_v31 = vld [vmem:[%s5371_s3 + $0x28] sm:$0xff]  ;;  %p2344_p11 = scmp.ne.s32.totalorder %s2342_s9, %s2343_s10  ;;  %p2349_p1 = scmp.lt.s32.totalorder %s2347_s18, %s2343_s10 }
  0x1d   : > { %378 = vmatpush.msra.mxu1 %v361_v9  ;;  %v2601_v32 = vld [vmem:[%s5371_s3 + $0x30] sm:$0xff]  ;;  %v2606_v33 = vld [vmem:[%s5371_s3 + $0x38] sm:$0xff]  ;;  %v2611_v34 = vld [vmem:[%s5372_s4 + $0x20] sm:$0xff] }
  0x1e   : > { %342 = vmatpush.msra.mxu0 %v310_v10  ;;  %v2616_v36 = vld [vmem:[%s5372_s4 + $0x28] sm:$0xff]  ;;  %v2621_v37 = vld [vmem:[%s5372_s4 + $0x30] sm:$0xff]  ;;  %v2626_v38 = vld [vmem:[%s5372_s4 + $0x38] sm:$0xff]  ;;  %p2345_p12 = pnand %p2344_p11, %p2477_p5  ;;  %p2350_p2 = por %p2349_p1, %p2348_p0 }
  0x1f   : > { %379 = vmatpush.msra.mxu1 %v360_v11  ;;  %v2636_v43 = vld [vmem:[%s5371_s3 + $0x40] sm:$0xff]  ;;  %v2641_v44 = vld [vmem:[%s5371_s3 + $0x48] sm:$0xff]  ;;  %v2646_v45 = vld [vmem:[%s5371_s3 + $0x50] sm:$0xff] }
  0x20   : > { %343 = vmatpush.msra.mxu0 %v309_v12  ;;  %5635 = vst [vmem:[#allocation6_spill] sm:$0xff] %v2636_v43  ;;  %v2669_v53 = vld [vmem:[%s5371_s3 + $0x58] sm:$0xff]  ;;  %v2674_v54 = vld [vmem:[%s5372_s4 + $0x40] sm:$0xff]  ;;  %v2679_v55 = vld [vmem:[%s5372_s4 + $0x48] sm:$0xff]  ;;  %p2346_p13 = pneg %p2345_p12 }
  0x21   : > { %380 = vmatpush.msra.mxu1 %v359_v13  ;;  %5636 = vst [vmem:[#allocation7_spill] sm:$0xff] %v2641_v44  ;;  %v2696_v60 = vld [vmem:[%s5372_s4 + $0x50] sm:$0xff]  ;;  %v2701_v61 = vld [vmem:[%s5372_s4 + $0x58] sm:$0xff]  ;;  %v2706_v62 = vld [vmem:[%s5371_s3 + $0x60] sm:$0xff] }
  0x22   : > { %344 = vmatpush.msra.mxu0 %v308_v14  ;;  %5639 = vst [vmem:[#allocation10_spill] sm:$0xff] %v2674_v54  ;;  %v2723_v3 = vld [vmem:[%s5371_s3 + $0x68] sm:$0xff]  ;;  %v2728_v4 = vld [vmem:[%s5371_s3 + $0x70] sm:$0xff]  ;;  %v2733_v5 = vld [vmem:[%s5371_s3 + $0x78] sm:$0xff]  ;;  %p2351_p3 = pnand %p2350_p2, %p2346_p13 }
  0x23   : > { %381 = vmatpush.msra.mxu1 %v358_v15  ;;  %2009 = vmatmul.msk.f32.vlgmr.msra.gmra.mxu0 %vm316_vm0, %v304_v16  ;;  %5642 = vst [vmem:[#allocation13_spill] sm:$0xff] %v2706_v62  ;;  %v2750_v10 = vld [vmem:[%s5372_s4 + $0x60] sm:$0xff]  ;;  %v2755_v11 = vld [vmem:[%s5372_s4 + $0x68] sm:$0xff]  ;;  %v2760_v12 = vld [vmem:[%s5372_s4 + $0x70] sm:$0xff] }
  0x24   : > { %2013 = vmatmul.msk.f32.vlgmr.msra.gmra.mxu1 %vm316_vm0, %v304_v16  ;;  %5644 = vst [vmem:[#allocation15_spill] sm:$0xff] %v2723_v3 }
  0x25   : > { %5647 = vst [vmem:[#allocation18_spill] sm:$0xff] %v2750_v10 }
  0x2b   : > { %2010 = vmatmul.msk.f32.gmra.mxu0 %vm316_vm0, %v305_v17 }
  0x2c   : > { %2014 = vmatmul.msk.f32.gmra.mxu1 %vm316_vm0, %v305_v17  ;;  %v2777_v17 = vld [vmem:[%s5372_s4 + $0x78] sm:$0xff] }
  0x33   : > { %2011 = vmatmul.msk.f32.gmra.mxu0 %vm316_vm0, %v306_v18 }
  0x34   : > { %2015 = vmatmul.msk.f32.gmra.mxu1 %vm316_vm0, %v306_v18  ;;  %v2782_v18 = vld [vmem:[%s5371_s3 + $0x80] sm:$0xff] }
  0x35   : > { %5649 = vst [vmem:[#allocation20_spill] sm:$0xff] %v2782_v18 }
  0x3b   : > { %2012 = vmatmul.msk.f32.gmra.mxu0 %vm316_vm0, %v307_v19 }
  0x3c   : > { %2016 = vmatmul.msk.f32.gmra.mxu1 %vm316_vm0, %v307_v19  ;;  %v2787_v19 = vld [vmem:[%s5371_s3 + $0x88] sm:$0xff] }
  0x3d   : > { %5650 = vst [vmem:[#allocation21_spill] sm:$0xff] %v2787_v19 }
  0xa0   : > { %v346_v20 = vpop.f32.mrf.mxu0 }
  0xa1   : > { %v403_v26 = vperm.slane %v346_v20, 0  ;;  %v447_v35 = vperm.slane %v346_v20, 1  ;;  %v491_v39 = vperm.slane %v346_v20, 2  ;;  %v535_v40 = vperm.slane %v346_v20, 3 }
  0xa2   : > { %v2628_v41 = vperm.slane %v346_v20, 4  ;;  %v2648_v46 = vperm.slane %v346_v20, 5  ;;  %v2650_v47 = vperm.slane %v346_v20, 6  ;;  %v2652_v48 = vperm.slane %v346_v20, 7 }
  0xa3   : > { %v2631_v42 = vmul.f32 %v403_v26, %v2551_v21  ;;  %v2655_v49 = vmul.f32 %v403_v26, %v2556_v22  ;;  %v2658_v50 = vmul.f32 %v403_v26, %v2561_v23  ;;  %v2661_v51 = vmul.f32 %v403_v26, %v2566_v24 }
  0xa4   : > { %5637 = vst [vmem:[#allocation8_spill] sm:$0xff] %v2650_v47  ;;  %v2664_v52 = vmul.f32 %v403_v26, %v2571_v25  ;;  %v2682_v56 = vmul.f32 %v403_v26, %v2576_v27  ;;  %v2685_v57 = vmul.f32 %v403_v26, %v2581_v28  ;;  %v2688_v58 = vmul.f32 %v403_v26, %v2586_v29 }
  0xa5   : > { %5634 = vst [vmem:[#allocation5_spill] sm:$0xff] %v2631_v42  ;;  %v2691_v59 = vmul.f32 %v2591_v30, %v447_v35  ;;  %v2709_v63 = vmul.f32 %v2596_v31, %v447_v35  ;;  %v2712_v0 = vmul.f32 %v2601_v32, %v447_v35  ;;  %v2715_v1 = vmul.f32 %v2606_v33, %v447_v35 }
  0xa6   : > { %5638 = vst [vmem:[#allocation9_spill] sm:$0xff] %v2664_v52  ;;  %v2718_v2 = vmul.f32 %v2611_v34, %v447_v35  ;;  %v2736_v6 = vmul.f32 %v2616_v36, %v447_v35  ;;  %v2739_v7 = vmul.f32 %v2621_v37, %v447_v35  ;;  %v2742_v8 = vmul.f32 %v2626_v38, %v447_v35 }
  0xa7   : > { %5640 = vst [vmem:[#allocation11_spill] sm:$0xff] %v2682_v56  ;;  %v2745_v9 = vmul.f32 %v2636_v43, %v491_v39  ;;  %v2763_v13 = vmul.f32 %v2641_v44, %v491_v39  ;;  %v2766_v14 = vmul.f32 %v2646_v45, %v491_v39  ;;  %v2769_v15 = vmul.f32 %v2669_v53, %v491_v39  ;;  %v2809_v44 = vld [vmem:[%s5371_s3 + $0x98] sm:$0xff] }
  0xa8   : > { %5641 = vst [vmem:[#allocation12_spill] sm:$0xff] %v2691_v59  ;;  %v2772_v16 = vmul.f32 %v2674_v54, %v491_v39  ;;  %v2790_v20 = vmul.f32 %v2679_v55, %v491_v39  ;;  %v2793_v26 = vmul.f32 %v2696_v60, %v491_v39  ;;  %v2796_v35 = vmul.f32 %v2701_v61, %v491_v39  ;;  %v2816_v39 = vpop.f32.mrf.mxu1 }
  0xa9   : > { %5643 = vst [vmem:[#allocation14_spill] sm:$0xff] %v2718_v2  ;;  %v2825_v43 = vmul.f32 %v2733_v5, %v535_v40  ;;  %v2828_v54 = vmul.f32 %v2750_v10, %v535_v40  ;;  %v2838_v2 = vld [vmem:[%s5372_s4 + $0x90] sm:$0xff]  ;;  %v2846_v59 = vmul.f32 %v2755_v11, %v535_v40  ;;  %v2852_v10 = vmul.f32 %v2777_v17, %v535_v40 }
  0xaa   : > { %5645 = vst [vmem:[#allocation16_spill] sm:$0xff] %v2736_v6  ;;  %v2833_v6 = vld [vmem:[%s5372_s4 + $0x88] sm:$0xff]  ;;  %v2856_v56 = vmul.f32 %v2782_v18, %v2628_v41  ;;  %v2860_v52 = vmul.f32 %v2787_v19, %v2628_v41  ;;  %v2881_v19 = vperm.slane %v2816_v39, 0 }
  0xab   : > { %5646 = vst [vmem:[#allocation17_spill] sm:$0xff] %v2745_v9  ;;  %v2804_v9 = vld [vmem:[%s5371_s3 + $0x90] sm:$0xff] }
  0xac   : > { %5648 = vst [vmem:[#allocation19_spill] sm:$0xff] %v2772_v16  ;;  %v2799_v16 = vmul.f32 %v2706_v62, %v535_v40  ;;  %v2819_v62 = vmul.f32 %v2723_v3, %v535_v40  ;;  %v2843_v3 = vld [vmem:[%s5372_s4 + $0x98] sm:$0xff]  ;;  %v2864_v42 = vmul.f32 %v2804_v9, %v2628_v41 }
  0xad   : > { %5651 = vst [vmem:[#allocation22_spill] sm:$0xff] %v2790_v20  ;;  %v2814_v20 = vld [vmem:[%s5372_s4 + $0x80] sm:$0xff] }
  0xae   : > { %5652 = vst [vmem:[#allocation23_spill] sm:$0xff] %v2799_v16  ;;  %v2822_v16 = vmul.f32 %v2728_v4, %v535_v40  ;;  %v2885_v18 = vmul.f32 %v2814_v20, %v2628_v41 }
  0xaf   : > { %5653 = vst [vmem:[#allocation24_spill] sm:$0xff] %v2804_v9  ;;  %v2926_v9 = vld [vmem:[%s5372_s4 + $0xa8] sm:$0xff] }
  0xb0   : > { %5654 = vst [vmem:[#allocation25_spill] sm:$0xff] %v2809_v44 }
  0xb1   : > { %5655 = vst [vmem:[#allocation26_spill] sm:$0xff] %v2814_v20  ;;  %v410_v20 = vmul.f32 %v2881_v19, %v2576_v27 }
  0xb2   : > { %5656 = vst [vmem:[#allocation27_spill] sm:$0xff] %v2828_v54  ;;  %v2849_v54 = vmul.f32 %v2760_v12, %v535_v40  ;;  %v2873_v40 = vld [vmem:[%s5371_s3 + $0xa0] sm:$0xff] }
  0xb3   : > { %5657 = vst [vmem:[#allocation28_spill] sm:$0xff] %v2833_v6 }
  0xb4   : > { %5658 = vst [vmem:[#allocation29_spill] sm:$0xff] %v2838_v2 }
  0xb5   : > { %5659 = vst [vmem:[#allocation30_spill] sm:$0xff] %v2843_v3 }
  0xb6   : > { %5660 = vst [vmem:[#allocation31_spill] sm:$0xff] %v2846_v59  ;;  %v2868_v59 = vmul.f32 %v2809_v44, %v2628_v41  ;;  %v2902_v44 = vld [vmem:[%s5371_s3 + $0xb0] sm:$0xff] }
  0xb7   : > { %5661 = vst [vmem:[#allocation32_spill] sm:$0xff] %v2849_v54 }
  0xb8   : > { %5662 = vst [vmem:[#allocation33_spill] sm:$0xff] %v2852_v10 }
  0xb9   : > { %5663 = vst [vmem:[#allocation34_spill] sm:$0xff] %v2856_v56  ;;  %v2878_v56 = vld [vmem:[%s5371_s3 + $0xa8] sm:$0xff] }
  0xba   : > { %5664 = vst [vmem:[#allocation35_spill] sm:$0xff] %v2860_v52  ;;  %v2897_v52 = vmul.f32 %v2843_v3, %v2628_v41  ;;  %v2930_v3 = vmul.f32 %v2873_v40, %v2648_v46  ;;  %v2934_v27 = vmul.f32 %v2878_v56, %v2648_v46 }
  0xbb   : > { %5665 = vst [vmem:[#allocation36_spill] sm:$0xff] %v2864_v42  ;;  %v2893_v42 = vmul.f32 %v2838_v2, %v2628_v41  ;;  %v2943_v2 = vld [vmem:[%s5372_s4 + $0xb0] sm:$0xff] }
  0xbc   : > { %5666 = vst [vmem:[#allocation37_spill] sm:$0xff] %v2868_v59  ;;  %v2889_v59 = vmul.f32 %v2833_v6, %v2628_v41  ;;  %v411_v41 = vmul.f32 %v2881_v19, %v2581_v28  ;;  %v427_v28 = vmul.f32 %v2881_v19, %v2561_v23 }
  0xbd   : > { %5667 = vst [vmem:[#allocation38_spill] sm:$0xff] %v2873_v40  ;;  %v2948_v40 = vld [vmem:[%s5372_s4 + $0xb8] sm:$0xff] }
  0xbe   : > { %5668 = vst [vmem:[#allocation39_spill] sm:$0xff] %v2878_v56  ;;  %v414_v56 = vsub.f32 %v2655_v49, %v410_v20  ;;  %v415_v23 = vsub.f32 %v2658_v50, %v411_v41  ;;  %v431_v10 = vadd.f32 %v427_v28, %v2685_v57  ;;  %v2974_v49 = vld [vmem:[%s5371_s3 + $0xc0] sm:$0xff]  ;;  %v2979_v50 = vld [vmem:[%s5371_s3 + $0xc8] sm:$0xff]  ;;  %v2993_v20 = vmul.f32 %v2948_v40, %v2648_v46  ;;  %v2998_v41 = vld [vmem:[%s5371_s3 + $0xd0] sm:$0xff] }
  0xbf   : > { %5669 = vst [vmem:[#allocation40_spill] sm:$0xff] %v2885_v18  ;;  %v2907_v18 = vld [vmem:[%s5371_s3 + $0xb8] sm:$0xff] }
  0xc0   : > { %5670 = vst [vmem:[#allocation41_spill] sm:$0xff] %v2889_v59  ;;  %v2912_v59 = vld [vmem:[%s5372_s4 + $0xa0] sm:$0xff] }
  0xc1   : > { %5671 = vst [vmem:[#allocation42_spill] sm:$0xff] %v2893_v42  ;;  %v2921_v42 = vperm.slane %v2816_v39, 1  ;;  %v2963_v6 = vmul.f32 %v2912_v59, %v2648_v46 }
  0xc2   : > { %5672 = vst [vmem:[#allocation43_spill] sm:$0xff] %v2897_v52  ;;  %v412_v52 = vmul.f32 %v2881_v19, %v2586_v29  ;;  %v428_v29 = vmul.f32 %v2881_v19, %v2566_v24 }
  0xc3   : > { %5673 = vst [vmem:[#allocation44_spill] sm:$0xff] %v2912_v59  ;;  %v456_v57 = vmul.f32 %v2626_v38, %v2921_v42  ;;  %v3007_v38 = vld [vmem:[%s5371_s3 + $0xd8] sm:$0xff]  ;;  %v3031_v59 = vmul.f32 %v2979_v50, %v2650_v47 }
  0xc4   : > { %5674 = vst [vmem:[#allocation45_spill] sm:$0xff] %v2930_v3  ;;  %v2952_v3 = vmul.f32 %v2902_v44, %v2648_v46  ;;  %v416_v24 = vsub.f32 %v2661_v51, %v412_v52  ;;  %v432_v54 = vadd.f32 %v428_v29, %v2688_v58  ;;  %v454_v51 = vmul.f32 %v2616_v36, %v2921_v42 }
  0xc5   : > { %5675 = vst [vmem:[#allocation46_spill] sm:$0xff] %v2934_v27  ;;  %v2959_v27 = vmul.f32 %v2907_v18, %v2648_v46  ;;  %v455_v52 = vmul.f32 %v2621_v37, %v2921_v42  ;;  %v2989_v58 = vmul.f32 %v2943_v2, %v2648_v46  ;;  %v471_v36 = vmul.f32 %v2601_v32, %v2921_v42 }
  0xc6   : > { %5676 = vst [vmem:[#allocation47_spill] sm:$0xff] %v2952_v3  ;;  %v2969_v3 = vmul.f32 %v2926_v9, %v2648_v46  ;;  %v472_v37 = vmul.f32 %v2606_v33, %v2921_v42  ;;  %v3012_v46 = vld [vmem:[%s5372_s4 + $0xc0] sm:$0xff]  ;;  %v458_v28 = vsub.f32 %v2709_v63, %v454_v51  ;;  %v3018_v32 = vperm.slane %v2816_v39, 2  ;;  %v3023_v33 = vld [vmem:[%s5372_s4 + $0xd0] sm:$0xff] }
  0xc7   : > { %5677 = vst [vmem:[#allocation48_spill] sm:$0xff] %v2963_v6  ;;  %v459_v29 = vsub.f32 %v2712_v0, %v455_v52  ;;  %v3027_v6 = vmul.f32 %v2974_v49, %v2650_v47  ;;  %v475_v63 = vadd.f32 %v471_v36, %v2739_v7  ;;  %v3042_v51 = vmul.f32 %v2998_v41, %v2650_v47  ;;  %v3047_v52 = vld [vmem:[%s5371_s3 + $0xe8] sm:$0xff] }
  0xc8   : > { %5678 = vst [vmem:[#allocation49_spill] sm:$0xff] %v2969_v3  ;;  %v460_v3 = vsub.f32 %v2715_v1, %v456_v57  ;;  %v476_v0 = vadd.f32 %v472_v37, %v2742_v8  ;;  %v3038_v1 = vld [vmem:[%s5372_s4 + $0xd8] sm:$0xff]  ;;  %v462_v57 = vadd.f32 %v458_v28, %v414_v56  ;;  %v3051_v7 = vmul.f32 %v3007_v38, %v2650_v47  ;;  %v3064_v56 = vld [vmem:[%s5371_s3 + $0xf0] sm:$0xff] }
  0xc9   : > { %5679 = vst [vmem:[#allocation50_spill] sm:$0xff] %v2974_v49  ;;  %v3055_v8 = vmul.f32 %v3012_v46, %v2650_v47  ;;  %v479_v36 = vadd.f32 %v475_v63, %v431_v10  ;;  %v3059_v49 = vmul.f32 %v3023_v33, %v2650_v47  ;;  %v500_v10 = vmul.f32 %v2701_v61, %v3018_v32 }
  0xca   : > { %5680 = vst [vmem:[#allocation51_spill] sm:$0xff] %v2979_v50  ;;  %v464_v50 = vadd.f32 %v460_v3, %v416_v24  ;;  %v480_v37 = vadd.f32 %v476_v0, %v432_v54  ;;  %v3069_v3 = vld [vmem:[%s5371_s3 + $0xf8] sm:$0xff]  ;;  %v499_v54 = vmul.f32 %v2696_v60, %v3018_v32  ;;  %v3079_v24 = vmul.f32 %v3038_v1, %v2650_v47 }
  0xcb   : > { %5681 = vst [vmem:[#allocation52_spill] sm:$0xff] %v3012_v46  ;;  %v3083_v28 = vmul.f32 %v3047_v52, %v2652_v48  ;;  %v504_v61 = vsub.f32 %v2769_v15, %v500_v10  ;;  %v3093_v0 = vperm.slane %v2816_v39, 3  ;;  %v3106_v15 = vperm.slane %v2816_v39, 4 }
  0xcc   : > { %5682 = vst [vmem:[#allocation53_spill] sm:$0xff] %v3027_v6  ;;  %v463_v6 = vadd.f32 %v459_v29, %v415_v23  ;;  %v498_v23 = vmul.f32 %v2679_v55, %v3018_v32  ;;  %v515_v29 = vmul.f32 %v2646_v45, %v3018_v32  ;;  %v516_v55 = vmul.f32 %v2669_v53, %v3018_v32 }
  0xcd   : > { %5683 = vst [vmem:[#allocation54_spill] sm:$0xff] %v3031_v59  ;;  %v503_v60 = vsub.f32 %v2766_v14, %v499_v54  ;;  %v508_v14 = vadd.f32 %v504_v61, %v464_v50  ;;  %v3109_v46 = vperm.slane %v2816_v39, 5  ;;  %v3112_v47 = vperm.slane %v2816_v39, 6  ;;  %v3561_v59 = vld [vmem:[%s5372_s4 + $0x1a0] sm:$0xff] }
  0xce   : > { %5684 = vst [vmem:[#allocation55_spill] sm:$0xff] %v3042_v51  ;;  %v502_v63 = vsub.f32 %v2763_v13, %v498_v23  ;;  %v519_v45 = vadd.f32 %v515_v29, %v2793_v26  ;;  %v520_v53 = vadd.f32 %v516_v55, %v2796_v35  ;;  %v542_v26 = vmul.f32 %v2755_v11, %v3093_v0  ;;  %v5692_v29 = vld [vmem:[#allocation33_spill] sm:$0xff] }
  0xcf   : > { %5685 = vst [vmem:[#allocation56_spill] sm:$0xff] %v3047_v52  ;;  %v3101_v52 = vmul.f32 %v3069_v3, %v2652_v48  ;;  %v507_v23 = vadd.f32 %v503_v60, %v463_v6  ;;  %v543_v6 = vmul.f32 %v2760_v12, %v3093_v0  ;;  %v544_v35 = vmul.f32 %v2777_v17, %v3093_v0 }
  0xd0   : > { %5686 = vst [vmem:[#allocation57_spill] sm:$0xff] %v3051_v7  ;;  %v506_v13 = vadd.f32 %v502_v63, %v462_v57  ;;  %v523_v54 = vadd.f32 %v519_v45, %v479_v36  ;;  %v524_v10 = vadd.f32 %v520_v53, %v480_v37  ;;  %v425_v50 = vmul.f32 %v2881_v19, %v2551_v21 }
  0xd1   : > { %5687 = vst [vmem:[#allocation58_spill] sm:$0xff] %v3055_v8  ;;  %v3097_v8 = vmul.f32 %v3064_v56, %v2652_v48  ;;  %v426_v57 = vmul.f32 %v2881_v19, %v2556_v22  ;;  %v559_v36 = vmul.f32 %v2728_v4, %v3093_v0  ;;  %v453_v11 = vmul.f32 %v2611_v34, %v2921_v42 }
  0xd2   : > { %5688 = vst [vmem:[#allocation59_spill] sm:$0xff] %v3083_v28  ;;  %v546_v12 = vsub.f32 %v2819_v62, %v542_v26  ;;  %v547_v37 = vsub.f32 %v2822_v16, %v543_v6  ;;  %v548_v17 = vsub.f32 %v2825_v43, %v544_v35  ;;  %v469_v21 = vmul.f32 %v2591_v30, %v2921_v42  ;;  %v5694_v62 = vld [vmem:[#allocation9_spill] sm:$0xff]  ;;  %v5695_v16 = vld [vmem:[#allocation11_spill] sm:$0xff]  ;;  %v5696_v6 = vld [vmem:[#allocation12_spill] sm:$0xff] }
  0xd3   : > { %5689 = vst [vmem:[#allocation60_spill] sm:$0xff] %v3097_v8  ;;  %v470_v22 = vmul.f32 %v2596_v31, %v2921_v42  ;;  %v429_v45 = vadd.f32 %v425_v50, %v5694_v62  ;;  %v430_v53 = vadd.f32 %v426_v57, %v5695_v16  ;;  %v457_v30 = vsub.f32 %v5696_v6, %v453_v11  ;;  %v5697_v35 = vld [vmem:[#allocation28_spill] sm:$0xff]  ;;  %v5698_v42 = vld [vmem:[#allocation29_spill] sm:$0xff]  ;;  %v5704_v11 = vld [vmem:[#allocation10_spill] sm:$0xff] }
  0xd4   : > { %5690 = vst [vmem:[#allocation61_spill] sm:$0xff] %v3101_v52  ;;  %v409_v52 = vmul.f32 %v2881_v19, %v2571_v25  ;;  %v560_v25 = vmul.f32 %v2733_v5, %v3093_v0  ;;  %v5691_v19 = vld [vmem:[#allocation32_spill] sm:$0xff]  ;;  %v5693_v5 = vld [vmem:[#allocation5_spill] sm:$0xff]  ;;  %v550_v60 = vadd.f32 %v546_v12, %v506_v13  ;;  %v551_v34 = vadd.f32 %v547_v37, %v507_v23  ;;  %v5700_v13 = vld [vmem:[#allocation14_spill] sm:$0xff] }
  0xd5   : > { %v563_v4 = vadd.f32 %v559_v36, %v5691_v19  ;;  %v552_v61 = vadd.f32 %v548_v17, %v508_v14  ;;  %v586_v31 = vmul.f32 %v5697_v35, %v3106_v15  ;;  %v587_v36 = vmul.f32 %v5698_v42, %v3106_v15  ;;  %v5701_v14 = vld [vmem:[#allocation16_spill] sm:$0xff]  ;;  %v5705_v17 = vld [vmem:[#allocation35_spill] sm:$0xff]  ;;  %v5708_v62 = vld [vmem:[#allocation6_spill] sm:$0xff]  ;;  %5816 = vst [vmem:[#allocation84_spill] sm:$0xff] %v3561_v59 }
  0xd6   : > { %v564_v55 = vadd.f32 %v560_v25, %v5692_v29  ;;  %v413_v63 = vsub.f32 %v5693_v5, %v409_v52  ;;  %v5699_v25 = vld [vmem:[#allocation30_spill] sm:$0xff]  ;;  %v473_v23 = vadd.f32 %v469_v21, %v5700_v13  ;;  %v474_v12 = vadd.f32 %v470_v22, %v5701_v14  ;;  %v5702_v50 = vld [vmem:[#allocation24_spill] sm:$0xff]  ;;  %v5709_v22 = vld [vmem:[#allocation7_spill] sm:$0xff] }
  0xd7   : > { %v567_v43 = vadd.f32 %v563_v4, %v523_v54  ;;  %v588_v52 = vmul.f32 %v5699_v25, %v3106_v15  ;;  %v603_v57 = vmul.f32 %v5702_v50, %v3106_v15  ;;  %v5703_v54 = vld [vmem:[#allocation25_spill] sm:$0xff]  ;;  %v497_v37 = vmul.f32 %v5704_v11, %v3018_v32  ;;  %v5706_v4 = vld [vmem:[#allocation36_spill] sm:$0xff]  ;;  %v5710_v6 = vld [vmem:[#allocation42_spill] sm:$0xff] }
  0xd8   : > { %v568_v26 = vadd.f32 %v564_v55, %v524_v10  ;;  %v604_v10 = vmul.f32 %v5703_v54, %v3106_v15  ;;  %v590_v19 = vsub.f32 %v5705_v17, %v586_v31  ;;  %v591_v29 = vsub.f32 %v5706_v4, %v587_v36  ;;  %v5707_v55 = vld [vmem:[#allocation37_spill] sm:$0xff]  ;;  %v5711_v42 = vld [vmem:[#allocation43_spill] sm:$0xff] }
  0xd9   : > { %v592_v5 = vsub.f32 %v5707_v55, %v588_v52  ;;  %v513_v21 = vmul.f32 %v5708_v62, %v3018_v32  ;;  %v514_v16 = vmul.f32 %v5709_v22, %v3018_v32  ;;  %v607_v35 = vadd.f32 %v603_v57, %v5710_v6  ;;  %v5712_v4 = vld [vmem:[#allocation17_spill] sm:$0xff] }
  0xda   : > { %v608_v25 = vadd.f32 %v604_v10, %v5711_v42  ;;  %v461_v13 = vadd.f32 %v457_v30, %v413_v63  ;;  %v594_v14 = vadd.f32 %v590_v19, %v550_v60  ;;  %v595_v50 = vadd.f32 %v591_v29, %v551_v34  ;;  %v5713_v10 = vld [vmem:[#allocation19_spill] sm:$0xff]  ;;  %v5714_v60 = vld [vmem:[#allocation22_spill] sm:$0xff]  ;;  %v5721_v6 = vld [vmem:[#allocation13_spill] sm:$0xff] }
  0xdb   : > { %v596_v54 = vadd.f32 %v592_v5, %v552_v61  ;;  %v477_v11 = vadd.f32 %v473_v23, %v429_v45  ;;  %v478_v31 = vadd.f32 %v474_v12, %v430_v53  ;;  %v611_v17 = vadd.f32 %v607_v35, %v567_v43  ;;  %v5715_v53 = vld [vmem:[#allocation18_spill] sm:$0xff]  ;;  %v5717_v30 = vld [vmem:[#allocation47_spill] sm:$0xff]  ;;  %v1801_v5 = vld [vmem:[%s5373_s5] sm:$0xff] }
  0xdc   : > { %v612_v36 = vadd.f32 %v608_v25, %v568_v26  ;;  %v501_v52 = vsub.f32 %v5712_v4, %v497_v37  ;;  %v630_v55 = vmul.f32 %v2926_v9, %v3109_v46  ;;  %v631_v32 = vmul.f32 %v2943_v2, %v3109_v46  ;;  %v5716_v9 = vld [vmem:[#allocation46_spill] sm:$0xff]  ;;  %v5730_v4 = vld [vmem:[#allocation20_spill] sm:$0xff]  ;;  %v3526_v28 = vld [vmem:[%s5372_s4 + $0x160] sm:$0xff] }
  0xdd   : > { %v632_v57 = vmul.f32 %v2948_v40, %v3109_v46  ;;  %v517_v63 = vadd.f32 %v513_v21, %v5713_v10  ;;  %v518_v34 = vadd.f32 %v514_v16, %v5714_v60  ;;  %v647_v61 = vmul.f32 %v2902_v44, %v3109_v46  ;;  %v1804_v40 = vld [vmem:[%s5374_s6 + $0x8] sm:$0xff]  ;;  %v2087_v10 = vld [vmem:[%s5372_s4 + $0x130] sm:$0xff]  ;;  %5807 = vst [vmem:[#allocation75_spill] sm:$0xff] %v3526_v28 }
  0xde   : > { %v648_v45 = vmul.f32 %v2907_v18, %v3109_v46  ;;  %v541_v43 = vmul.f32 %v5715_v53, %v3093_v0  ;;  %v634_v26 = vsub.f32 %v5716_v9, %v630_v55  ;;  %v635_v2 = vsub.f32 %v5717_v30, %v631_v32  ;;  %v1802_v44 = vld [vmem:[%s5373_s5 + $0x8] sm:$0xff]  ;;  %v1803_v18 = vld [vmem:[%s5374_s6] sm:$0xff]  ;;  %1832 = vmatpush.msra.mxu2 %v1804_v40 }
  0xdf   : > { %v636_v23 = vsub.f32 %v2959_v27, %v632_v57  ;;  %v2062_v12 = vld [vmem:[%s5372_s4 + $0xc8] sm:$0xff]  ;;  %v505_v37 = vadd.f32 %v501_v52, %v461_v13  ;;  %v521_v19 = vadd.f32 %v517_v63, %v477_v11  ;;  %v651_v27 = vadd.f32 %v647_v61, %v2989_v58  ;;  %1873 = vmatpush.msra.mxu3 %v1802_v44  ;;  %v5722_v58 = vld [vmem:[#allocation15_spill] sm:$0xff]  ;;  %v5731_v55 = vld [vmem:[#allocation21_spill] sm:$0xff] }
  0xe0   : > { %v652_v29 = vadd.f32 %v648_v45, %v2993_v20  ;;  %v522_v62 = vadd.f32 %v518_v34, %v478_v31  ;;  %v3203_v21 = vadd.f32 %v634_v26, %v594_v14  ;;  %v3205_v22 = vadd.f32 %v635_v2, %v595_v50  ;;  %1833 = vmatpush.msra.mxu2 %v1803_v18  ;;  %v5725_v13 = vld [vmem:[#allocation23_spill] sm:$0xff]  ;;  %v2072_v31 = vld [vmem:[%s5372_s4 + $0xf8] sm:$0xff]  ;;  %v2070_v60 = vld [vmem:[%s5372_s4 + $0xe8] sm:$0xff] }
  0xe1   : > { %v3207_v16 = vadd.f32 %v636_v23, %v596_v54  ;;  %v557_v35 = vmul.f32 %v5721_v6, %v3093_v0  ;;  %v558_v42 = vmul.f32 %v5722_v58, %v3093_v0  ;;  %v3213_v20 = vadd.f32 %v651_v27, %v611_v17  ;;  %1874 = vmatpush.msra.mxu3 %v1801_v5  ;;  %v2071_v0 = vld [vmem:[%s5372_s4 + $0xf0] sm:$0xff]  ;;  %v5729_v17 = vld [vmem:[#allocation26_spill] sm:$0xff]  ;;  %v5737_v44 = vld [vmem:[#allocation40_spill] sm:$0xff] }
  0xe2   : > { %5718 = vst [vmem:[#allocation32_spill] sm:$0xff] %v3203_v21  ;;  %v3215_v25 = vadd.f32 %v652_v29, %v612_v36  ;;  %v545_v11 = vsub.f32 %v5725_v13, %v541_v43  ;;  %v3219_v14 = vmul.f32 %v2062_v12, %v3112_v47  ;;  %v3223_v50 = vmul.f32 %v3023_v33, %v3112_v47  ;;  %v5733_v61 = vld [vmem:[#allocation31_spill] sm:$0xff]  ;;  %v5736_v23 = vld [vmem:[#allocation34_spill] sm:$0xff]  ;;  %v5738_v27 = vld [vmem:[#allocation41_spill] sm:$0xff] }
  0xe3   : > { %5719 = vst [vmem:[#allocation33_spill] sm:$0xff] %v3205_v22  ;;  %v3227_v54 = vmul.f32 %v3038_v1, %v3112_v47  ;;  %v585_v36 = vmul.f32 %v5729_v17, %v3106_v15  ;;  %v601_v33 = vmul.f32 %v5730_v4, %v3106_v15  ;;  %v691_v52 = vmul.f32 %v2998_v41, %v3112_v47  ;;  %v5732_v41 = vld [vmem:[#allocation27_spill] sm:$0xff]  ;;  %v5742_v6 = vld [vmem:[#allocation44_spill] sm:$0xff]  ;;  %v2065_v58 = vld [vmem:[%s5371_s3 + $0xe0] sm:$0xff] }
  0xe4   : > { %5720 = vst [vmem:[#allocation5_spill] sm:$0xff] %v3207_v16  ;;  %v692_v1 = vmul.f32 %v3007_v38, %v3112_v47  ;;  %v602_v32 = vmul.f32 %v5731_v55, %v3106_v15  ;;  %v561_v34 = vadd.f32 %v557_v35, %v5732_v41  ;;  %v562_v38 = vadd.f32 %v558_v42, %v5733_v61  ;;  %v2069_v42 = vld [vmem:[%s5372_s4 + $0xe0] sm:$0xff]  ;;  %v5744_v13 = vld [vmem:[#allocation39_spill] sm:$0xff]  ;;  %v5746_v17 = vld [vmem:[#allocation8_spill] sm:$0xff]  ;;  %v349_v61 = vpop.f32.mrf.mxu0 }
  0xe5   : > { %5723 = vst [vmem:[#allocation9_spill] sm:$0xff] %v3213_v20  ;;  %v3257_v45 = vadd.f32 %v691_v52, %v3059_v49  ;;  %v731_v53 = vmul.f32 %v2071_v0, %v2652_v48  ;;  %v732_v43 = vmul.f32 %v2072_v31, %v2652_v48  ;;  %v549_v9 = vadd.f32 %v545_v11, %v505_v37  ;;  %v5743_v37 = vld [vmem:[#allocation38_spill] sm:$0xff]  ;;  %v2085_v63 = vld [vmem:[%s5372_s4 + $0x120] sm:$0xff] }
  0xe6   : > { %5724 = vst [vmem:[#allocation11_spill] sm:$0xff] %v3215_v25  ;;  %v3260_v15 = vadd.f32 %v692_v1, %v3079_v24  ;;  %v716_v26 = vperm.slane %v2816_v39, 7  ;;  %v565_v30 = vadd.f32 %v561_v34, %v521_v19  ;;  %v566_v2 = vadd.f32 %v562_v38, %v522_v62  ;;  %v5750_v41 = vld [vmem:[#allocation50_spill] sm:$0xff] }
  0xe7   : > { %5726 = vst [vmem:[#allocation12_spill] sm:$0xff] %v3219_v14  ;;  %v589_v40 = vsub.f32 %v5736_v23, %v585_v36  ;;  %v605_v18 = vadd.f32 %v601_v33, %v5737_v44  ;;  %v606_v29 = vadd.f32 %v602_v32, %v5738_v27  ;;  %v629_v35 = vmul.f32 %v5742_v6, %v3109_v46  ;;  %v5754_v44 = vld [vmem:[#allocation49_spill] sm:$0xff] }
  0xe8   : > { %5727 = vst [vmem:[#allocation28_spill] sm:$0xff] %v3223_v50  ;;  %v3268_v49 = vmul.f32 %v2070_v60, %v716_v26  ;;  %v3270_v5 = vmul.f32 %v2071_v0, %v716_v26  ;;  %v3272_v24 = vmul.f32 %v2072_v31, %v716_v26  ;;  %v645_v39 = vmul.f32 %v5743_v37, %v3109_v46  ;;  %v5755_v37 = vld [vmem:[#allocation56_spill] sm:$0xff]  ;;  %v3556_v14 = vld [vmem:[%s5371_s3 + $0x1a0] sm:$0xff] }
  0xe9   : > { %5728 = vst [vmem:[#allocation29_spill] sm:$0xff] %v3227_v54  ;;  %v735_v19 = vmul.f32 %v3064_v56, %v716_v26  ;;  %v736_v62 = vmul.f32 %v3069_v3, %v716_v26  ;;  %v646_v11 = vmul.f32 %v5744_v13, %v3109_v46  ;;  %v686_v36 = vmul.f32 %v2062_v12, %v5746_v17  ;;  %v5749_v46 = vld [vmem:[#allocation52_spill] sm:$0xff]  ;;  %v2077_v17 = vld [vmem:[%s5372_s4 + $0x100] sm:$0xff]  ;;  %v2083_v3 = vld [vmem:[%s5371_s3 + $0x130] sm:$0xff] }
  0xea   : > { %5734 = vst [vmem:[#allocation30_spill] sm:$0xff] %v3257_v45  ;;  %v593_v4 = vadd.f32 %v589_v40, %v549_v9  ;;  %v609_v1 = vadd.f32 %v605_v18, %v565_v30  ;;  %v610_v55 = vadd.f32 %v606_v29, %v566_v2  ;;  %v3301_v32 = vmul.f32 %v5749_v46, %v3112_v47  ;;  %v5751_v9 = vld [vmem:[#allocation45_spill] sm:$0xff]  ;;  %v5753_v2 = vld [vmem:[#allocation48_spill] sm:$0xff] }
  0xeb   : > { %5735 = vst [vmem:[#allocation14_spill] sm:$0xff] %v3260_v15  ;;  %v3295_v33 = vadd.f32 %v735_v19, %v731_v53  ;;  %v3297_v52 = vadd.f32 %v736_v62, %v732_v43  ;;  %v689_v34 = vmul.f32 %v5750_v41, %v3112_v47  ;;  %v3306_v38 = vmul.f32 %v2065_v58, %v2652_v48  ;;  %v5752_v43 = vld [vmem:[#allocation51_spill] sm:$0xff]  ;;  %v2088_v0 = vld [vmem:[%s5372_s4 + $0x138] sm:$0xff] }
  0xec   : > { %5739 = vst [vmem:[#allocation16_spill] sm:$0xff] %v3268_v49  ;;  %v729_v12 = vmul.f32 %v2069_v42, %v2652_v48  ;;  %v633_v53 = vsub.f32 %v5751_v9, %v629_v35  ;;  %v690_v23 = vmul.f32 %v5752_v43, %v3112_v47  ;;  %v730_v30 = vmul.f32 %v2070_v60, %v2652_v48  ;;  %v5758_v47 = vld [vmem:[#allocation53_spill] sm:$0xff]  ;;  %v5759_v60 = vld [vmem:[#allocation58_spill] sm:$0xff] }
  0xed   : > { %5740 = vst [vmem:[#allocation24_spill] sm:$0xff] %v3270_v5  ;;  %v649_v40 = vadd.f32 %v645_v39, %v5753_v2  ;;  %v650_v18 = vadd.f32 %v646_v11, %v5754_v44  ;;  %v3315_v27 = vmul.f32 %v2069_v42, %v716_v26  ;;  %v733_v6 = vmul.f32 %v2065_v58, %v716_v26  ;;  %v2073_v42 = vld [vmem:[%s5371_s3 + $0x100] sm:$0xff]  ;;  %v2075_v58 = vld [vmem:[%s5371_s3 + $0x110] sm:$0xff] }
  0xee   : > { %5741 = vst [vmem:[#allocation25_spill] sm:$0xff] %v3272_v24  ;;  %v3317_v29 = vadd.f32 %v633_v53, %v593_v4  ;;  %v734_v19 = vmul.f32 %v5755_v37, %v716_v26  ;;  %v3320_v62 = vperm.slane %v349_v61, 0  ;;  %v3329_v39 = vadd.f32 %v689_v34, %v5759_v60  ;;  %v2074_v26 = vld [vmem:[%s5371_s3 + $0x108] sm:$0xff]  ;;  %v2080_v34 = vld [vmem:[%s5372_s4 + $0x118] sm:$0xff]  ;;  %v2081_v9 = vld [vmem:[%s5371_s3 + $0x120] sm:$0xff] }
  0xef   : > { %5747 = vst [vmem:[#allocation10_spill] sm:$0xff] %v3295_v33  ;;  %v3322_v13 = vadd.f32 %v649_v40, %v609_v1  ;;  %v3324_v35 = vadd.f32 %v650_v18, %v610_v55  ;;  %v3340_v11 = vadd.f32 %v690_v23, %v686_v36  ;;  %v2078_v4 = vld [vmem:[%s5372_s4 + $0x108] sm:$0xff]  ;;  %v2079_v1 = vld [vmem:[%s5372_s4 + $0x110] sm:$0xff]  ;;  %v3351_v55 = vperm.slane %v349_v61, 1  ;;  %v386_v40 = vpop.f32.mrf.mxu1  ;;  %v3521_v49 = vld [vmem:[%s5371_s3 + $0x160] sm:$0xff] }
  0xf0   : > { %5748 = vst [vmem:[#allocation35_spill] sm:$0xff] %v3297_v52  ;;  %v3353_v46 = vperm.slane %v349_v61, 2  ;;  %v3355_v41 = vperm.slane %v349_v61, 3  ;;  %v2082_v53 = vld [vmem:[%s5371_s3 + $0x128] sm:$0xff]  ;;  %v3368_v43 = vperm.slane %v349_v61, 4  ;;  %v3370_v23 = vperm.slane %v349_v61, 5 }
  0xf1   : > { %5756 = vst [vmem:[#allocation36_spill] sm:$0xff] %v3320_v62  ;;  %v3372_v2 = vperm.slane %v349_v61, 6  ;;  %v3374_v44 = vadd.f32 %v733_v6, %v729_v12  ;;  %v3376_v18 = vadd.f32 %v734_v19, %v730_v30  ;;  %v3379_v37 = vmul.f32 %v2073_v42, %v3320_v62  ;;  %v2086_v12 = vld [vmem:[%s5372_s4 + $0x128] sm:$0xff] }
  0xf2   : > { %5757 = vst [vmem:[#allocation37_spill] sm:$0xff] %v3324_v35  ;;  %v3382_v60 = vmul.f32 %v2074_v26, %v3320_v62  ;;  %v3394_v30 = vmul.f32 %v2075_v58, %v3320_v62  ;;  %v773_v6 = vmul.f32 %v2077_v17, %v3320_v62  ;;  %v3398_v19 = vmul.f32 %v2078_v4, %v3320_v62 }
  0xf3   : > { %5760 = vst [vmem:[#allocation6_spill] sm:$0xff] %v3340_v11  ;;  %v3401_v31 = vmul.f32 %v2079_v1, %v3320_v62  ;;  %v3410_v57 = vmul.f32 %v2080_v34, %v3320_v62  ;;  %v3413_v36 = vmul.f32 %v2081_v9, %v3351_v55  ;;  %v3416_v48 = vmul.f32 %v2082_v53, %v3351_v55  ;;  %v352_v34 = vpop.f32.mrf.mxu0 }
  0xf4   : > { %5761 = vst [vmem:[#allocation7_spill] sm:$0xff] %v3351_v55  ;;  %v3418_v24 = vperm.slane %v386_v40, 0  ;;  %v3421_v56 = vmul.f32 %v2083_v3, %v3351_v55  ;;  %v817_v54 = vmul.f32 %v2085_v63, %v3351_v55  ;;  %v3425_v7 = vmul.f32 %v2086_v12, %v3351_v55 }
  0xf5   : > { %5762 = vst [vmem:[#allocation42_spill] sm:$0xff] %v3355_v41  ;;  %v3427_v16 = vperm.slane %v386_v40, 1  ;;  %v3430_v62 = vmul.f32 %v2087_v10, %v3351_v55  ;;  %v3433_v52 = vmul.f32 %v2088_v0, %v3351_v55  ;;  %v3437_v15 = vperm.slane %v386_v40, 2 }
  0xf6   : > { %5763 = vst [vmem:[#allocation43_spill] sm:$0xff] %v3368_v43  ;;  %v3439_v25 = vperm.slane %v386_v40, 3  ;;  %v3441_v5 = vperm.slane %v386_v40, 4  ;;  %v3443_v8 = vperm.slane %v386_v40, 5  ;;  %v3451_v10 = vmul.f32 %v2078_v4, %v3418_v24 }
  0xf7   : > { %5764 = vst [vmem:[#allocation17_spill] sm:$0xff] %v3370_v23  ;;  %v3454_v0 = vmul.f32 %v2079_v1, %v3418_v24  ;;  %v3458_v55 = vmul.f32 %v2074_v26, %v3418_v24  ;;  %v3464_v50 = vmul.f32 %v2085_v63, %v3427_v16  ;;  %v821_v4 = vmul.f32 %v2081_v9, %v3427_v16  ;;  %v389_v26 = vpop.f32.mrf.mxu1 }
  0xf8   : > { %5765 = vst [vmem:[#allocation19_spill] sm:$0xff] %v3372_v2  ;;  %v3471_v51 = vmul.f32 %v2082_v53, %v3427_v16  ;;  %v3474_v1 = vmul.f32 %v2083_v3, %v3427_v16  ;;  %v3482_v63 = vperm.slane %v352_v34, 2  ;;  %v3488_v9 = vperm.slane %v352_v34, 5  ;;  %v3497_v3 = vld [vmem:[%s5371_s3 + $0x140] sm:$0xff] }
  0xf9   : > { %5766 = vst [vmem:[#allocation22_spill] sm:$0xff] %v3376_v18  ;;  %v3490_v53 = vperm.slane %v352_v34, 6  ;;  %v3492_v22 = vperm.slane %v352_v34, 7  ;;  %v3506_v33 = vperm.slane %v389_v26, 1  ;;  %v3514_v45 = vperm.slane %v389_v26, 4  ;;  %v3570_v18 = vld [vmem:[%s5371_s3 + $0x1c0] sm:$0xff] }
  0xfa   : > { %5767 = vst [vmem:[#allocation18_spill] sm:$0xff] %v3382_v60  ;;  %v3516_v20 = vperm.slane %v389_v26, 5  ;;  %v3545_v60 = vperm.slane %v389_v26, 7 }
  0xfb   : > { %5768 = vst [vmem:[#allocation46_spill] sm:$0xff] %v3394_v30  ;;  %v3448_v30 = vmul.f32 %v2077_v17, %v3418_v24  ;;  %v3467_v17 = vmul.f32 %v2086_v12, %v3427_v16  ;;  %v3486_v12 = vperm.slane %v352_v34, 4 }
  0xfc   : > { %5769 = vst [vmem:[#allocation47_spill] sm:$0xff] %v3398_v19 }
  0xfd   : > { %5770 = vst [vmem:[#allocation13_spill] sm:$0xff] %v3401_v31  ;;  %v3512_v31 = vperm.slane %v389_v26, 3 }
  0xfe   : > { %5771 = vst [vmem:[#allocation15_spill] sm:$0xff] %v3410_v57  ;;  %v3435_v57 = vperm.slane %v349_v61, 7  ;;  %v777_v61 = vmul.f32 %v2073_v42, %v3418_v24  ;;  %v3476_v42 = vperm.slane %v386_v40, 7 }
  0xff   : > { %5772 = vst [vmem:[#allocation23_spill] sm:$0xff] %v3416_v48  ;;  %v3538_v48 = vld [vmem:[%s5371_s3 + $0x180] sm:$0xff] }
 0x100   : > { %5773 = vst [vmem:[#allocation26_spill] sm:$0xff] %v3418_v24 }
 0x101   : > { %5774 = vst [vmem:[#allocation20_spill] sm:$0xff] %v3421_v56  ;;  %v3445_v56 = vperm.slane %v386_v40, 6  ;;  %v3502_v40 = vld [vmem:[%s5372_s4 + $0x140] sm:$0xff] }
 0x102   : > { %5775 = vst [vmem:[#allocation21_spill] sm:$0xff] %v3425_v7  ;;  %v909_v7 = vmul.f32 %v3521_v49, %v3439_v25 }
 0x103   : > { %5776 = vst [vmem:[#allocation27_spill] sm:$0xff] %v3427_v16  ;;  %v3504_v16 = vperm.slane %v389_v26, 0 }
 0x104   : > { %5777 = vst [vmem:[#allocation31_spill] sm:$0xff] %v3430_v62  ;;  %v697_v62 = vadd.f32 %v3329_v39, %v3322_v13  ;;  %v3528_v13 = vperm.slane %v389_v26, 6 }
 0x105   : > { %5778 = vst [vmem:[#allocation34_spill] sm:$0xff] %v3433_v52  ;;  %v3461_v52 = vmul.f32 %v2075_v58, %v3418_v24  ;;  %v3480_v58 = vperm.slane %v352_v34, 1  ;;  %v3484_v24 = vperm.slane %v352_v34, 3 }
 0x106   : > { %5779 = vst [vmem:[#allocation40_spill] sm:$0xff] %v3435_v57  ;;  %v741_v39 = vadd.f32 %v3374_v44, %v697_v62 }
 0x107   : > { %5780 = vst [vmem:[#allocation41_spill] sm:$0xff] %v3439_v25  ;;  %v997_v25 = vmul.f32 %v3556_v14, %v3443_v8 }
 0x108   : > { %5781 = vst [vmem:[#allocation44_spill] sm:$0xff] %v3441_v5 }
 0x109   : > { %5782 = vst [vmem:[#allocation38_spill] sm:$0xff] %v3443_v8 }
 0x10a   : > { %5783 = vst [vmem:[#allocation39_spill] sm:$0xff] %v3445_v56 }
 0x10b   : > { %5784 = vst [vmem:[#allocation8_spill] sm:$0xff] %v3451_v10 }
 0x10c   : > { %5785 = vst [vmem:[#allocation52_spill] sm:$0xff] %v3454_v0  ;;  %v3478_v0 = vperm.slane %v352_v34, 0  ;;  %v781_v34 = vadd.f32 %v777_v61, %v773_v6  ;;  %v861_v6 = vmul.f32 %v3502_v40, %v3353_v46  ;;  %v865_v61 = vmul.f32 %v3497_v3, %v3437_v15 }
 0x10d   : > { %5786 = vst [vmem:[#allocation50_spill] sm:$0xff] %v3458_v55  ;;  %v3575_v55 = vld [vmem:[%s5372_s4 + $0x1c0] sm:$0xff] }
 0x10e   : > { %5787 = vst [vmem:[#allocation45_spill] sm:$0xff] %v3461_v52  ;;  %v3510_v52 = vperm.slane %v389_v26, 2  ;;  %v785_v21 = vadd.f32 %v781_v34, %v741_v39  ;;  %v905_v26 = vmul.f32 %v3526_v28, %v3355_v41  ;;  %v953_v39 = vmul.f32 %v3538_v48, %v3441_v5  ;;  %v3666_v5 = vld [vmem:[%s5372_s4 + $0x260] sm:$0xff] }
 0x10f   : > { %5788 = vst [vmem:[#allocation51_spill] sm:$0xff] %v3467_v17  ;;  %v3543_v17 = vld [vmem:[%s5372_s4 + $0x180] sm:$0xff]  ;;  %v869_v35 = vadd.f32 %v865_v61, %v861_v6  ;;  %v993_v28 = vmul.f32 %v3561_v59, %v3370_v23 }
 0x110   : > { %5789 = vst [vmem:[#allocation48_spill] sm:$0xff] %v3471_v51  ;;  %v825_v51 = vadd.f32 %v821_v4, %v817_v54  ;;  %v3581_v54 = vpop.f32.mrf.mxu1  ;;  %v949_v4 = vmul.f32 %v3543_v17, %v3368_v43  ;;  %v3612_v6 = vld [vmem:[%s5371_s3 + $0x200] sm:$0xff] }
 0x111   : > { %5790 = vst [vmem:[#allocation49_spill] sm:$0xff] %v3474_v1  ;;  %v355_v1 = vpop.f32.mrf.mxu0 }
 0x112   : > { %5791 = vst [vmem:[#allocation56_spill] sm:$0xff] %v3476_v42  ;;  %v3547_v10 = vperm.slane %v355_v1, 0  ;;  %v3549_v62 = vperm.slane %v355_v1, 1  ;;  %v3551_v44 = vperm.slane %v355_v1, 2  ;;  %v3577_v19 = vperm.slane %v355_v1, 3 }
 0x113   : > { %5792 = vst [vmem:[#allocation53_spill] sm:$0xff] %v3478_v0  ;;  %v3579_v34 = vperm.slane %v355_v1, 4  ;;  %v829_v11 = vadd.f32 %v825_v51, %v785_v21  ;;  %v3593_v41 = vperm.slane %v355_v1, 6  ;;  %v3602_v51 = vld [vmem:[%s5371_s3 + $0x1e0] sm:$0xff]  ;;  %v3614_v61 = vperm.slane %v355_v1, 7 }
 0x114   : > { %5793 = vst [vmem:[#allocation58_spill] sm:$0xff] %v3480_v58  ;;  %v3607_v21 = vld [vmem:[%s5372_s4 + $0x1e0] sm:$0xff]  ;;  %v957_v8 = vadd.f32 %v953_v39, %v949_v4 }
 0x115   : > { %5794 = vst [vmem:[#allocation62_spill] sm:$0xff] %v3482_v63  ;;  %v1081_v23 = vmul.f32 %v3607_v21, %v3435_v57  ;;  %v3682_v4 = vld [vmem:[%s5371_s3 + $0x280] sm:$0xff] }
 0x116   : > { %5795 = vst [vmem:[#allocation63_spill] sm:$0xff] %v3484_v24  ;;  %v3687_v39 = vld [vmem:[%s5371_s3 + $0x2a0] sm:$0xff] }
 0x117   : > { %5796 = vst [vmem:[#allocation64_spill] sm:$0xff] %v3486_v12 }
 0x118   : > { %5797 = vst [vmem:[#allocation65_spill] sm:$0xff] %v3488_v9 }
 0x119   : > { %5798 = vst [vmem:[#allocation66_spill] sm:$0xff] %v3490_v53 }
 0x11a   : > { %5799 = vst [vmem:[#allocation67_spill] sm:$0xff] %v3492_v22 }
 0x11b   : > { %5800 = vst [vmem:[#allocation68_spill] sm:$0xff] %v3504_v16 }
 0x11c   : > { %5801 = vst [vmem:[#allocation69_spill] sm:$0xff] %v3506_v33 }
 0x11d   : > { %5802 = vst [vmem:[#allocation70_spill] sm:$0xff] %v3510_v52 }
 0x11e   : > { %5803 = vst [vmem:[#allocation71_spill] sm:$0xff] %v3512_v31 }
 0x11f   : > { %5804 = vst [vmem:[#allocation72_spill] sm:$0xff] %v3514_v45 }
 0x120   : > { %5805 = vst [vmem:[#allocation73_spill] sm:$0xff] %v3516_v20 }
 0x121   : > { %5806 = vst [vmem:[#allocation74_spill] sm:$0xff] %v3521_v49  ;;  %v3591_v49 = vperm.slane %v355_v1, 5  ;;  %v3632_v1 = vld [vmem:[%s5372_s4 + $0x220] sm:$0xff] }
 0x122   : > { %5808 = vst [vmem:[#allocation76_spill] sm:$0xff] %v3528_v13 }
 0x123   : > { %5809 = vst [vmem:[#allocation77_spill] sm:$0xff] %v3538_v48  ;;  %v3671_v48 = vld [vmem:[%s5372_s4 + $0x280] sm:$0xff] }
 0x124   : > { %5810 = vst [vmem:[#allocation78_spill] sm:$0xff] %v3543_v17  ;;  %v1041_v17 = vmul.f32 %v3570_v18, %v3445_v56  ;;  %v913_v56 = vadd.f32 %v909_v7, %v905_v26  ;;  %v3638_v7 = vperm.slane %v3581_v54, 2  ;;  %v3649_v26 = vld [vmem:[%s5371_s3 + $0x240] sm:$0xff] }
 0x125   : > { %5811 = vst [vmem:[#allocation79_spill] sm:$0xff] %v3545_v60 }
 0x126   : > { %5812 = vst [vmem:[#allocation80_spill] sm:$0xff] %v3547_v10 }
 0x127   : > { %5813 = vst [vmem:[#allocation81_spill] sm:$0xff] %v3549_v62 }
 0x128   : > { %5814 = vst [vmem:[#allocation82_spill] sm:$0xff] %v3551_v44 }
 0x129   : > { %5815 = vst [vmem:[#allocation83_spill] sm:$0xff] %v3556_v14  ;;  %v1001_v14 = vadd.f32 %v997_v25, %v993_v28  ;;  %v1085_v28 = vmul.f32 %v3602_v51, %v3476_v42 }
 0x12a   : > { %5817 = vst [vmem:[#allocation85_spill] sm:$0xff] %v3570_v18  ;;  %v3622_v18 = vld [vmem:[%s5372_s4 + $0x200] sm:$0xff] }
 0x12b   : > { %5818 = vst [vmem:[#allocation86_spill] sm:$0xff] %v3575_v55  ;;  %v1125_v25 = vmul.f32 %v3622_v18, %v3478_v0  ;;  %v3703_v0 = vld [vmem:[%s5371_s3 + $0x2c0] sm:$0xff] }
 0x12c   : > { %5819 = vst [vmem:[#allocation87_spill] sm:$0xff] %v3577_v19 }
 0x12d   : > { %5820 = vst [vmem:[#allocation88_spill] sm:$0xff] %v3579_v34  ;;  %v1037_v34 = vmul.f32 %v3575_v55, %v3372_v2  ;;  %v873_v55 = vadd.f32 %v869_v35, %v829_v11  ;;  %v3627_v2 = vld [vmem:[%s5371_s3 + $0x220] sm:$0xff]  ;;  %v3641_v35 = vperm.slane %v3581_v54, 3  ;;  %v3644_v11 = vperm.slane %v3581_v54, 4 }
 0x12e   : > { %5821 = vst [vmem:[#allocation89_spill] sm:$0xff] %v3591_v49  ;;  %v3654_v49 = vld [vmem:[%s5372_s4 + $0x240] sm:$0xff] }
 0x12f   : > { %5822 = vst [vmem:[#allocation90_spill] sm:$0xff] %v3593_v41  ;;  %v3617_v41 = vperm.slane %v3581_v54, 0  ;;  %v917_v59 = vadd.f32 %v913_v56, %v873_v55  ;;  %v1045_v56 = vadd.f32 %v1041_v17, %v1037_v34  ;;  %v1129_v55 = vmul.f32 %v3612_v6, %v3504_v16  ;;  %v3692_v17 = vld [vmem:[%s5372_s4 + $0x2a0] sm:$0xff] }
 0x130   : > { %5823 = vst [vmem:[#allocation91_spill] sm:$0xff] %v3607_v21  ;;  %v1173_v16 = vmul.f32 %v3627_v2, %v3506_v33  ;;  %v3708_v21 = vld [vmem:[%s5372_s4 + $0x2c0] sm:$0xff] }
 0x131   : > { %5824 = vst [vmem:[#allocation92_spill] sm:$0xff] %v3612_v6  ;;  %v961_v34 = vadd.f32 %v957_v8, %v917_v59  ;;  %v1213_v6 = vmul.f32 %v3654_v49, %v3482_v63  ;;  %v1217_v59 = vmul.f32 %v3649_v26, %v3510_v52  ;;  %v1257_v8 = vmul.f32 %v3666_v5, %v3484_v24  ;;  %v3721_v63 = vld [vmem:[%s5371_s3 + $0x2e0] sm:$0xff] }
 0x132   : > { %5825 = vst [vmem:[#allocation93_spill] sm:$0xff] %v3614_v61  ;;  %v3635_v61 = vperm.slane %v3581_v54, 1  ;;  %v3726_v33 = vld [vmem:[%s5372_s4 + $0x2e0] sm:$0xff]  ;;  %v1389_v24 = vmul.f32 %v3708_v21, %v3490_v53 }
 0x133   : > { %5826 = vst [vmem:[#allocation94_spill] sm:$0xff] %v3622_v18  ;;  %v1169_v18 = vmul.f32 %v3632_v1, %v3480_v58  ;;  %v1005_v52 = vadd.f32 %v1001_v14, %v961_v34  ;;  %v1133_v34 = vadd.f32 %v1129_v55, %v1125_v25  ;;  %v1221_v25 = vadd.f32 %v1217_v59, %v1213_v6  ;;  %v3764_v55 = vld [vmem:[%s5372_s4 + $0x320] sm:$0xff] }
 0x134   : > { %5827 = vst [vmem:[#allocation95_spill] sm:$0xff] %v3632_v1  ;;  %v3807_v59 = vld [vmem:[%s5371_s3 + $0x360] sm:$0xff] }
 0x135   : > { %5828 = vst [vmem:[#allocation96_spill] sm:$0xff] %v3635_v61  ;;  %v1049_v14 = vadd.f32 %v1045_v56, %v1005_v52  ;;  %v3759_v52 = vperm.slane %v3581_v54, 7  ;;  %v1177_v56 = vadd.f32 %v1173_v16, %v1169_v18 }
 0x136   : > { %5829 = vst [vmem:[#allocation97_spill] sm:$0xff] %v3638_v7 }
 0x137   : > { %5830 = vst [vmem:[#allocation98_spill] sm:$0xff] %v3641_v35 }
 0x138   : > { %5831 = vst [vmem:[#allocation99_spill] sm:$0xff] %v3644_v11  ;;  %v3661_v11 = vld [vmem:[%s5371_s3 + $0x260] sm:$0xff] }
 0x139   : > { %5832 = vst [vmem:[#allocation100_spill] sm:$0xff] %v3649_v26  ;;  %v1261_v1 = vmul.f32 %v3661_v11, %v3512_v31  ;;  %v1345_v31 = vmul.f32 %v3692_v17, %v3488_v9  ;;  %v1393_v26 = vmul.f32 %v3703_v0, %v3528_v13 }
 0x13a   : > { %5833 = vst [vmem:[#allocation101_spill] sm:$0xff] %v3654_v49  ;;  %v1301_v49 = vmul.f32 %v3671_v48, %v3486_v12  ;;  %v3735_v12 = vperm.slane %v3581_v54, 5 }
 0x13b   : > { %5834 = vst [vmem:[#allocation102_spill] sm:$0xff] %v3661_v11  ;;  %v1089_v11 = vadd.f32 %v1085_v28, %v1081_v23  ;;  %v3753_v23 = vld [vmem:[%s5372_s4 + $0x300] sm:$0xff]  ;;  %v3756_v28 = vperm.slane %v3581_v54, 6  ;;  %v3771_v13 = vadd.f32 %v1393_v26, %v1389_v24  ;;  %v5847_v24 = vsub.f32 %v5758_v47, %v3301_v32 }
 0x13c   : > { %5835 = vst [vmem:[#allocation103_spill] sm:$0xff] %v3666_v5  ;;  %v1305_v5 = vmul.f32 %v3682_v4, %v3514_v45  ;;  %v1433_v45 = vmul.f32 %v3726_v33, %v3492_v22  ;;  %v1477_v16 = vmul.f32 %v3753_v23, %v3547_v10  ;;  %v3780_v54 = vld [vmem:[%s5371_s3 + $0x340] sm:$0xff]  ;;  %v5849_v32 = vsub.f32 %v3306_v38, %v3315_v27 }
 0x13d   : > { %5836 = vst [vmem:[#allocation104_spill] sm:$0xff] %v3671_v48  ;;  %v1349_v48 = vmul.f32 %v3687_v39, %v3516_v20  ;;  %v3748_v20 = vld [vmem:[%s5371_s3 + $0x300] sm:$0xff] }
 0x13e   : > { %5837 = vst [vmem:[#allocation105_spill] sm:$0xff] %v3692_v17  ;;  %v1437_v17 = vmul.f32 %v3721_v63, %v3545_v60  ;;  %v1265_v60 = vadd.f32 %v1261_v1, %v1257_v8  ;;  %v1481_v18 = vmul.f32 %v3748_v20, %v3617_v41  ;;  %v1521_v1 = vmul.f32 %v3764_v55, %v3549_v62  ;;  %v3825_v38 = vld [vmem:[%s5371_s3 + $0x380] sm:$0xff]  ;;  %v5850_v8 = vld [vmem:[#allocation42_spill] sm:$0xff] }
 0x13f   : > { %5838 = vst [vmem:[#allocation106_spill] sm:$0xff] %v3708_v21  ;;  %v1353_v22 = vadd.f32 %v1349_v48, %v1345_v31  ;;  %v3769_v21 = vld [vmem:[%s5371_s3 + $0x320] sm:$0xff]  ;;  %v681_v31 = vadd.f32 %v5847_v24, %v3317_v29  ;;  %v849_v29 = vmul.f32 %v3502_v40, %v3437_v15  ;;  %v809_v40 = vsub.f32 %v3413_v36, %v3464_v50  ;;  %v5853_v24 = vld [vmem:[#allocation75_spill] sm:$0xff] }
 0x140   : > { %5839 = vst [vmem:[#allocation107_spill] sm:$0xff] %v3721_v63  ;;  %v1309_v63 = vadd.f32 %v1305_v5, %v1301_v49  ;;  %v3785_v49 = vld [vmem:[%s5372_s4 + $0x340] sm:$0xff]  ;;  %v3796_v6 = vadd.f32 %v1437_v17, %v1433_v45  ;;  %v1525_v26 = vmul.f32 %v3769_v21, %v3635_v61  ;;  %v844_v45 = vmul.f32 %v3497_v3, %v3353_v46 }
 0x141   : > { %5840 = vst [vmem:[#allocation108_spill] sm:$0xff] %v3726_v33  ;;  %v1093_v33 = vadd.f32 %v1089_v11, %v1049_v14  ;;  %v3790_v5 = vld [vmem:[%s5372_s4 + $0x360] sm:$0xff]  ;;  %v765_v11 = vsub.f32 %v3379_v37, %v3448_v30  ;;  %v1565_v37 = vmul.f32 %v3785_v49, %v3551_v44  ;;  %v1569_v30 = vmul.f32 %v3780_v54, %v3638_v7  ;;  %v5851_v14 = vld [vmem:[#allocation74_spill] sm:$0xff] }
 0x142   : > { %5841 = vst [vmem:[#allocation109_spill] sm:$0xff] %v3735_v12  ;;  %v1609_v17 = vmul.f32 %v3790_v5, %v3577_v19  ;;  %v3830_v27 = vld [vmem:[%s5372_s4 + $0x380] sm:$0xff]  ;;  %v5856_v7 = vld [vmem:[#allocation78_spill] sm:$0xff] }
 0x143   : > { %5842 = vst [vmem:[#allocation110_spill] sm:$0xff] %v3756_v28  ;;  %v1137_v48 = vadd.f32 %v1133_v34, %v1093_v33  ;;  %v725_v33 = vadd.f32 %v5849_v32, %v681_v31  ;;  %v888_v34 = vmul.f32 %v5851_v14, %v5850_v8  ;;  %v1613_v32 = vmul.f32 %v3807_v59, %v3641_v35  ;;  %v3847_v50 = vld [vmem:[%s5372_s4 + $0x3a0] sm:$0xff] }
 0x144   : > { %5843 = vst [vmem:[#allocation111_spill] sm:$0xff] %v3759_v52  ;;  %v853_v14 = vsub.f32 %v844_v45, %v849_v29  ;;  %v5864_v45 = vld [vmem:[#allocation89_spill] sm:$0xff] }
 0x145   : > { %5844 = vst [vmem:[#allocation112_spill] sm:$0xff] %v3780_v54  ;;  %v1181_v47 = vadd.f32 %v1177_v56, %v1137_v48  ;;  %v769_v3 = vadd.f32 %v765_v11, %v725_v33  ;;  %v5852_v56 = vld [vmem:[#allocation41_spill] sm:$0xff]  ;;  %v1485_v11 = vadd.f32 %v1481_v18, %v1477_v16  ;;  %v1529_v33 = vadd.f32 %v1525_v26, %v1521_v1  ;;  %v5861_v16 = vld [vmem:[#allocation83_spill] sm:$0xff]  ;;  %v5862_v1 = vld [vmem:[#allocation38_spill] sm:$0xff] }
 0x146   : > { %5845 = vst [vmem:[#allocation113_spill] sm:$0xff] %v3785_v49  ;;  %v893_v31 = vmul.f32 %v5853_v24, %v5852_v56  ;;  %v5855_v49 = vld [vmem:[#allocation44_spill] sm:$0xff]  ;;  %v3857_v8 = vadd.f32 %v1613_v32, %v1609_v17  ;;  %v1697_v29 = vmul.f32 %v3847_v50, %v5864_v45  ;;  %v3879_v17 = vld [vmem:[%s5372_s4 + $0x3e0] sm:$0xff]  ;;  %v5871_v32 = vld [vmem:[#allocation86_spill] sm:$0xff] }
 0x147   : > { %5846 = vst [vmem:[#allocation114_spill] sm:$0xff] %v3790_v5  ;;  %v1225_v48 = vadd.f32 %v1221_v25, %v1181_v47  ;;  %v5854_v5 = vld [vmem:[#allocation77_spill] sm:$0xff]  ;;  %v937_v54 = vmul.f32 %v5856_v7, %v5855_v49  ;;  %v813_v36 = vadd.f32 %v809_v40, %v769_v3  ;;  %v1573_v25 = vadd.f32 %v1569_v30, %v1565_v37  ;;  %v5858_v47 = vld [vmem:[#allocation88_spill] sm:$0xff]  ;;  %v5868_v40 = vld [vmem:[#allocation19_spill] sm:$0xff] }
 0x148   : > { %5848 = vst [vmem:[#allocation115_spill] sm:$0xff] %v3807_v59  ;;  %v932_v19 = vmul.f32 %v5854_v5, %v3368_v43  ;;  %v1653_v35 = vmul.f32 %v3830_v27, %v5858_v47  ;;  %v5859_v59 = vld [vmem:[#allocation99_spill] sm:$0xff]  ;;  %v897_v44 = vsub.f32 %v888_v34, %v893_v31  ;;  %v5860_v7 = vld [vmem:[#allocation17_spill] sm:$0xff]  ;;  %v5863_v26 = vld [vmem:[#allocation84_spill] sm:$0xff] }
 0x149   : > { %5857 = vst [vmem:[#allocation74_spill] sm:$0xff] %v3847_v50  ;;  %v1269_v24 = vadd.f32 %v1265_v60, %v1225_v48  ;;  %v1657_v5 = vmul.f32 %v3825_v38, %v5859_v59  ;;  %v857_v43 = vadd.f32 %v853_v14, %v813_v36  ;;  %v976_v18 = vmul.f32 %v5861_v16, %v5860_v7  ;;  %v3862_v60 = vld [vmem:[%s5371_s3 + $0x3a0] sm:$0xff]  ;;  %v5870_v48 = vld [vmem:[#allocation39_spill] sm:$0xff]  ;;  %v5875_v50 = vld [vmem:[#allocation68_spill] sm:$0xff] }
 0x14a   : > { %v981_v49 = vmul.f32 %v5863_v26, %v5862_v1  ;;  %v3869_v37 = vld [vmem:[%s5372_s4 + $0x3c0] sm:$0xff]  ;;  %v941_v30 = vsub.f32 %v932_v19, %v937_v54  ;;  %5867 = vst [vmem:[#allocation78_spill] sm:$0xff] %v3879_v17  ;;  %v1025_v36 = vmul.f32 %v5871_v32, %v5870_v48  ;;  %v1064_v19 = vmul.f32 %v3602_v51, %v3435_v57  ;;  %v5877_v48 = vld [vmem:[#allocation90_spill] sm:$0xff] }
 0x14b   : > { %v1313_v56 = vadd.f32 %v1309_v63, %v1269_v24  ;;  %5865 = vst [vmem:[#allocation75_spill] sm:$0xff] %v3869_v37  ;;  %v3874_v63 = vld [vmem:[%s5371_s3 + $0x3c0] sm:$0xff]  ;;  %v901_v3 = vadd.f32 %v897_v44, %v857_v43  ;;  %v5872_v24 = vld [vmem:[#allocation91_spill] sm:$0xff]  ;;  %v5874_v43 = vld [vmem:[#allocation92_spill] sm:$0xff]  ;;  %v1701_v32 = vmul.f32 %v3862_v60, %v3735_v12  ;;  %v1152_v12 = vmul.f32 %v3627_v2, %v3480_v58 }
 0x14c   : > { %5866 = vst [vmem:[#allocation77_spill] sm:$0xff] %v3874_v63  ;;  %v5869_v34 = vld [vmem:[#allocation85_spill] sm:$0xff]  ;;  %v1069_v16 = vmul.f32 %v5872_v24, %v3476_v42  ;;  %v1745_v24 = vmul.f32 %v3874_v63, %v3756_v28  ;;  %v5888_v2 = vld [vmem:[#allocation103_spill] sm:$0xff] }
 0x14d   : > { %v1020_v31 = vmul.f32 %v5869_v34, %v5868_v40  ;;  %v1357_v54 = vadd.f32 %v1353_v22, %v1313_v56  ;;  %v3890_v14 = vld [vmem:[%s5371_s3 + $0x3e0] sm:$0xff]  ;;  %v5876_v34 = vld [vmem:[#allocation94_spill] sm:$0xff]  ;;  %v1741_v22 = vmul.f32 %v3869_v37, %v5877_v48  ;;  %v945_v51 = vadd.f32 %v941_v30, %v901_v3  ;;  %v5882_v37 = vld [vmem:[#allocation100_spill] sm:$0xff] }
 0x14e   : > { %v5873_v26 = vld [vmem:[#allocation53_spill] sm:$0xff]  ;;  %v1113_v45 = vmul.f32 %v5876_v34, %v5875_v50  ;;  %v985_v56 = vsub.f32 %v976_v18, %v981_v49  ;;  %v1661_v40 = vadd.f32 %v1657_v5, %v1653_v35  ;;  %v1789_v34 = vmul.f32 %v3890_v14, %v3759_v52  ;;  %v5880_v35 = vld [vmem:[#allocation95_spill] sm:$0xff] }
 0x14f   : > { %v1108_v44 = vmul.f32 %v5874_v43, %v5873_v26  ;;  %v1401_v57 = vadd.f32 %v3771_v13, %v1357_v54  ;;  %v5878_v42 = vld [vmem:[#allocation93_spill] sm:$0xff]  ;;  %v1029_v26 = vsub.f32 %v1020_v31, %v1025_v36  ;;  %v1073_v49 = vsub.f32 %v1064_v19, %v1069_v16  ;;  %v5881_v54 = vld [vmem:[#allocation62_spill] sm:$0xff]  ;;  %v5885_v52 = vld [vmem:[#allocation63_spill] sm:$0xff] }
 0x150   : > { %v1785_v43 = vmul.f32 %v3879_v17, %v5878_v42  ;;  %v989_v50 = vadd.f32 %v985_v56, %v945_v51  ;;  %v5879_v13 = vld [vmem:[#allocation69_spill] sm:$0xff]  ;;  %v1196_v28 = vmul.f32 %v5882_v37, %v5881_v54  ;;  %v5883_v17 = vld [vmem:[#allocation70_spill] sm:$0xff]  ;;  %v5887_v56 = vld [vmem:[#allocation71_spill] sm:$0xff] }
 0x151   : > { %v1445_v30 = vadd.f32 %v3796_v6, %v1401_v57  ;;  %v1117_v18 = vsub.f32 %v1108_v44, %v1113_v45  ;;  %v1157_v5 = vmul.f32 %v5880_v35, %v5879_v13  ;;  %v5884_v42 = vld [vmem:[#allocation101_spill] sm:$0xff]  ;;  %v5886_v51 = vld [vmem:[#allocation102_spill] sm:$0xff]  ;;  %v1245_v58 = vmul.f32 %v5888_v2, %v5887_v56  ;;  %v5889_v57 = vld [vmem:[#allocation64_spill] sm:$0xff] }
 0x152   : > { %v1033_v3 = vadd.f32 %v1029_v26, %v989_v50  ;;  %v1201_v63 = vmul.f32 %v5884_v42, %v5883_v17  ;;  %v1240_v31 = vmul.f32 %v5886_v51, %v5885_v52  ;;  %v1284_v6 = vmul.f32 %v3682_v4, %v5889_v57  ;;  %v5890_v45 = vld [vmem:[#allocation72_spill] sm:$0xff]  ;;  %v5892_v51 = vld [vmem:[#allocation73_spill] sm:$0xff]  ;;  %v5895_v56 = vld [vmem:[#allocation106_spill] sm:$0xff] }
 0x153   : > { %v1489_v36 = vadd.f32 %v1485_v11, %v1445_v30  ;;  %v5891_v19 = vld [vmem:[#allocation104_spill] sm:$0xff]  ;;  %v1705_v50 = vadd.f32 %v1701_v32, %v1697_v29  ;;  %v1749_v26 = vadd.f32 %v1745_v24, %v1741_v22  ;;  %v1793_v44 = vadd.f32 %v1789_v34, %v1785_v43  ;;  %v5893_v11 = vld [vmem:[#allocation105_spill] sm:$0xff]  ;;  %v5896_v24 = vld [vmem:[#allocation67_spill] sm:$0xff] }
 0x154   : > { %v1289_v16 = vmul.f32 %v5891_v19, %v5890_v45  ;;  %v1077_v37 = vadd.f32 %v1073_v49, %v1033_v3  ;;  %v1161_v54 = vsub.f32 %v1152_v12, %v1157_v5  ;;  %v1328_v42 = vmul.f32 %v3687_v39, %v3488_v9  ;;  %v5894_v57 = vld [vmem:[#allocation76_spill] sm:$0xff]  ;;  %v5898_v43 = vld [vmem:[#allocation79_spill] sm:$0xff] }
 0x155   : > { %v1533_v35 = vadd.f32 %v1529_v33, %v1489_v36  ;;  %v1333_v30 = vmul.f32 %v5893_v11, %v5892_v51  ;;  %v1205_v2 = vsub.f32 %v1196_v28, %v1201_v63  ;;  %v1372_v4 = vmul.f32 %v3703_v0, %v3490_v53  ;;  %v5897_v33 = vld [vmem:[#allocation107_spill] sm:$0xff]  ;;  %v5899_v34 = vld [vmem:[#allocation108_spill] sm:$0xff]  ;;  %v3991_v11 = vld [vmem:[%s5372_s4 + $0x188] sm:$0xff] }
 0x156   : > { %v1121_v52 = vadd.f32 %v1117_v18, %v1077_v37  ;;  %v1377_v19 = vmul.f32 %v5895_v56, %v5894_v57  ;;  %v1249_v32 = vsub.f32 %v1240_v31, %v1245_v58  ;;  %v1293_v22 = vsub.f32 %v1284_v6, %v1289_v16  ;;  %v3953_v58 = vld [vmem:[%s5371_s3 + $0x148] sm:$0xff]  ;;  %v5900_v18 = vld [vmem:[#allocation37_spill] sm:$0xff]  ;;  %v5902_v3 = vld [vmem:[#allocation47_spill] sm:$0xff]  ;;  %5906 = vst [vmem:[#allocation84_spill] sm:$0xff] %v3991_v11 }
 0x157   : > { %v1577_v29 = vadd.f32 %v1573_v25, %v1533_v35  ;;  %v3936_v12 = vmul.f32 %v5897_v33, %v5896_v24  ;;  %v3940_v49 = vmul.f32 %v5899_v34, %v5898_v43  ;;  %v3944_v28 = vmul.f32 %v3748_v20, %v3547_v10  ;;  %v5901_v20 = vld [vmem:[#allocation6_spill] sm:$0xff] }
 0x158   : > { %v1165_v39 = vadd.f32 %v1161_v54, %v1121_v52  ;;  %v3948_v0 = vmul.f32 %v3753_v23, %v3617_v41  ;;  %v3958_v52 = vld [vmem:[%s5372_s4 + $0x148] sm:$0xff]  ;;  %v1337_v63 = vsub.f32 %v1328_v42, %v1333_v30  ;;  %v698_v5 = vadd.f32 %v5901_v20, %v5900_v18 }
 0x159   : > { %v1621_v25 = vadd.f32 %v3857_v8, %v1577_v29  ;;  %v5903_v54 = vld [vmem:[#allocation50_spill] sm:$0xff]  ;;  %v1381_v36 = vsub.f32 %v1372_v4, %v1377_v19  ;;  %v3967_v56 = vmul.f32 %v3769_v21, %v3549_v62  ;;  %v3971_v6 = vmul.f32 %v3764_v55, %v3635_v61  ;;  %v5907_v4 = vld [vmem:[#allocation21_spill] sm:$0xff]  ;;  %v5908_v19 = vld [vmem:[#allocation48_spill] sm:$0xff] }
 0x15a   : > { %v782_v23 = vadd.f32 %v5903_v54, %v5902_v3  ;;  %v1209_v31 = vadd.f32 %v1205_v2, %v1165_v39  ;;  %v3976_v8 = vld [vmem:[%s5371_s3 + $0x168] sm:$0xff]  ;;  %v862_v21 = vmul.f32 %v3958_v52, %v3353_v46  ;;  %v866_v55 = vmul.f32 %v3953_v58, %v3437_v15  ;;  %v5915_v54 = vld [vmem:[#allocation43_spill] sm:$0xff] }
 0x15b   : > { %v3981_v16 = vld [vmem:[%s5372_s4 + $0x168] sm:$0xff]  ;;  %v1665_v37 = vadd.f32 %v1661_v40, %v1621_v25  ;;  %v1425_v2 = vsub.f32 %v3936_v12, %v3940_v49  ;;  %v1469_v40 = vsub.f32 %v3944_v28, %v3948_v0  ;;  %v826_v29 = vadd.f32 %v5908_v19, %v5907_v4 }
 0x15c   : > { %5904 = vst [vmem:[#allocation83_spill] sm:$0xff] %v3981_v16  ;;  %v5905_v35 = vld [vmem:[#allocation22_spill] sm:$0xff]  ;;  %v1253_v30 = vadd.f32 %v1249_v32, %v1209_v31  ;;  %v5910_v32 = vld [vmem:[#allocation41_spill] sm:$0xff] }
 0x15d   : > { %v742_v42 = vadd.f32 %v5905_v35, %v698_v5  ;;  %v4002_v33 = vld [vmem:[%s5371_s3 + $0x188] sm:$0xff]  ;;  %v1709_v39 = vadd.f32 %v1705_v50, %v1665_v37  ;;  %v910_v20 = vmul.f32 %v3976_v8, %v5910_v32  ;;  %v1513_v50 = vsub.f32 %v3967_v56, %v3971_v6  ;;  %v5914_v5 = vld [vmem:[#allocation112_spill] sm:$0xff]  ;;  %v5918_v32 = vld [vmem:[#allocation113_spill] sm:$0xff] }
 0x15e   : > { %v5909_v25 = vld [vmem:[#allocation42_spill] sm:$0xff]  ;;  %v1297_v28 = vadd.f32 %v1293_v22, %v1253_v30  ;;  %v870_v35 = vadd.f32 %v866_v55, %v862_v21  ;;  %v5919_v21 = vld [vmem:[#allocation87_spill] sm:$0xff] }
 0x15f   : > { %v786_v34 = vadd.f32 %v782_v23, %v742_v42  ;;  %v906_v18 = vmul.f32 %v3981_v16, %v5909_v25  ;;  %v4011_v12 = vld [vmem:[%s5371_s3 + $0x1a8] sm:$0xff]  ;;  %v950_v23 = vmul.f32 %v3991_v11, %v5915_v54  ;;  %v1753_v31 = vadd.f32 %v1749_v26, %v1709_v39  ;;  %v5916_v42 = vld [vmem:[#allocation44_spill] sm:$0xff]  ;;  %v5917_v16 = vld [vmem:[#allocation97_spill] sm:$0xff] }
 0x160   : > { %5911 = vst [vmem:[#allocation85_spill] sm:$0xff] %v4011_v12  ;;  %v4016_v49 = vld [vmem:[%s5372_s4 + $0x1a8] sm:$0xff]  ;;  %v954_v4 = vmul.f32 %v4002_v33, %v5916_v42  ;;  %v1341_v19 = vadd.f32 %v1337_v63, %v1297_v28  ;;  %v1553_v22 = vmul.f32 %v5918_v32, %v5917_v16  ;;  %v998_v6 = vmul.f32 %v4011_v12, %v5862_v1  ;;  %v5920_v55 = vld [vmem:[#allocation115_spill] sm:$0xff] }
 0x161   : > { %5912 = vst [vmem:[#allocation86_spill] sm:$0xff] %v4016_v49  ;;  %v5913_v0 = vld [vmem:[#allocation82_spill] sm:$0xff]  ;;  %v830_v37 = vadd.f32 %v826_v29, %v786_v34  ;;  %v994_v56 = vmul.f32 %v4016_v49, %v5860_v7  ;;  %v1797_v63 = vadd.f32 %v1793_v44, %v1753_v31  ;;  %v1592_v29 = vmul.f32 %v5920_v55, %v5919_v21  ;;  %v5930_v21 = vld [vmem:[#allocation56_spill] sm:$0xff] }
 0x162   : > { %v4022_v3 = vmul.f32 %v5914_v5, %v5913_v0  ;;  %v4037_v30 = vld [vmem:[%s5371_s3 + $0x1c8] sm:$0xff]  ;;  %v914_v34 = vadd.f32 %v910_v20, %v906_v18  ;;  %v1385_v28 = vadd.f32 %v1381_v36, %v1341_v19  ;;  %v4055_v12 = vmul.f32 %v3825_v38, %v5858_v47  ;;  %v5929_v47 = vld [vmem:[#allocation40_spill] sm:$0xff] }
 0x163   : > { %v4042_v26 = vld [vmem:[%s5372_s4 + $0x1c8] sm:$0xff]  ;;  %v874_v39 = vadd.f32 %v870_v35, %v830_v37  ;;  %v4059_v44 = vmul.f32 %v3830_v27, %v5859_v59  ;;  %2265 = vmatmul.msk.f32.vlgmr.msra.gmra.mxu2 %vm1805_vm1, %v1797_v63  ;;  %v958_v27 = vadd.f32 %v954_v4, %v950_v23  ;;  %v5928_v37 = vld [vmem:[#allocation39_spill] sm:$0xff]  ;;  %v1002_v59 = vadd.f32 %v998_v6, %v994_v56  ;;  %v5931_v63 = vld [vmem:[#allocation53_spill] sm:$0xff] }
 0x164   : > { %v4049_v32 = vld [vmem:[%s5372_s4 + $0x1e8] sm:$0xff]  ;;  %v1042_v35 = vmul.f32 %v4037_v30, %v5928_v37  ;;  %v1429_v19 = vadd.f32 %v1425_v2, %v1385_v28  ;;  %v1557_v55 = vsub.f32 %v4022_v3, %v1553_v22  ;;  %v5932_v4 = vld [vmem:[#allocation68_spill] sm:$0xff]  ;;  %v5934_v56 = vld [vmem:[#allocation89_spill] sm:$0xff] }
 0x165   : > { %5921 = vst [vmem:[#allocation91_spill] sm:$0xff] %v4049_v32  ;;  %v5922_v5 = vld [vmem:[#allocation98_spill] sm:$0xff]  ;;  %v918_v38 = vadd.f32 %v914_v34, %v874_v39  ;;  %v1680_v6 = vmul.f32 %v3862_v60, %v5934_v56  ;;  %v5935_v34 = vld [vmem:[#allocation109_spill] sm:$0xff] }
 0x166   : > { %v5923_v49 = vld [vmem:[#allocation114_spill] sm:$0xff]  ;;  %v1473_v3 = vadd.f32 %v1469_v40, %v1429_v19  ;;  %v5943_v19 = vld [vmem:[#allocation93_spill] sm:$0xff] }
 0x167   : > { %v1597_v1 = vmul.f32 %v5923_v49, %v5922_v5  ;;  %v4064_v18 = vld [vmem:[%s5371_s3 + $0x1e8] sm:$0xff]  ;;  %v5927_v49 = vld [vmem:[#allocation19_spill] sm:$0xff]  ;;  %v1082_v5 = vmul.f32 %v4049_v32, %v5929_v47  ;;  %v962_v7 = vadd.f32 %v958_v27, %v918_v38 }
 0x168   : > { %5924 = vst [vmem:[#allocation92_spill] sm:$0xff] %v4064_v18  ;;  %v4069_v36 = vld [vmem:[%s5371_s3 + $0x208] sm:$0xff]  ;;  %v1038_v31 = vmul.f32 %v4042_v26, %v5927_v49  ;;  %v1086_v11 = vmul.f32 %v4064_v18, %v5930_v21 }
 0x169   : > { %5925 = vst [vmem:[#allocation94_spill] sm:$0xff] %v4069_v36  ;;  %v4074_v20 = vld [vmem:[%s5372_s4 + $0x208] sm:$0xff]  ;;  %v1130_v39 = vmul.f32 %v4069_v36, %v5932_v4  ;;  %v1601_v22 = vsub.f32 %v1592_v29, %v1597_v1  ;;  %v1006_v21 = vadd.f32 %v1002_v59, %v962_v7  ;;  %v4125_v59 = vmul.f32 %v3890_v14, %v5943_v19  ;;  %v5944_v7 = vld [vmem:[#allocation111_spill] sm:$0xff] }
 0x16a   : > { %5926 = vst [vmem:[#allocation95_spill] sm:$0xff] %v4074_v20  ;;  %v1126_v23 = vmul.f32 %v4074_v20, %v5931_v63  ;;  %v4093_v2 = vld [vmem:[%s5372_s4 + $0x228] sm:$0xff]  ;;  %v5937_v20 = vld [vmem:[#allocation77_spill] sm:$0xff]  ;;  %v5939_v63 = vld [vmem:[#allocation75_spill] sm:$0xff]  ;;  %v1046_v40 = vadd.f32 %v1042_v35, %v1038_v31 }
 0x16b   : > { %5933 = vst [vmem:[#allocation100_spill] sm:$0xff] %v4093_v2  ;;  %v5936_v28 = vld [vmem:[#allocation74_spill] sm:$0xff]  ;;  %v1724_v4 = vmul.f32 %v5937_v20, %v5877_v48  ;;  %v1517_v20 = vadd.f32 %v1513_v50, %v1473_v3  ;;  %v1090_v3 = vadd.f32 %v1086_v11, %v1082_v5 }
 0x16c   : > { %v1685_v38 = vmul.f32 %v5936_v28, %v5935_v34  ;;  %v4102_v27 = vld [vmem:[%s5371_s3 + $0x228] sm:$0xff]  ;;  %v1050_v50 = vadd.f32 %v1046_v40, %v1006_v21  ;;  %v5950_v21 = vld [vmem:[#allocation63_spill] sm:$0xff] }
 0x16d   : > { %v5938_v36 = vld [vmem:[#allocation110_spill] sm:$0xff]  ;;  %v1561_v19 = vadd.f32 %v1557_v55, %v1517_v20  ;;  %v5953_v40 = vld [vmem:[#allocation71_spill] sm:$0xff] }
 0x16e   : > { %v1729_v32 = vmul.f32 %v5939_v63, %v5938_v36  ;;  %v4111_v1 = vld [vmem:[%s5371_s3 + $0x248] sm:$0xff]  ;;  %v1094_v55 = vadd.f32 %v1090_v3, %v1050_v50 }
 0x16f   : > { %5940 = vst [vmem:[#allocation101_spill] sm:$0xff] %v4111_v1  ;;  %v4116_v60 = vld [vmem:[%s5372_s4 + $0x248] sm:$0xff]  ;;  %v1218_v11 = vmul.f32 %v4111_v1, %v5883_v17  ;;  %v1645_v1 = vsub.f32 %v4055_v12, %v4059_v44 }
 0x170   : > { %5941 = vst [vmem:[#allocation102_spill] sm:$0xff] %v4116_v60  ;;  %v4121_v29 = vld [vmem:[%s5372_s4 + $0x268] sm:$0xff] }
 0x171   : > { %5942 = vst [vmem:[#allocation103_spill] sm:$0xff] %v4121_v29  ;;  %v5945_v31 = vld [vmem:[#allocation78_spill] sm:$0xff]  ;;  %v1258_v5 = vmul.f32 %v4121_v29, %v5950_v21  ;;  %v1605_v21 = vadd.f32 %v1601_v22, %v1561_v19  ;;  %v1689_v19 = vsub.f32 %v1680_v6, %v1685_v38 }
 0x172   : > { %v1773_v35 = vmul.f32 %v5945_v31, %v5944_v7  ;;  %v5946_v63 = vld [vmem:[#allocation58_spill] sm:$0xff]  ;;  %v1134_v31 = vadd.f32 %v1130_v39, %v1126_v23 }
 0x173   : > { %v1170_v28 = vmul.f32 %v4093_v2, %v5946_v63  ;;  %v4134_v36 = vld [vmem:[%s5371_s3 + $0x268] sm:$0xff]  ;;  %v1174_v2 = vmul.f32 %v4102_v27, %v5879_v13  ;;  %v1649_v44 = vadd.f32 %v1645_v1, %v1605_v21 }
 0x174   : > { %v4139_v48 = vld [vmem:[%s5371_s3 + $0x288] sm:$0xff]  ;;  %v1262_v20 = vmul.f32 %v4134_v36, %v5953_v40  ;;  %v1138_v50 = vadd.f32 %v1134_v31, %v1094_v55  ;;  %v1733_v31 = vsub.f32 %v1724_v4, %v1729_v32 }
 0x175   : > { %v4144_v14 = vld [vmem:[%s5372_s4 + $0x288] sm:$0xff]  ;;  %v1306_v29 = vmul.f32 %v4139_v48, %v5890_v45  ;;  %v1178_v3 = vadd.f32 %v1174_v2, %v1170_v28  ;;  %v1777_v2 = vsub.f32 %v4125_v59, %v1773_v35  ;;  %v5958_v59 = vld [vmem:[#allocation12_spill] sm:$0xff] }
 0x176   : > { %5947 = vst [vmem:[#allocation104_spill] sm:$0xff] %v4144_v14  ;;  %v4151_v63 = vld [vmem:[%s5371_s3 + $0x2a8] sm:$0xff] }
 0x177   : > { %v4156_v7 = vld [vmem:[%s5372_s4 + $0x2a8] sm:$0xff]  ;;  %v1350_v13 = vmul.f32 %v4151_v63, %v5892_v51  ;;  %v1182_v55 = vadd.f32 %v1178_v3, %v1138_v50  ;;  %v5963_v50 = vld [vmem:[#allocation23_spill] sm:$0xff] }
 0x178   : > { %5948 = vst [vmem:[#allocation105_spill] sm:$0xff] %v4156_v7  ;;  %v5949_v34 = vld [vmem:[#allocation62_spill] sm:$0xff] }
 0x179   : > { %v1214_v18 = vmul.f32 %v4116_v60, %v5949_v34  ;;  %v4167_v23 = vld [vmem:[%s5371_s3 + $0x2c8] sm:$0xff]  ;;  %v5954_v60 = vld [vmem:[#allocation64_spill] sm:$0xff]  ;;  %v1346_v34 = vmul.f32 %v4156_v7, %v3488_v9  ;;  %v1693_v7 = vadd.f32 %v1689_v19, %v1649_v44 }
 0x17a   : > { %5951 = vst [vmem:[#allocation106_spill] sm:$0xff] %v4167_v23  ;;  %v4172_v39 = vld [vmem:[%s5372_s4 + $0x2c8] sm:$0xff]  ;;  %v1302_v17 = vmul.f32 %v4144_v14, %v5954_v60  ;;  %v1394_v14 = vmul.f32 %v4167_v23, %v5894_v57  ;;  %v1266_v57 = vadd.f32 %v1262_v20, %v1258_v5  ;;  %v5960_v20 = vld [vmem:[#allocation8_spill] sm:$0xff] }
 0x17b   : > { %5952 = vst [vmem:[#allocation67_spill] sm:$0xff] %v4172_v39  ;;  %v1390_v40 = vmul.f32 %v4172_v39, %v3490_v53  ;;  %v4193_v22 = vld [vmem:[%s5371_s3 + $0x2e8] sm:$0xff]  ;;  %v1222_v39 = vadd.f32 %v1218_v11, %v1214_v18  ;;  %v1354_v1 = vadd.f32 %v1350_v13, %v1346_v34  ;;  %v5956_v34 = vld [vmem:[#allocation32_spill] sm:$0xff]  ;;  %v1737_v21 = vadd.f32 %v1733_v31, %v1693_v7  ;;  %v5965_v31 = vld [vmem:[#allocation59_spill] sm:$0xff] }
 0x17c   : > { %v4198_v12 = vld [vmem:[%s5372_s4 + $0x2e8] sm:$0xff]  ;;  %v1310_v23 = vadd.f32 %v1306_v29, %v1302_v17  ;;  %v1438_v4 = vmul.f32 %v4193_v22, %v5898_v43 }
 0x17d   : > { %v4204_v28 = vld [vmem:[%s5372_s4 + $0x308] sm:$0xff]  ;;  %v1434_v32 = vmul.f32 %v4198_v12, %v5896_v24  ;;  %v1226_v18 = vadd.f32 %v1222_v39, %v1182_v55  ;;  %v1398_v17 = vadd.f32 %v1394_v14, %v1390_v40  ;;  %v5962_v40 = vld [vmem:[#allocation51_spill] sm:$0xff] }
 0x17e   : > { %v4209_v53 = vld [vmem:[%s5371_s3 + $0x308] sm:$0xff]  ;;  %v1478_v38 = vmul.f32 %v4204_v28, %v3547_v10  ;;  %v810_v3 = vsub.f32 %v5963_v50, %v5962_v40 }
 0x17f   : > { %v4218_v6 = vld [vmem:[%s5372_s4 + $0x328] sm:$0xff]  ;;  %v1482_v5 = vmul.f32 %v4209_v53, %v3617_v41  ;;  %v1270_v44 = vadd.f32 %v1266_v57, %v1226_v18  ;;  %v845_v57 = vmul.f32 %v3953_v58, %v3353_v46  ;;  %v1781_v18 = vadd.f32 %v1777_v2, %v1737_v21  ;;  %v5970_v58 = vld [vmem:[#allocation83_spill] sm:$0xff] }
 0x180   : > { %5955 = vst [vmem:[#allocation107_spill] sm:$0xff] %v4218_v6  ;;  %v4225_v13 = vld [vmem:[%s5371_s3 + $0x328] sm:$0xff]  ;;  %v1522_v19 = vmul.f32 %v4218_v6, %v3549_v62 }
 0x181   : > { %v5957_v29 = vld [vmem:[#allocation54_spill] sm:$0xff]  ;;  %v1314_v40 = vadd.f32 %v1310_v23, %v1270_v44  ;;  %2269 = vmatmul.msk.f32.vlgmr.msra.gmra.mxu3 %vm1805_vm1, %v1781_v18  ;;  %v1486_v44 = vadd.f32 %v1482_v5, %v1478_v38 }
 0x182   : > { %v5959_v35 = vsub.f32 %v5957_v29, %v5958_v59  ;;  %v5961_v39 = vld [vmem:[#allocation18_spill] sm:$0xff] }
 0x183   : > { %v766_v14 = vsub.f32 %v5961_v39, %v5960_v20  ;;  %v4242_v55 = vld [vmem:[%s5371_s3 + $0x348] sm:$0xff]  ;;  %v1526_v20 = vmul.f32 %v4225_v13, %v3635_v61  ;;  %v850_v39 = vmul.f32 %v3958_v52, %v3437_v15 }
 0x184   : > { %v682_v11 = vadd.f32 %v5959_v35, %v5956_v34  ;;  %v4247_v7 = vld [vmem:[%s5372_s4 + $0x348] sm:$0xff]  ;;  %v5966_v34 = vld [vmem:[#allocation16_spill] sm:$0xff]  ;;  %v1442_v35 = vadd.f32 %v1438_v4, %v1434_v32  ;;  %v1570_v52 = vmul.f32 %v4242_v55, %v5917_v16  ;;  %v933_v4 = vmul.f32 %v4002_v33, %v5915_v54  ;;  %v5975_v54 = vld [vmem:[#allocation17_spill] sm:$0xff] }
 0x185   : > { %5964 = vst [vmem:[#allocation108_spill] sm:$0xff] %v4247_v7  ;;  %v5967_v29 = vsub.f32 %v5965_v31, %v5966_v34  ;;  %v4261_v50 = vld [vmem:[%s5372_s4 + $0x368] sm:$0xff]  ;;  %v5969_v31 = vld [vmem:[#allocation41_spill] sm:$0xff]  ;;  %v1566_v32 = vmul.f32 %v4247_v7, %v5913_v0  ;;  %v854_v18 = vsub.f32 %v845_v57, %v850_v39  ;;  %v5981_v57 = vld [vmem:[#allocation88_spill] sm:$0xff] }
 0x186   : > { %5968 = vst [vmem:[#allocation37_spill] sm:$0xff] %v4261_v50  ;;  %v894_v2 = vmul.f32 %v5970_v58, %v5969_v31  ;;  %v4275_v23 = vld [vmem:[%s5371_s3 + $0x368] sm:$0xff]  ;;  %v1530_v58 = vadd.f32 %v1526_v20, %v1522_v19  ;;  %v5974_v31 = vld [vmem:[#allocation87_spill] sm:$0xff] }
 0x187   : > { %v726_v59 = vadd.f32 %v5967_v29, %v682_v11  ;;  %v889_v11 = vmul.f32 %v3976_v8, %v5909_v25  ;;  %v5971_v8 = vld [vmem:[#allocation84_spill] sm:$0xff]  ;;  %v4284_v34 = vld [vmem:[%s5371_s3 + $0x388] sm:$0xff]  ;;  %v1610_v33 = vmul.f32 %v4261_v50, %v5974_v31  ;;  %v1574_v19 = vadd.f32 %v1570_v52, %v1566_v32  ;;  %v5982_v39 = vld [vmem:[#allocation99_spill] sm:$0xff] }
 0x188   : > { %v938_v21 = vmul.f32 %v5971_v8, %v5916_v42  ;;  %5972 = vst [vmem:[#allocation6_spill] sm:$0xff] %v4284_v34  ;;  %v4289_v29 = vld [vmem:[%s5372_s4 + $0x388] sm:$0xff]  ;;  %v5976_v8 = vld [vmem:[#allocation85_spill] sm:$0xff]  ;;  %v1021_v32 = vmul.f32 %v4037_v30, %v5927_v49  ;;  %v6000_v50 = vld [vmem:[#allocation100_spill] sm:$0xff] }
 0x189   : > { %v770_v6 = vadd.f32 %v766_v14, %v726_v59  ;;  %v1358_v14 = vadd.f32 %v1354_v1, %v1314_v40  ;;  %5973 = vst [vmem:[#allocation47_spill] sm:$0xff] %v4289_v29  ;;  %v977_v1 = vmul.f32 %v5976_v8, %v5975_v54  ;;  %v5977_v38 = vld [vmem:[#allocation38_spill] sm:$0xff]  ;;  %v1654_v20 = vmul.f32 %v4289_v29, %v5981_v57 }
 0x18a   : > { %v5978_v5 = vld [vmem:[#allocation86_spill] sm:$0xff]  ;;  %v1658_v8 = vmul.f32 %v4284_v34, %v5982_v39  ;;  %v942_v54 = vsub.f32 %v933_v4, %v938_v21  ;;  %v5985_v4 = vld [vmem:[#allocation92_spill] sm:$0xff] }
 0x18b   : > { %v814_v59 = vadd.f32 %v810_v3, %v770_v6  ;;  %v982_v40 = vmul.f32 %v5978_v5, %v5977_v38  ;;  %v1402_v42 = vadd.f32 %v1398_v17, %v1358_v14  ;;  %v5979_v25 = vld [vmem:[#allocation98_spill] sm:$0xff]  ;;  %v898_v3 = vsub.f32 %v889_v11, %v894_v2 }
 0x18c   : > { %v1614_v7 = vmul.f32 %v4275_v23, %v5979_v25  ;;  %v4302_v16 = vld [vmem:[%s5372_s4 + $0x3a8] sm:$0xff]  ;;  %v1065_v21 = vmul.f32 %v5985_v4, %v5929_v47  ;;  %v5992_v4 = vld [vmem:[#allocation95_spill] sm:$0xff]  ;;  %v1662_v34 = vadd.f32 %v1658_v8, %v1654_v20  ;;  %v6002_v8 = vld [vmem:[#allocation101_spill] sm:$0xff] }
 0x18d   : > { %5980 = vst [vmem:[#allocation50_spill] sm:$0xff] %v4302_v16  ;;  %v858_v6 = vadd.f32 %v854_v18, %v814_v59  ;;  %v1446_v5 = vadd.f32 %v1442_v35, %v1402_v42  ;;  %v4311_v17 = vld [vmem:[%s5371_s3 + $0x3a8] sm:$0xff]  ;;  %v1026_v42 = vmul.f32 %v4042_v26, %v5928_v37  ;;  %v1698_v35 = vmul.f32 %v4302_v16, %v5934_v56  ;;  %v5986_v59 = vld [vmem:[#allocation56_spill] sm:$0xff]  ;;  %v5987_v18 = vld [vmem:[#allocation91_spill] sm:$0xff] }
 0x18e   : > { %5983 = vst [vmem:[#allocation22_spill] sm:$0xff] %v4311_v17  ;;  %v4316_v14 = vld [vmem:[%s5371_s3 + $0x3c8] sm:$0xff]  ;;  %v986_v52 = vsub.f32 %v977_v1, %v982_v40  ;;  %v1070_v38 = vmul.f32 %v5987_v18, %v5986_v59  ;;  %v5991_v16 = vld [vmem:[#allocation68_spill] sm:$0xff]  ;;  %v1618_v37 = vadd.f32 %v1614_v7, %v1610_v33  ;;  %v5993_v18 = vld [vmem:[#allocation109_spill] sm:$0xff] }
 0x18f   : > { %v4321_v11 = vld [vmem:[%s5372_s4 + $0x3c8] sm:$0xff]  ;;  %v902_v2 = vadd.f32 %v898_v3, %v858_v6  ;;  %v1490_v29 = vadd.f32 %v1486_v44, %v1446_v5  ;;  %v5989_v3 = vld [vmem:[#allocation53_spill] sm:$0xff]  ;;  %v1114_v47 = vmul.f32 %v5992_v4, %v5991_v16  ;;  %v1702_v44 = vmul.f32 %v4311_v17, %v5993_v18 }
 0x190   : > { %5984 = vst [vmem:[#allocation21_spill] sm:$0xff] %v4321_v11  ;;  %v4336_v6 = vld [vmem:[%s5371_s3 + $0x3e8] sm:$0xff]  ;;  %v1074_v7 = vsub.f32 %v1065_v21, %v1070_v38  ;;  %v6005_v38 = vld [vmem:[#allocation63_spill] sm:$0xff] }
 0x191   : > { %v4341_v30 = vld [vmem:[%s5372_s4 + $0x3e8] sm:$0xff]  ;;  %v946_v26 = vadd.f32 %v942_v54, %v902_v2  ;;  %v1534_v39 = vadd.f32 %v1530_v58, %v1490_v29  ;;  %v1030_v54 = vsub.f32 %v1021_v32, %v1026_v42  ;;  %v5996_v2 = vld [vmem:[#allocation93_spill] sm:$0xff]  ;;  %v1706_v29 = vadd.f32 %v1702_v44, %v1698_v35 }
 0x192   : > { %5988 = vst [vmem:[#allocation48_spill] sm:$0xff] %v4341_v30  ;;  %v5990_v1 = vld [vmem:[#allocation94_spill] sm:$0xff]  ;;  %v1241_v21 = vmul.f32 %v4134_v36, %v6005_v38  ;;  %v6009_v35 = vld [vmem:[#allocation105_spill] sm:$0xff] }
 0x193   : > { %v1109_v40 = vmul.f32 %v5990_v1, %v5989_v3  ;;  %v5994_v5 = vld [vmem:[#allocation90_spill] sm:$0xff]  ;;  %v990_v57 = vadd.f32 %v986_v52, %v946_v26  ;;  %v1786_v1 = vmul.f32 %v4341_v30, %v5996_v2  ;;  %v5997_v3 = vld [vmem:[#allocation111_spill] sm:$0xff]  ;;  %v1578_v16 = vadd.f32 %v1574_v19, %v1534_v39 }
 0x194   : > { %v1742_v59 = vmul.f32 %v4321_v11, %v5994_v5  ;;  %v5995_v49 = vld [vmem:[#allocation110_spill] sm:$0xff]  ;;  %v1790_v4 = vmul.f32 %v4336_v6, %v5997_v3  ;;  %v5999_v5 = vld [vmem:[#allocation69_spill] sm:$0xff]  ;;  %v6007_v19 = vld [vmem:[#allocation103_spill] sm:$0xff]  ;;  %v1329_v39 = vmul.f32 %v4151_v63, %v3488_v9  ;;  %v4387_v63 = vmul.f32 %v4198_v12, %v5898_v43 }
 0x195   : > { %v1746_v56 = vmul.f32 %v4316_v14, %v5995_v49  ;;  %v5998_v33 = vld [vmem:[#allocation58_spill] sm:$0xff]  ;;  %v1034_v17 = vadd.f32 %v1030_v54, %v990_v57  ;;  %v1118_v11 = vsub.f32 %v1109_v40, %v1114_v47  ;;  %v1158_v49 = vmul.f32 %v6000_v50, %v5999_v5  ;;  %v6008_v50 = vld [vmem:[#allocation104_spill] sm:$0xff]  ;;  %v4405_v12 = vld [vmem:[%s5371_s3 + $0x150] sm:$0xff] }
 0x196   : > { %v1153_v18 = vmul.f32 %v4102_v27, %v5998_v33  ;;  %v6001_v20 = vld [vmem:[#allocation62_spill] sm:$0xff]  ;;  %v1622_v30 = vadd.f32 %v1618_v37, %v1578_v16  ;;  %v6006_v27 = vld [vmem:[#allocation71_spill] sm:$0xff]  ;;  %v1285_v47 = vmul.f32 %v4139_v48, %v5954_v60  ;;  %v1794_v37 = vadd.f32 %v1790_v4, %v1786_v1 }
 0x197   : > { %v1750_v58 = vadd.f32 %v1746_v56, %v1742_v59  ;;  %v1197_v32 = vmul.f32 %v6002_v8, %v6001_v20  ;;  %v6003_v42 = vld [vmem:[#allocation70_spill] sm:$0xff]  ;;  %v1078_v3 = vadd.f32 %v1074_v7, %v1034_v17  ;;  %v1246_v57 = vmul.f32 %v6007_v19, %v6006_v27  ;;  %v6012_v7 = vld [vmem:[#allocation76_spill] sm:$0xff]  ;;  %v6013_v8 = vld [vmem:[#allocation67_spill] sm:$0xff] }
 0x198   : > { %v6004_v52 = vld [vmem:[#allocation102_spill] sm:$0xff]  ;;  %v1290_v56 = vmul.f32 %v6008_v50, %v5890_v45  ;;  %v1334_v59 = vmul.f32 %v6009_v35, %v5892_v51  ;;  %v1666_v16 = vadd.f32 %v1662_v34, %v1622_v30  ;;  %v1162_v40 = vsub.f32 %v1153_v18, %v1158_v49  ;;  %v4392_v49 = vld [vmem:[%s5372_s4 + $0x150] sm:$0xff] }
 0x199   : > { %v1202_v26 = vmul.f32 %v6004_v52, %v6003_v42  ;;  %v1122_v17 = vadd.f32 %v1118_v11, %v1078_v3  ;;  %v6010_v36 = vld [vmem:[#allocation66_spill] sm:$0xff]  ;;  %v1378_v52 = vmul.f32 %v6013_v8, %v6012_v7  ;;  %v4383_v48 = vmul.f32 %v4193_v22, %v5896_v24 }
 0x19a   : > { %v6011_v44 = vld [vmem:[#allocation106_spill] sm:$0xff]  ;;  %v1710_v19 = vadd.f32 %v1706_v29, %v1666_v16  ;;  %v1250_v30 = vsub.f32 %v1241_v21, %v1246_v57  ;;  %v1294_v11 = vsub.f32 %v1285_v47, %v1290_v56  ;;  %v1338_v3 = vsub.f32 %v1329_v39, %v1334_v59  ;;  %v6014_v29 = vld [vmem:[#allocation9_spill] sm:$0xff]  ;;  %v6018_v39 = vld [vmem:[#allocation31_spill] sm:$0xff] }
 0x19b   : > { %v1373_v54 = vmul.f32 %v6011_v44, %v6010_v36  ;;  %v1166_v50 = vadd.f32 %v1162_v40, %v1122_v17  ;;  %v1206_v34 = vsub.f32 %v1197_v32, %v1202_v26  ;;  %v4396_v18 = vmul.f32 %v4209_v53, %v3547_v10  ;;  %v6015_v32 = vld [vmem:[#allocation30_spill] sm:$0xff]  ;;  %v6016_v21 = vld [vmem:[#allocation13_spill] sm:$0xff]  ;;  %v4425_v16 = vld [vmem:[%s5372_s4 + $0x170] sm:$0xff] }
 0x19c   : > { %v4400_v22 = vmul.f32 %v4204_v28, %v3617_v41  ;;  %v1754_v1 = vadd.f32 %v1750_v58, %v1710_v19  ;;  %v699_v26 = vadd.f32 %v6015_v32, %v6014_v29  ;;  %v6017_v57 = vld [vmem:[#allocation45_spill] sm:$0xff]  ;;  %v1426_v53 = vsub.f32 %v4383_v48, %v4387_v63  ;;  %v4420_v58 = vld [vmem:[%s5371_s3 + $0x170] sm:$0xff]  ;;  %6020 = vst [vmem:[#allocation112_spill] sm:$0xff] %v4425_v16  ;;  %v6021_v44 = vld [vmem:[#allocation10_spill] sm:$0xff] }
 0x19d   : > { %v1210_v4 = vadd.f32 %v1206_v34, %v1166_v50  ;;  %v783_v47 = vadd.f32 %v6017_v57, %v6016_v21  ;;  %v1382_v56 = vsub.f32 %v1373_v54, %v1378_v52  ;;  %v6019_v28 = vld [vmem:[#allocation49_spill] sm:$0xff]  ;;  %v863_v59 = vmul.f32 %v4392_v49, %v3353_v46  ;;  %v4433_v52 = vld [vmem:[%s5371_s3 + $0x190] sm:$0xff]  ;;  %v6027_v32 = vld [vmem:[#allocation42_spill] sm:$0xff] }
 0x19e   : > { %v827_v35 = vadd.f32 %v6019_v28, %v6018_v39  ;;  %v1798_v17 = vadd.f32 %v1794_v37, %v1754_v1  ;;  %v743_v54 = vadd.f32 %v6021_v44, %v699_v26  ;;  %v867_v8 = vmul.f32 %v4405_v12, %v3437_v15  ;;  %6022 = vst [vmem:[#allocation113_spill] sm:$0xff] %v4433_v52  ;;  %v4438_v48 = vld [vmem:[%s5372_s4 + $0x190] sm:$0xff]  ;;  %v6025_v34 = vld [vmem:[#allocation97_spill] sm:$0xff] }
 0x19f   : > { %v1254_v40 = vadd.f32 %v1250_v30, %v1210_v4  ;;  %6023 = vst [vmem:[#allocation115_spill] sm:$0xff] %v4438_v48  ;;  %v1505_v63 = vmul.f32 %v4225_v13, %v3549_v62  ;;  %v6024_v37 = vld [vmem:[#allocation107_spill] sm:$0xff]  ;;  %v4446_v50 = vmul.f32 %v4242_v55, %v5913_v0  ;;  %v6026_v30 = vld [vmem:[#allocation108_spill] sm:$0xff]  ;;  %v907_v26 = vmul.f32 %v4425_v16, %v6027_v32  ;;  %v6028_v21 = vld [vmem:[#allocation41_spill] sm:$0xff] }
 0x1a0   : > { %v1510_v19 = vmul.f32 %v6024_v37, %v3635_v61  ;;  %v4450_v1 = vmul.f32 %v6026_v30, %v6025_v34  ;;  %2266 = vmatmul.msk.f32.gmra.mxu2 %vm1805_vm1, %v1798_v17  ;;  %v787_v29 = vadd.f32 %v783_v47, %v743_v54  ;;  %v911_v13 = vmul.f32 %v4420_v58, %v6028_v21  ;;  %v4460_v57 = vld [vmem:[%s5372_s4 + $0x1b0] sm:$0xff]  ;;  %v6030_v39 = vld [vmem:[#allocation37_spill] sm:$0xff]  ;;  %v6032_v17 = vld [vmem:[#allocation44_spill] sm:$0xff] }
 0x1a1   : > { %v1298_v4 = vadd.f32 %v1294_v11, %v1254_v40  ;;  %6029 = vst [vmem:[#allocation114_spill] sm:$0xff] %v4460_v57  ;;  %v4464_v55 = vmul.f32 %v4275_v23, %v5974_v31  ;;  %v4468_v28 = vmul.f32 %v6030_v39, %v5979_v25  ;;  %v6031_v11 = vld [vmem:[#allocation43_spill] sm:$0xff]  ;;  %v955_v40 = vmul.f32 %v4433_v52, %v6032_v17  ;;  %v6034_v39 = vld [vmem:[#allocation88_spill] sm:$0xff]  ;;  %v6035_v25 = vld [vmem:[#allocation6_spill] sm:$0xff] }
 0x1a2   : > { %v951_v47 = vmul.f32 %v4438_v48, %v6031_v11  ;;  %v4477_v44 = vld [vmem:[%s5371_s3 + $0x1b0] sm:$0xff]  ;;  %v1470_v23 = vsub.f32 %v4396_v18, %v4400_v22  ;;  %v831_v37 = vadd.f32 %v827_v35, %v787_v29  ;;  %v871_v30 = vadd.f32 %v867_v8, %v863_v59  ;;  %v6038_v17 = vld [vmem:[#allocation17_spill] sm:$0xff]  ;;  %v6040_v8 = vld [vmem:[#allocation38_spill] sm:$0xff] }
 0x1a3   : > { %6033 = vst [vmem:[#allocation74_spill] sm:$0xff] %v4477_v44  ;;  %v1342_v54 = vadd.f32 %v1338_v3, %v1298_v4  ;;  %v1514_v31 = vsub.f32 %v1505_v63, %v1510_v19  ;;  %v4483_v34 = vmul.f32 %v6035_v25, %v6034_v39  ;;  %v6036_v48 = vld [vmem:[#allocation99_spill] sm:$0xff]  ;;  %v995_v52 = vmul.f32 %v4460_v57, %v6038_v17  ;;  %v6048_v17 = vld [vmem:[#allocation40_spill] sm:$0xff] }
 0x1a4   : > { %v6037_v11 = vld [vmem:[#allocation47_spill] sm:$0xff]  ;;  %v875_v35 = vadd.f32 %v871_v30, %v831_v37  ;;  %v915_v59 = vadd.f32 %v911_v13, %v907_v26  ;;  %v999_v63 = vmul.f32 %v4477_v44, %v6040_v8  ;;  %v1602_v26 = vsub.f32 %v4464_v55, %v4468_v28  ;;  %v6044_v13 = vld [vmem:[#allocation89_spill] sm:$0xff] }
 0x1a5   : > { %v4487_v0 = vmul.f32 %v6037_v11, %v6036_v48  ;;  %v4494_v3 = vld [vmem:[%s5371_s3 + $0x1d0] sm:$0xff]  ;;  %v1386_v22 = vadd.f32 %v1382_v56, %v1342_v54  ;;  %v1558_v56 = vsub.f32 %v4446_v50, %v4450_v1  ;;  %v6045_v11 = vld [vmem:[#allocation22_spill] sm:$0xff]  ;;  %v959_v37 = vadd.f32 %v955_v40, %v951_v47  ;;  %v6049_v50 = vld [vmem:[#allocation56_spill] sm:$0xff] }
 0x1a6   : > { %v4499_v18 = vld [vmem:[%s5372_s4 + $0x1d0] sm:$0xff]  ;;  %v4529_v54 = vmul.f32 %v6045_v11, %v6044_v13  ;;  %v919_v48 = vadd.f32 %v915_v59, %v875_v35  ;;  %v6050_v55 = vld [vmem:[#allocation53_spill] sm:$0xff]  ;;  %v6051_v11 = vld [vmem:[#allocation68_spill] sm:$0xff]  ;;  %v1003_v13 = vadd.f32 %v999_v63, %v995_v52  ;;  %v4563_v52 = vmul.f32 %v4336_v6, %v5996_v2 }
 0x1a7   : > { %6039 = vst [vmem:[#allocation77_spill] sm:$0xff] %v4499_v18  ;;  %v4504_v25 = vld [vmem:[%s5371_s3 + $0x1f0] sm:$0xff]  ;;  %v1430_v30 = vadd.f32 %v1426_v53, %v1386_v22  ;;  %v6052_v40 = vld [vmem:[#allocation109_spill] sm:$0xff]  ;;  %v6053_v22 = vld [vmem:[#allocation50_spill] sm:$0xff] }
 0x1a8   : > { %v4511_v19 = vld [vmem:[%s5372_s4 + $0x1f0] sm:$0xff]  ;;  %v1087_v1 = vmul.f32 %v4504_v25, %v6049_v50  ;;  %v1686_v35 = vmul.f32 %v6053_v22, %v6052_v40  ;;  %v963_v59 = vadd.f32 %v959_v37, %v919_v48  ;;  %v6057_v22 = vld [vmem:[#allocation21_spill] sm:$0xff] }
 0x1a9   : > { %6041 = vst [vmem:[#allocation75_spill] sm:$0xff] %v4511_v19  ;;  %v4516_v4 = vld [vmem:[%s5371_s3 + $0x210] sm:$0xff]  ;;  %v1083_v16 = vmul.f32 %v4511_v19, %v6048_v17  ;;  %v1474_v53 = vadd.f32 %v1470_v23, %v1430_v30  ;;  %v6056_v30 = vld [vmem:[#allocation110_spill] sm:$0xff] }
 0x1aa   : > { %6042 = vst [vmem:[#allocation78_spill] sm:$0xff] %v4516_v4  ;;  %v4521_v29 = vld [vmem:[%s5372_s4 + $0x210] sm:$0xff]  ;;  %v1131_v47 = vmul.f32 %v4516_v4, %v6051_v11  ;;  %v6055_v11 = vld [vmem:[#allocation90_spill] sm:$0xff]  ;;  %v1730_v48 = vmul.f32 %v6057_v22, %v6056_v30  ;;  %v6059_v22 = vld [vmem:[#allocation48_spill] sm:$0xff]  ;;  %v1007_v2 = vadd.f32 %v1003_v13, %v963_v59 }
 0x1ab   : > { %6043 = vst [vmem:[#allocation32_spill] sm:$0xff] %v4521_v29  ;;  %v6046_v39 = vld [vmem:[#allocation19_spill] sm:$0xff]  ;;  %v1127_v28 = vmul.f32 %v4521_v29, %v6050_v55  ;;  %v1646_v29 = vsub.f32 %v4483_v34, %v4487_v0  ;;  %v1725_v23 = vmul.f32 %v4316_v14, %v6055_v11  ;;  %v1518_v14 = vadd.f32 %v1514_v31, %v1474_v53 }
 0x1ac   : > { %v1039_v57 = vmul.f32 %v4499_v18, %v6046_v39  ;;  %v6047_v8 = vld [vmem:[#allocation39_spill] sm:$0xff]  ;;  %v1091_v53 = vadd.f32 %v1087_v1, %v1083_v16 }
 0x1ad   : > { %v1043_v44 = vmul.f32 %v4494_v3, %v6047_v8  ;;  %v4548_v18 = vld [vmem:[%s5371_s3 + $0x230] sm:$0xff] }
 0x1ae   : > { %v4553_v19 = vld [vmem:[%s5372_s4 + $0x230] sm:$0xff] }
 0x1af   : > { %6054 = vst [vmem:[#allocation54_spill] sm:$0xff] %v4553_v19  ;;  %v4568_v63 = vld [vmem:[%s5371_s3 + $0x250] sm:$0xff]  ;;  %v1047_v30 = vadd.f32 %v1043_v44, %v1039_v57  ;;  %v1171_v57 = vmul.f32 %v4553_v19, %v5998_v33  ;;  %v1175_v44 = vmul.f32 %v4548_v18, %v5999_v5 }
 0x1b0   : > { %v4573_v37 = vld [vmem:[%s5372_s4 + $0x250] sm:$0xff]  ;;  %v1219_v1 = vmul.f32 %v4568_v63, %v6003_v42 }
 0x1b1   : > { %v4578_v0 = vld [vmem:[%s5371_s3 + $0x270] sm:$0xff]  ;;  %v1051_v4 = vadd.f32 %v1047_v30, %v1007_v2  ;;  %v1215_v16 = vmul.f32 %v4573_v37, %v6001_v20 }
 0x1b2   : > { %v6058_v34 = vld [vmem:[#allocation111_spill] sm:$0xff] }
 0x1b3   : > { %v4582_v6 = vmul.f32 %v6059_v22, %v6058_v34  ;;  %v4587_v11 = vld [vmem:[%s5372_s4 + $0x270] sm:$0xff]  ;;  %v1135_v22 = vadd.f32 %v1131_v47, %v1127_v28  ;;  %v1562_v34 = vadd.f32 %v1558_v56, %v1518_v14  ;;  %v1263_v47 = vmul.f32 %v4578_v0, %v6006_v27 }
 0x1b4   : > { %6060 = vst [vmem:[#allocation12_spill] sm:$0xff] %v4587_v11  ;;  %v4592_v40 = vld [vmem:[%s5371_s3 + $0x290] sm:$0xff]  ;;  %v1259_v28 = vmul.f32 %v4587_v11, %v6005_v38  ;;  %v1095_v2 = vadd.f32 %v1091_v53, %v1051_v4  ;;  %v1690_v53 = vsub.f32 %v4529_v54, %v1686_v35 }
 0x1b5   : > { %6061 = vst [vmem:[#allocation8_spill] sm:$0xff] %v4592_v40  ;;  %v4597_v31 = vld [vmem:[%s5372_s4 + $0x290] sm:$0xff]  ;;  %v1307_v5 = vmul.f32 %v4592_v40, %v5890_v45  ;;  %v1606_v56 = vadd.f32 %v1602_v26, %v1562_v34  ;;  %v1179_v40 = vadd.f32 %v1175_v44, %v1171_v57 }
 0x1b6   : > { %6062 = vst [vmem:[#allocation18_spill] sm:$0xff] %v4597_v31  ;;  %v4606_v13 = vld [vmem:[%s5371_s3 + $0x2b0] sm:$0xff]  ;;  %v1303_v19 = vmul.f32 %v4597_v31, %v5954_v60  ;;  %v1139_v45 = vadd.f32 %v1135_v22, %v1095_v2  ;;  %v1223_v60 = vadd.f32 %v1219_v1, %v1215_v16  ;;  %v1267_v35 = vadd.f32 %v1263_v47, %v1259_v28  ;;  %v6071_v1 = vld [vmem:[#allocation28_spill] sm:$0xff]  ;;  %v6074_v2 = vld [vmem:[#allocation46_spill] sm:$0xff] }
 0x1b7   : > { %6063 = vst [vmem:[#allocation51_spill] sm:$0xff] %v4606_v13  ;;  %v4611_v59 = vld [vmem:[%s5372_s4 + $0x2b0] sm:$0xff]  ;;  %v1351_v14 = vmul.f32 %v4606_v13, %v5892_v51  ;;  %v1778_v51 = vsub.f32 %v4563_v52, %v4582_v6 }
 0x1b8   : > { %6064 = vst [vmem:[#allocation23_spill] sm:$0xff] %v4611_v59  ;;  %v1347_v30 = vmul.f32 %v4611_v59, %v3488_v9  ;;  %v4632_v11 = vld [vmem:[%s5371_s3 + $0x2d0] sm:$0xff]  ;;  %v1734_v59 = vsub.f32 %v1725_v23, %v1730_v48  ;;  %v1650_v9 = vadd.f32 %v1646_v29, %v1606_v56  ;;  %v1311_v23 = vadd.f32 %v1307_v5, %v1303_v19  ;;  %v6073_v56 = vld [vmem:[#allocation52_spill] sm:$0xff] }
 0x1b9   : > { %v4637_v31 = vld [vmem:[%s5372_s4 + $0x2d0] sm:$0xff]  ;;  %v1395_v29 = vmul.f32 %v4632_v11, %v6012_v7  ;;  %v1183_v22 = vadd.f32 %v1179_v40, %v1139_v45  ;;  %v6069_v45 = vld [vmem:[#allocation33_spill] sm:$0xff] }
 0x1ba   : > { %v2324_v4 = vld [vmem:[%s5372_s4 + $0x130] sm:$0xff]  ;;  %v1391_v48 = vmul.f32 %v4637_v31, %v6010_v36  ;;  %v1694_v6 = vadd.f32 %v1690_v53, %v1650_v9  ;;  %v1355_v57 = vadd.f32 %v1351_v14, %v1347_v30  ;;  %v767_v30 = vsub.f32 %v6074_v2, %v6073_v56  ;;  %v6084_v2 = vld [vmem:[#allocation82_spill] sm:$0xff] }
 0x1bb   : > { %v6065_v26 = vld [vmem:[#allocation27_spill] sm:$0xff] }
 0x1bc   : > { %v807_v34 = vmul.f32 %v2324_v4, %v6065_v26  ;;  %v4649_v13 = vld [vmem:[%s5372_s4 + $0x2f0] sm:$0xff]  ;;  %v1738_v14 = vadd.f32 %v1734_v59, %v1694_v6  ;;  %v1227_v4 = vadd.f32 %v1223_v60, %v1183_v22  ;;  %v846_v6 = vmul.f32 %v4405_v12, %v3353_v46 }
 0x1bd   : > { %6066 = vst [vmem:[#allocation59_spill] sm:$0xff] %v4649_v13  ;;  %v4654_v27 = vld [vmem:[%s5371_s3 + $0x2f0] sm:$0xff]  ;;  %v1435_v44 = vmul.f32 %v4649_v13, %v5896_v24  ;;  %v1399_v13 = vadd.f32 %v1395_v29, %v1391_v48 }
 0x1be   : > { %v4659_v54 = vld [vmem:[%s5372_s4 + $0x310] sm:$0xff]  ;;  %v1439_v5 = vmul.f32 %v4654_v27, %v5898_v43  ;;  %v1271_v48 = vadd.f32 %v1267_v35, %v1227_v4  ;;  %v6083_v35 = vld [vmem:[#allocation112_spill] sm:$0xff]  ;;  %v6085_v4 = vld [vmem:[#allocation97_spill] sm:$0xff] }
 0x1bf   : > { %6067 = vst [vmem:[#allocation16_spill] sm:$0xff] %v4659_v54  ;;  %v4668_v52 = vld [vmem:[%s5371_s3 + $0x310] sm:$0xff]  ;;  %v1479_v19 = vmul.f32 %v4659_v54, %v3547_v10  ;;  %v6075_v54 = vld [vmem:[#allocation20_spill] sm:$0xff] }
 0x1c0   : > { %v4679_v16 = vld [vmem:[%s5371_s3 + $0x330] sm:$0xff]  ;;  %v1483_v53 = vmul.f32 %v4668_v52, %v3617_v41  ;;  %v811_v10 = vsub.f32 %v6075_v54, %v807_v34  ;;  %v851_v34 = vmul.f32 %v4392_v49, %v3437_v15  ;;  %v1782_v54 = vadd.f32 %v1778_v51, %v1738_v14 }
 0x1c1   : > { %v4684_v9 = vld [vmem:[%s5372_s4 + $0x330] sm:$0xff]  ;;  %v1527_v22 = vmul.f32 %v4679_v16, %v3635_v61  ;;  %v890_v51 = vmul.f32 %v4420_v58, %v6027_v32 }
 0x1c2   : > { %6068 = vst [vmem:[#allocation83_spill] sm:$0xff] %v4684_v9  ;;  %v6070_v40 = vld [vmem:[#allocation55_spill] sm:$0xff]  ;;  %v1523_v29 = vmul.f32 %v4684_v9, %v3549_v62  ;;  %2270 = vmatmul.msk.f32.gmra.mxu3 %vm1805_vm1, %v1782_v54 }
 0x1c3   : > { %v6072_v28 = vsub.f32 %v6070_v40, %v6071_v1  ;;  %v4698_v43 = vld [vmem:[%s5371_s3 + $0x350] sm:$0xff]  ;;  %v6078_v40 = vld [vmem:[#allocation60_spill] sm:$0xff] }
 0x1c4   : > { %6076 = vst [vmem:[#allocation84_spill] sm:$0xff] %v4698_v43  ;;  %v6079_v1 = vld [vmem:[#allocation24_spill] sm:$0xff]  ;;  %v4719_v56 = vld [vmem:[%s5371_s3 + $0x370] sm:$0xff] }
 0x1c5   : > { %v683_v47 = vadd.f32 %v6072_v28, %v6069_v45  ;;  %v4703_v45 = vld [vmem:[%s5372_s4 + $0x350] sm:$0xff]  ;;  %v6080_v59 = vsub.f32 %v6078_v40, %v6079_v1  ;;  %v1443_v28 = vadd.f32 %v1439_v5, %v1435_v44  ;;  %6081 = vst [vmem:[#allocation86_spill] sm:$0xff] %v4719_v56  ;;  %v1315_v44 = vadd.f32 %v1311_v23, %v1271_v48 }
 0x1c6   : > { %6077 = vst [vmem:[#allocation85_spill] sm:$0xff] %v4703_v45  ;;  %v4724_v12 = vld [vmem:[%s5372_s4 + $0x370] sm:$0xff]  ;;  %v1487_v5 = vadd.f32 %v1483_v53, %v1479_v19  ;;  %v1567_v14 = vmul.f32 %v4703_v45, %v6084_v2  ;;  %v1571_v40 = vmul.f32 %v4698_v43, %v6085_v4  ;;  %v6089_v19 = vld [vmem:[#allocation113_spill] sm:$0xff]  ;;  %v1531_v45 = vadd.f32 %v1527_v22, %v1523_v29  ;;  %v6093_v2 = vld [vmem:[#allocation98_spill] sm:$0xff] }
 0x1c7   : > { %v727_v60 = vadd.f32 %v6080_v59, %v683_v47  ;;  %6082 = vst [vmem:[#allocation92_spill] sm:$0xff] %v4724_v12  ;;  %v895_v47 = vmul.f32 %v6083_v35, %v6028_v21  ;;  %v4743_v58 = vld [vmem:[%s5372_s4 + $0x390] sm:$0xff]  ;;  %v855_v59 = vsub.f32 %v846_v6, %v851_v34  ;;  %v1359_v35 = vadd.f32 %v1355_v57, %v1315_v44  ;;  %v6095_v34 = vld [vmem:[#allocation17_spill] sm:$0xff]  ;;  %v6099_v44 = vld [vmem:[#allocation88_spill] sm:$0xff] }
 0x1c8   : > { %6087 = vst [vmem:[#allocation94_spill] sm:$0xff] %v4743_v58  ;;  %v6088_v23 = vld [vmem:[#allocation43_spill] sm:$0xff]  ;;  %v1615_v9 = vmul.f32 %v4719_v56, %v6093_v2  ;;  %v1575_v22 = vadd.f32 %v1571_v40, %v1567_v14  ;;  %v6102_v14 = vld [vmem:[#allocation77_spill] sm:$0xff] }
 0x1c9   : > { %v771_v49 = vadd.f32 %v767_v30, %v727_v60  ;;  %v4738_v30 = vld [vmem:[%s5371_s3 + $0x390] sm:$0xff]  ;;  %v934_v53 = vmul.f32 %v6089_v19, %v6088_v23  ;;  %v6090_v60 = vld [vmem:[#allocation44_spill] sm:$0xff]  ;;  %v899_v6 = vsub.f32 %v890_v51, %v895_v47  ;;  %v6097_v23 = vld [vmem:[#allocation38_spill] sm:$0xff]  ;;  %v1403_v29 = vadd.f32 %v1399_v13, %v1359_v35 }
 0x1ca   : > { %6086 = vst [vmem:[#allocation91_spill] sm:$0xff] %v4738_v30  ;;  %v6091_v54 = vld [vmem:[#allocation115_spill] sm:$0xff]  ;;  %v1022_v13 = vmul.f32 %v4494_v3, %v6046_v39  ;;  %v1027_v40 = vmul.f32 %v6102_v14, %v6047_v8  ;;  %v6103_v35 = vld [vmem:[#allocation89_spill] sm:$0xff]  ;;  %v1066_v3 = vmul.f32 %v4504_v25, %v6048_v17  ;;  %v6107_v14 = vld [vmem:[#allocation78_spill] sm:$0xff] }
 0x1cb   : > { %v815_v1 = vadd.f32 %v811_v10, %v771_v49  ;;  %v939_v48 = vmul.f32 %v6091_v54, %v6090_v60  ;;  %v6092_v4 = vld [vmem:[#allocation87_spill] sm:$0xff]  ;;  %v6096_v49 = vld [vmem:[#allocation74_spill] sm:$0xff]  ;;  %v6109_v8 = vld [vmem:[#allocation32_spill] sm:$0xff] }
 0x1cc   : > { %v1611_v43 = vmul.f32 %v4724_v12, %v6092_v4  ;;  %v4756_v61 = vld [vmem:[%s5372_s4 + $0x3b0] sm:$0xff]  ;;  %v978_v19 = vmul.f32 %v6096_v49, %v6095_v34  ;;  %v6098_v54 = vld [vmem:[#allocation114_spill] sm:$0xff]  ;;  %v1655_v12 = vmul.f32 %v4743_v58, %v6099_v44 }
 0x1cd   : > { %6094 = vst [vmem:[#allocation95_spill] sm:$0xff] %v4756_v61  ;;  %v859_v10 = vadd.f32 %v855_v59, %v815_v1  ;;  %v983_v57 = vmul.f32 %v6098_v54, %v6097_v23  ;;  %v6100_v4 = vld [vmem:[#allocation99_spill] sm:$0xff]  ;;  %v943_v1 = vsub.f32 %v934_v53, %v939_v48  ;;  %v1447_v59 = vadd.f32 %v1443_v28, %v1403_v29  ;;  %v6111_v17 = vld [vmem:[#allocation90_spill] sm:$0xff]  ;;  %v6113_v23 = vld [vmem:[#allocation93_spill] sm:$0xff] }
 0x1ce   : > { %v1659_v2 = vmul.f32 %v4738_v30, %v6100_v4  ;;  %v4769_v56 = vld [vmem:[%s5371_s3 + $0x3b0] sm:$0xff]  ;;  %v1699_v49 = vmul.f32 %v4756_v61, %v6103_v35  ;;  %v1110_v61 = vmul.f32 %v6107_v14, %v6050_v55  ;;  %v6108_v35 = vld [vmem:[#allocation68_spill] sm:$0xff]  ;;  %v1619_v4 = vadd.f32 %v1615_v9, %v1611_v43  ;;  %v6110_v30 = vld [vmem:[#allocation109_spill] sm:$0xff] }
 0x1cf   : > { %v4774_v51 = vld [vmem:[%s5372_s4 + $0x3d0] sm:$0xff]  ;;  %v903_v47 = vadd.f32 %v899_v6, %v859_v10  ;;  %v987_v29 = vsub.f32 %v978_v19, %v983_v57  ;;  %v1115_v39 = vmul.f32 %v6109_v8, %v6108_v35  ;;  %v1491_v58 = vadd.f32 %v1487_v5, %v1447_v59  ;;  %v4816_v8 = vld [vmem:[%s5371_s3 + $0x118] sm:$0xff] }
 0x1d0   : > { %6101 = vst [vmem:[#allocation100_spill] sm:$0xff] %v4774_v51  ;;  %v4785_v54 = vld [vmem:[%s5371_s3 + $0x3d0] sm:$0xff]  ;;  %v1703_v25 = vmul.f32 %v4769_v56, %v6110_v30  ;;  %v1154_v59 = vmul.f32 %v4548_v18, %v5998_v33  ;;  %v4825_v14 = vld [vmem:[%s5371_s3 + $0x138] sm:$0xff]  ;;  %v1242_v18 = vmul.f32 %v4578_v0, %v6005_v38  ;;  %v6124_v33 = vld [vmem:[#allocation18_spill] sm:$0xff] }
 0x1d1   : > { %v4790_v10 = vld [vmem:[%s5372_s4 + $0x3f0] sm:$0xff]  ;;  %v947_v6 = vadd.f32 %v943_v1, %v903_v47  ;;  %v1031_v47 = vsub.f32 %v1022_v13, %v1027_v40  ;;  %6114 = vst [vmem:[#allocation103_spill] sm:$0xff] %v4816_v8  ;;  %v1535_v43 = vadd.f32 %v1531_v45, %v1491_v58  ;;  %v1119_v13 = vsub.f32 %v1110_v61, %v1115_v39  ;;  %v6116_v40 = vld [vmem:[#allocation69_spill] sm:$0xff]  ;;  %v6121_v39 = vld [vmem:[#allocation64_spill] sm:$0xff] }
 0x1d2   : > { %6104 = vst [vmem:[#allocation101_spill] sm:$0xff] %v4790_v10  ;;  %v6105_v53 = vld [vmem:[#allocation75_spill] sm:$0xff]  ;;  %v1787_v19 = vmul.f32 %v4790_v10, %v6113_v23  ;;  %v1198_v45 = vmul.f32 %v4568_v63, %v6001_v20  ;;  %v6120_v23 = vld [vmem:[#allocation26_spill] sm:$0xff] }
 0x1d3   : > { %v1071_v48 = vmul.f32 %v6105_v53, %v6049_v50  ;;  %v4799_v28 = vld [vmem:[%s5371_s3 + $0x3f0] sm:$0xff]  ;;  %v1743_v53 = vmul.f32 %v4774_v51, %v6111_v17  ;;  %v6112_v50 = vld [vmem:[#allocation110_spill] sm:$0xff]  ;;  %v991_v57 = vadd.f32 %v987_v29, %v947_v6  ;;  %v1579_v58 = vadd.f32 %v1575_v22, %v1535_v43 }
 0x1d4   : > { %6106 = vst [vmem:[#allocation102_spill] sm:$0xff] %v4799_v28  ;;  %v1747_v44 = vmul.f32 %v4785_v54, %v6112_v50  ;;  %v6115_v9 = vld [vmem:[#allocation111_spill] sm:$0xff]  ;;  %v6117_v29 = vld [vmem:[#allocation54_spill] sm:$0xff]  ;;  %v824_v22 = vmul.f32 %v4825_v14, %v6065_v26  ;;  %v1663_v43 = vadd.f32 %v1659_v2, %v1655_v12  ;;  %v6127_v50 = vld [vmem:[#allocation73_spill] sm:$0xff]  ;;  %v1379_v2 = vmul.f32 %v4637_v31, %v6012_v7 }
 0x1d5   : > { %v1791_v5 = vmul.f32 %v4799_v28, %v6115_v9  ;;  %v1075_v1 = vsub.f32 %v1066_v3, %v1071_v48  ;;  %v1035_v6 = vadd.f32 %v1031_v47, %v991_v57  ;;  %v1159_v10 = vmul.f32 %v6117_v29, %v6116_v40  ;;  %v6118_v48 = vld [vmem:[#allocation71_spill] sm:$0xff]  ;;  %v6119_v9 = vld [vmem:[#allocation12_spill] sm:$0xff] }
 0x1d6   : > { %v1203_v3 = vmul.f32 %v4573_v37, %v6003_v42  ;;  %v1247_v28 = vmul.f32 %v6119_v9, %v6118_v48  ;;  %v780_v57 = vmul.f32 %v4816_v8, %v6120_v23  ;;  %v6122_v47 = vld [vmem:[#allocation8_spill] sm:$0xff]  ;;  %v1623_v37 = vadd.f32 %v1619_v4, %v1579_v58 }
 0x1d7   : > { %v1079_v61 = vadd.f32 %v1075_v1, %v1035_v6  ;;  %v1286_v29 = vmul.f32 %v6122_v47, %v6121_v39  ;;  %v6123_v40 = vld [vmem:[#allocation72_spill] sm:$0xff]  ;;  %v1707_v42 = vadd.f32 %v1703_v25, %v1699_v49  ;;  %v1751_v0 = vadd.f32 %v1747_v44, %v1743_v53  ;;  %v6125_v1 = vld [vmem:[#allocation65_spill] sm:$0xff]  ;;  %v6126_v6 = vld [vmem:[#allocation51_spill] sm:$0xff] }
 0x1d8   : > { %v1291_v63 = vmul.f32 %v6124_v33, %v6123_v40  ;;  %v1795_v38 = vadd.f32 %v1791_v5, %v1787_v19  ;;  %v1163_v9 = vsub.f32 %v1154_v59, %v1159_v10  ;;  %v1667_v48 = vadd.f32 %v1663_v43, %v1623_v37  ;;  %v6128_v33 = vld [vmem:[#allocation23_spill] sm:$0xff]  ;;  %v4863_v25 = vld [vmem:[%s5371_s3 + $0x158] sm:$0xff]  ;;  %v6133_v19 = vld [vmem:[#allocation14_spill] sm:$0xff] }
 0x1d9   : > { %v1123_v20 = vadd.f32 %v1119_v13, %v1079_v61  ;;  %v1207_v51 = vsub.f32 %v1198_v45, %v1203_v3  ;;  %v1251_v23 = vsub.f32 %v1242_v18, %v1247_v28  ;;  %v1330_v8 = vmul.f32 %v6126_v6, %v6125_v1  ;;  %v6129_v49 = vld [vmem:[#allocation79_spill] sm:$0xff]  ;;  %v6131_v31 = vld [vmem:[#allocation80_spill] sm:$0xff] }
 0x1da   : > { %v1295_v39 = vsub.f32 %v1286_v29, %v1291_v63  ;;  %v1335_v40 = vmul.f32 %v6128_v33, %v6127_v50  ;;  %v1374_v4 = vmul.f32 %v4632_v11, %v6010_v36  ;;  %v1711_v12 = vadd.f32 %v1707_v42, %v1667_v48  ;;  %v6130_v10 = vld [vmem:[#allocation59_spill] sm:$0xff]  ;;  %v4868_v42 = vld [vmem:[%s5372_s4 + $0x158] sm:$0xff]  ;;  %v6136_v48 = vld [vmem:[#allocation34_spill] sm:$0xff] }
 0x1db   : > { %v1167_v47 = vadd.f32 %v1163_v9, %v1123_v20  ;;  %v1418_v44 = vmul.f32 %v4654_v27, %v5896_v24  ;;  %v1423_v28 = vmul.f32 %v6130_v10, %v6129_v49  ;;  %v1888_v20 = vld [vmem:[%s5375_s7] sm:$0xff]  ;;  %v4872_v27 = vmul.f32 %v4668_v52, %v6131_v31  ;;  %v6132_v53 = vld [vmem:[#allocation11_spill] sm:$0xff]  ;;  %v6134_v13 = vld [vmem:[#allocation16_spill] sm:$0xff] }
 0x1dc   : > { %v700_v5 = vadd.f32 %v6133_v19, %v6132_v53  ;;  %v1755_v59 = vadd.f32 %v1751_v0, %v1711_v12  ;;  %v1467_v45 = vmul.f32 %v6134_v13, %v3617_v41  ;;  %v2391_v58 = vmov 0   ;;  %v6135_v3 = vld [vmem:[#allocation15_spill] sm:$0xff]  ;;  %v4888_v52 = vld [vmem:[%s5372_s4 + $0x178] sm:$0xff] }
 0x1dd   : > { %v1211_v11 = vadd.f32 %v1207_v51, %v1167_v47  ;;  %2322 = vset.pattern.permute.xlu0 %v2391_v58  ;;  %v784_v18 = vadd.f32 %v780_v57, %v6135_v3  ;;  %v828_v61 = vadd.f32 %v824_v22, %v6136_v48  ;;  %v4883_v51 = vld [vmem:[%s5371_s3 + $0x178] sm:$0xff]  ;;  %v6137_v63 = vld [vmem:[#allocation35_spill] sm:$0xff]  ;;  %v864_v43 = vmul.f32 %v4868_v42, %v3353_v46  ;;  %v6148_v3 = vld [vmem:[#allocation85_spill] sm:$0xff] }
 0x1de   : > { %1894 = vperm.xlu0 %2322, %v1888_v20   ;;  %v744_v37 = vadd.f32 %v6137_v63, %v700_v5  ;;  %v868_v57 = vmul.f32 %v4863_v25, %v3437_v15  ;;  %v4898_v22 = vld [vmem:[%s5372_s4 + $0x198] sm:$0xff]  ;;  %v1799_v0 = vadd.f32 %v1795_v38, %v1755_v59  ;;  %v1339_v9 = vsub.f32 %v1330_v8, %v1335_v40 }
 0x1df   : > { %v1255_v29 = vadd.f32 %v1251_v23, %v1211_v11  ;;  %6138 = vst [vmem:[#allocation104_spill] sm:$0xff] %v4898_v22  ;;  %v1383_v6 = vsub.f32 %v1374_v4, %v1379_v2  ;;  %v1427_v47 = vsub.f32 %v1418_v44, %v1423_v28  ;;  %v4903_v23 = vld [vmem:[%s5371_s3 + $0x198] sm:$0xff]  ;;  %2323 = vset.pattern.permute.xlu1 %v2391_v58  ;;  %v6142_v2 = vld [vmem:[#allocation83_spill] sm:$0xff]  ;;  %v6147_v58 = vld [vmem:[#allocation97_spill] sm:$0xff] }
 0x1e0   : > { %v788_v12 = vadd.f32 %v784_v18, %v744_v37  ;;  %v908_v10 = vmul.f32 %v4888_v52, %v6027_v32  ;;  %v912_v20 = vmul.f32 %v4883_v51, %v6028_v21  ;;  %v4912_v38 = vld [vmem:[%s5371_s3 + $0x1b8] sm:$0xff]  ;;  %2267 = vmatmul.msk.f32.gmra.mxu2 %vm1805_vm1, %v1799_v0  ;;  %v1471_v40 = vsub.f32 %v4872_v27, %v1467_v45  ;;  %v6143_v28 = vld [vmem:[#allocation43_spill] sm:$0xff]  ;;  %v6145_v27 = vld [vmem:[#allocation82_spill] sm:$0xff] }
 0x1e1   : > { %v1299_v33 = vadd.f32 %v1295_v39, %v1255_v29  ;;  %6139 = vst [vmem:[#allocation105_spill] sm:$0xff] %v4912_v38  ;;  %v4917_v8 = vld [vmem:[%s5372_s4 + $0x1b8] sm:$0xff]  ;;  %v1506_v39 = vmul.f32 %v4679_v16, %v3549_v62  ;;  %v952_v11 = vmul.f32 %v4898_v22, %v6143_v28  ;;  %v872_v5 = vadd.f32 %v868_v57, %v864_v43  ;;  %v6149_v29 = vld [vmem:[#allocation38_spill] sm:$0xff]  ;;  %v6150_v43 = vld [vmem:[#allocation87_spill] sm:$0xff] }
 0x1e2   : > { %6140 = vst [vmem:[#allocation66_spill] sm:$0xff] %v4917_v8  ;;  %v6141_v4 = vld [vmem:[#allocation96_spill] sm:$0xff]  ;;  %v832_v19 = vadd.f32 %v828_v61, %v788_v12  ;;  %v956_v59 = vmul.f32 %v4903_v23, %v6090_v60  ;;  %v1555_v18 = vmul.f32 %v6148_v3, %v6147_v58  ;;  %v996_v48 = vmul.f32 %v4917_v8, %v6095_v34  ;;  %v6151_v57 = vld [vmem:[#allocation86_spill] sm:$0xff] }
 0x1e3   : > { %v1511_v44 = vmul.f32 %v6142_v2, %v6141_v4  ;;  %v1343_v53 = vadd.f32 %v1339_v9, %v1299_v33  ;;  %v4932_v13 = vld [vmem:[%s5372_s4 + $0x1d8] sm:$0xff]  ;;  %v1000_v61 = vmul.f32 %v4912_v38, %v6149_v29  ;;  %v1594_v0 = vmul.f32 %v6151_v57, %v6150_v43  ;;  %v6156_v4 = vld [vmem:[#allocation99_spill] sm:$0xff]  ;;  %v6157_v57 = vld [vmem:[#allocation94_spill] sm:$0xff] }
 0x1e4   : > { %6144 = vst [vmem:[#allocation106_spill] sm:$0xff] %v4932_v13  ;;  %v6146_v45 = vld [vmem:[#allocation84_spill] sm:$0xff]  ;;  %v876_v9 = vadd.f32 %v872_v5, %v832_v19  ;;  %v916_v33 = vadd.f32 %v912_v20, %v908_v10  ;;  %v1643_v19 = vmul.f32 %v6157_v57, %v6156_v4  ;;  %v6158_v10 = vld [vmem:[#allocation19_spill] sm:$0xff]  ;;  %v960_v62 = vadd.f32 %v956_v59, %v952_v11 }
 0x1e5   : > { %v1550_v16 = vmul.f32 %v6146_v45, %v6145_v27  ;;  %v4945_v63 = vld [vmem:[%s5371_s3 + $0x1d8] sm:$0xff]  ;;  %v1387_v37 = vadd.f32 %v1383_v6, %v1343_v53  ;;  %v6152_v45 = vld [vmem:[#allocation98_spill] sm:$0xff]  ;;  %v6155_v6 = vld [vmem:[#allocation91_spill] sm:$0xff]  ;;  %v1040_v20 = vmul.f32 %v4932_v13, %v6158_v10  ;;  %v1515_v57 = vsub.f32 %v1506_v39, %v1511_v44 }
 0x1e6   : > { %v4952_v12 = vld [vmem:[%s5371_s3 + $0x1f8] sm:$0xff]  ;;  %v1004_v4 = vadd.f32 %v1000_v61, %v996_v48  ;;  %v6166_v48 = vld [vmem:[#allocation95_spill] sm:$0xff] }
 0x1e7   : > { %v4957_v2 = vld [vmem:[%s5372_s4 + $0x1f8] sm:$0xff]  ;;  %v1559_v44 = vsub.f32 %v1550_v16, %v1555_v18  ;;  %v1687_v61 = vmul.f32 %v6166_v48, %v6110_v30  ;;  %v6176_v30 = vld [vmem:[#allocation111_spill] sm:$0xff] }
 0x1e8   : > { %v6153_v3 = vld [vmem:[#allocation92_spill] sm:$0xff] }
 0x1e9   : > { %v1599_v58 = vmul.f32 %v6153_v3, %v6152_v45  ;;  %v6154_v27 = vld [vmem:[#allocation88_spill] sm:$0xff]  ;;  %v1431_v3 = vadd.f32 %v1427_v47, %v1387_v37  ;;  %v920_v45 = vadd.f32 %v916_v33, %v876_v9 }
 0x1ea   : > { %v1638_v53 = vmul.f32 %v6155_v6, %v6154_v27  ;;  %v4970_v5 = vld [vmem:[%s5371_s3 + $0x218] sm:$0xff]  ;;  %v6160_v6 = vld [vmem:[#allocation39_spill] sm:$0xff] }
 0x1eb   : > { %v4975_v43 = vld [vmem:[%s5372_s4 + $0x218] sm:$0xff]  ;;  %v1044_v27 = vmul.f32 %v4945_v63, %v6160_v6  ;;  %v1475_v38 = vadd.f32 %v1471_v40, %v1431_v3  ;;  %v964_v34 = vadd.f32 %v960_v62, %v920_v45  ;;  %v1132_v47 = vmul.f32 %v4970_v5, %v6108_v35  ;;  %v6165_v40 = vld [vmem:[#allocation89_spill] sm:$0xff] }
 0x1ec   : > { %6159 = vst [vmem:[#allocation76_spill] sm:$0xff] %v4975_v43  ;;  %v6161_v8 = vld [vmem:[#allocation40_spill] sm:$0xff]  ;;  %v1128_v22 = vmul.f32 %v4975_v43, %v6050_v55  ;;  %v1603_v59 = vsub.f32 %v1594_v0, %v1599_v58  ;;  %v1682_v62 = vmul.f32 %v4769_v56, %v6165_v40  ;;  %v1647_v9 = vsub.f32 %v1638_v53, %v1643_v19  ;;  %v6169_v58 = vld [vmem:[#allocation110_spill] sm:$0xff]  ;;  %v6177_v40 = vld [vmem:[#allocation101_spill] sm:$0xff] }
 0x1ed   : > { %v1084_v13 = vmul.f32 %v4957_v2, %v6161_v8  ;;  %v6162_v10 = vld [vmem:[#allocation56_spill] sm:$0xff]  ;;  %v1519_v37 = vadd.f32 %v1515_v57, %v1475_v38  ;;  %v1008_v33 = vadd.f32 %v1004_v4, %v964_v34  ;;  %v1048_v45 = vadd.f32 %v1044_v27, %v1040_v20  ;;  %v6171_v38 = vld [vmem:[#allocation58_spill] sm:$0xff]  ;;  %v6172_v4 = vld [vmem:[#allocation69_spill] sm:$0xff] }
 0x1ee   : > { %v1088_v29 = vmul.f32 %v4952_v12, %v6162_v10  ;;  %v4990_v11 = vld [vmem:[%s5371_s3 + $0x238] sm:$0xff]  ;;  %v1726_v56 = vmul.f32 %v4785_v54, %v6111_v17  ;;  %v1136_v48 = vadd.f32 %v1132_v47, %v1128_v22  ;;  %v6181_v47 = vld [vmem:[#allocation63_spill] sm:$0xff] }
 0x1ef   : > { %6163 = vst [vmem:[#allocation67_spill] sm:$0xff] %v4990_v11  ;;  %v4995_v39 = vld [vmem:[%s5372_s4 + $0x238] sm:$0xff]  ;;  %v1176_v27 = vmul.f32 %v4990_v11, %v6172_v4  ;;  %v1563_v54 = vadd.f32 %v1559_v44, %v1519_v37  ;;  %v1052_v20 = vadd.f32 %v1048_v45, %v1008_v33  ;;  %v6178_v4 = vld [vmem:[#allocation62_spill] sm:$0xff]  ;;  %v6184_v45 = vld [vmem:[#allocation103_spill] sm:$0xff] }
 0x1f0   : > { %6164 = vst [vmem:[#allocation9_spill] sm:$0xff] %v4995_v39  ;;  %v5004_v3 = vld [vmem:[%s5371_s3 + $0x258] sm:$0xff]  ;;  %v1172_v34 = vmul.f32 %v4995_v39, %v6171_v38  ;;  %v1092_v57 = vadd.f32 %v1088_v29, %v1084_v13  ;;  %v1775_v39 = vmul.f32 %v6177_v40, %v6176_v30  ;;  %v6179_v38 = vld [vmem:[#allocation70_spill] sm:$0xff]  ;;  %v6182_v40 = vld [vmem:[#allocation71_spill] sm:$0xff] }
 0x1f1   : > { %6167 = vst [vmem:[#allocation30_spill] sm:$0xff] %v5004_v3  ;;  %v5009_v16 = vld [vmem:[%s5372_s4 + $0x258] sm:$0xff]  ;;  %v1220_v43 = vmul.f32 %v5004_v3, %v6179_v38  ;;  %v1607_v13 = vadd.f32 %v1603_v59, %v1563_v54  ;;  %v1691_v38 = vsub.f32 %v1682_v62, %v1687_v61  ;;  %v6189_v62 = vld [vmem:[#allocation7_spill] sm:$0xff] }
 0x1f2   : > { %6168 = vst [vmem:[#allocation13_spill] sm:$0xff] %v5009_v16  ;;  %v6170_v18 = vld [vmem:[#allocation100_spill] sm:$0xff]  ;;  %v1216_v11 = vmul.f32 %v5009_v16, %v6178_v4  ;;  %v1096_v29 = vadd.f32 %v1092_v57, %v1052_v20  ;;  %v1180_v3 = vadd.f32 %v1176_v27, %v1172_v34  ;;  %v803_v61 = vmul.f32 %v4825_v14, %v6189_v62 }
 0x1f3   : > { %v1731_v0 = vmul.f32 %v6170_v18, %v6169_v58  ;;  %v5022_v53 = vld [vmem:[%s5371_s3 + $0x278] sm:$0xff]  ;;  %v6174_v18 = vld [vmem:[#allocation93_spill] sm:$0xff]  ;;  %v6175_v58 = vld [vmem:[#allocation102_spill] sm:$0xff]  ;;  %v1651_v4 = vadd.f32 %v1647_v9, %v1607_v13 }
 0x1f4   : > { %v5027_v19 = vld [vmem:[%s5372_s4 + $0x278] sm:$0xff]  ;;  %v1770_v17 = vmul.f32 %v6175_v58, %v6174_v18  ;;  %v1264_v37 = vmul.f32 %v5022_v53, %v6182_v40  ;;  %v6185_v18 = vld [vmem:[#allocation26_spill] sm:$0xff]  ;;  %v1140_v59 = vadd.f32 %v1136_v48, %v1096_v29  ;;  %v1224_v29 = vadd.f32 %v1220_v43, %v1216_v11  ;;  %v6190_v43 = vld [vmem:[#allocation5_spill] sm:$0xff] }
 0x1f5   : > { %6173 = vst [vmem:[#allocation45_spill] sm:$0xff] %v5027_v19  ;;  %v5040_v35 = vld [vmem:[%s5371_s3 + $0x298] sm:$0xff]  ;;  %v1260_v44 = vmul.f32 %v5027_v19, %v6181_v47  ;;  %v1735_v27 = vsub.f32 %v1726_v56, %v1731_v0  ;;  %v6191_v11 = vld [vmem:[#allocation57_spill] sm:$0xff] }
 0x1f6   : > { %v5045_v22 = vld [vmem:[%s5372_s4 + $0x298] sm:$0xff]  ;;  %v1779_v48 = vsub.f32 %v1770_v17, %v1775_v39  ;;  %v1184_v13 = vadd.f32 %v1180_v3, %v1140_v59  ;;  %v6192_v39 = vld [vmem:[#allocation29_spill] sm:$0xff] }
 0x1f7   : > { %6180 = vst [vmem:[#allocation31_spill] sm:$0xff] %v5045_v22  ;;  %v6183_v33 = vld [vmem:[#allocation36_spill] sm:$0xff]  ;;  %v6193_v3 = vsub.f32 %v6191_v11, %v6192_v39  ;;  %v852_v39 = vmul.f32 %v4868_v42, %v3437_v15 }
 0x1f8   : > { %v759_v58 = vmul.f32 %v6184_v45, %v6183_v33  ;;  %v2325_v30 = vld [vmem:[%s5372_s4 + $0x118] sm:$0xff] }
 0x1f9   : > { %v764_v16 = vmul.f32 %v2325_v30, %v6185_v18  ;;  %v6186_v54 = vld [vmem:[#allocation64_spill] sm:$0xff]  ;;  %v1695_v18 = vadd.f32 %v1691_v38, %v1651_v4  ;;  %v684_v56 = vadd.f32 %v6193_v3, %v6190_v43  ;;  %v1228_v38 = vadd.f32 %v1224_v29, %v1184_v13 }
 0x1fa   : > { %v1304_v20 = vmul.f32 %v5045_v22, %v6186_v54  ;;  %v6187_v57 = vld [vmem:[#allocation72_spill] sm:$0xff]  ;;  %v1268_v22 = vadd.f32 %v1264_v37, %v1260_v44 }
 0x1fb   : > { %v1308_v19 = vmul.f32 %v5040_v35, %v6187_v57  ;;  %v5064_v33 = vld [vmem:[%s5371_s3 + $0x2b8] sm:$0xff]  ;;  %v1739_v0 = vadd.f32 %v1735_v27, %v1695_v18  ;;  %v768_v37 = vsub.f32 %v759_v58, %v764_v16  ;;  %v847_v16 = vmul.f32 %v4863_v25, %v3353_v46 }
 0x1fc   : > { %v5069_v45 = vld [vmem:[%s5372_s4 + $0x2b8] sm:$0xff]  ;;  %v1352_v62 = vmul.f32 %v5064_v33, %v6127_v50  ;;  %v1272_v43 = vadd.f32 %v1268_v22, %v1228_v38  ;;  %v6199_v38 = vld [vmem:[#allocation105_spill] sm:$0xff] }
 0x1fd   : > { %v5074_v30 = vld [vmem:[%s5372_s4 + $0x2d8] sm:$0xff]  ;;  %v1348_v14 = vmul.f32 %v5069_v45, %v6125_v1  ;;  %v1312_v4 = vadd.f32 %v1308_v19, %v1304_v20  ;;  %v6194_v19 = vld [vmem:[#allocation61_spill] sm:$0xff]  ;;  %v1783_v58 = vadd.f32 %v1779_v48, %v1739_v0 }
 0x1fe   : > { %6188 = vst [vmem:[#allocation49_spill] sm:$0xff] %v5074_v30  ;;  %v2326_v9 = vld [vmem:[%s5372_s4 + $0x138] sm:$0xff]  ;;  %v6195_v20 = vld [vmem:[#allocation25_spill] sm:$0xff] }
 0x1ff   : > { %v808_v34 = vmul.f32 %v2326_v9, %v6065_v26  ;;  %v5085_v57 = vld [vmem:[%s5371_s3 + $0x2d8] sm:$0xff]  ;;  %v1392_v26 = vmul.f32 %v5074_v30, %v6010_v36  ;;  %v6196_v18 = vsub.f32 %v6194_v19, %v6195_v20  ;;  %v891_v19 = vmul.f32 %v4883_v51, %v6027_v32  ;;  %2271 = vmatmul.msk.f32.gmra.mxu3 %vm1805_vm1, %v1783_v58  ;;  %v6198_v0 = vld [vmem:[#allocation17_spill] sm:$0xff]  ;;  %v6201_v20 = vld [vmem:[#allocation66_spill] sm:$0xff] }
 0x200   : > { %v5096_v17 = vld [vmem:[%s5372_s4 + $0x2f8] sm:$0xff]  ;;  %v1396_v59 = vmul.f32 %v5085_v57, %v6012_v7  ;;  %v1316_v46 = vadd.f32 %v1312_v4, %v1272_v43  ;;  %v1356_v25 = vadd.f32 %v1352_v62, %v1348_v14  ;;  %v979_v4 = vmul.f32 %v6199_v38, %v6198_v0  ;;  %v6202_v58 = vld [vmem:[#allocation81_spill] sm:$0xff] }
 0x201   : > { %v5105_v44 = vld [vmem:[%s5371_s3 + $0x2f8] sm:$0xff]  ;;  %v728_v13 = vadd.f32 %v6196_v18, %v684_v56  ;;  %v812_v29 = vsub.f32 %v803_v61, %v808_v34  ;;  %v1436_v11 = vmul.f32 %v5096_v17, %v5896_v24  ;;  %v896_v61 = vmul.f32 %v4888_v52, %v6028_v21 }
 0x202   : > { %v5112_v9 = vld [vmem:[%s5371_s3 + $0x318] sm:$0xff]  ;;  %v1440_v3 = vmul.f32 %v5105_v44, %v6129_v49  ;;  %v856_v52 = vsub.f32 %v847_v16, %v852_v39  ;;  %v935_v34 = vmul.f32 %v4903_v23, %v6143_v28  ;;  %v1360_v62 = vadd.f32 %v1356_v25, %v1316_v46  ;;  %v6204_v16 = vld [vmem:[#allocation82_spill] sm:$0xff] }
 0x203   : > { %v5117_v27 = vld [vmem:[%s5372_s4 + $0x318] sm:$0xff]  ;;  %v772_v30 = vadd.f32 %v768_v37, %v728_v13  ;;  %v1484_v15 = vmul.f32 %v5112_v9, %v3617_v41  ;;  %v1400_v56 = vadd.f32 %v1396_v59, %v1392_v26  ;;  %v6200_v37 = vld [vmem:[#allocation38_spill] sm:$0xff]  ;;  %v900_v28 = vsub.f32 %v891_v19, %v896_v61  ;;  %v6205_v61 = vld [vmem:[#allocation19_spill] sm:$0xff] }
 0x204   : > { %v1480_v22 = vmul.f32 %v5117_v27, %v6131_v31  ;;  %v5142_v42 = vld [vmem:[%s5372_s4 + $0x338] sm:$0xff]  ;;  %v984_v18 = vmul.f32 %v6201_v20, %v6200_v37  ;;  %v1444_v13 = vadd.f32 %v1440_v3, %v1436_v11  ;;  %v1023_v25 = vmul.f32 %v4945_v63, %v6205_v61  ;;  %v6219_v61 = vld [vmem:[#allocation67_spill] sm:$0xff] }
 0x205   : > { %v5147_v32 = vld [vmem:[%s5371_s3 + $0x338] sm:$0xff]  ;;  %v816_v51 = vadd.f32 %v812_v29, %v772_v30  ;;  %v1524_v43 = vmul.f32 %v5142_v42, %v6202_v58  ;;  %v1067_v0 = vmul.f32 %v4952_v12, %v6161_v8  ;;  %v6213_v12 = vld [vmem:[#allocation98_spill] sm:$0xff] }
 0x206   : > { %v5152_v21 = vld [vmem:[%s5372_s4 + $0x358] sm:$0xff]  ;;  %v1488_v29 = vadd.f32 %v1484_v15, %v1480_v22  ;;  %v6206_v22 = vld [vmem:[#allocation106_spill] sm:$0xff] }
 0x207   : > { %v6197_v48 = vld [vmem:[#allocation104_spill] sm:$0xff]  ;;  %v860_v23 = vadd.f32 %v856_v52, %v816_v51  ;;  %v1568_v39 = vmul.f32 %v5152_v21, %v6204_v16  ;;  %v1028_v15 = vmul.f32 %v6206_v22, %v6160_v6  ;;  %v6207_v52 = vld [vmem:[#allocation97_spill] sm:$0xff]  ;;  %v1072_v6 = vmul.f32 %v4957_v2, %v6162_v10 }
 0x208   : > { %v940_v14 = vmul.f32 %v6197_v48, %v6090_v60  ;;  %v5167_v30 = vld [vmem:[%s5371_s3 + $0x358] sm:$0xff]  ;;  %v1404_v60 = vadd.f32 %v1400_v56, %v1360_v62  ;;  %v988_v56 = vsub.f32 %v979_v4, %v984_v18  ;;  %v6212_v18 = vld [vmem:[#allocation87_spill] sm:$0xff] }
 0x209   : > { %v6203_v26 = vld [vmem:[#allocation96_spill] sm:$0xff]  ;;  %v904_v46 = vadd.f32 %v900_v28, %v860_v23  ;;  %v1572_v48 = vmul.f32 %v5167_v30, %v6207_v52 }
 0x20a   : > { %v1528_v59 = vmul.f32 %v5147_v32, %v6203_v26  ;;  %v5176_v11 = vld [vmem:[%s5371_s3 + $0x378] sm:$0xff]  ;;  %v944_v19 = vsub.f32 %v935_v34, %v940_v14  ;;  %v1448_v51 = vadd.f32 %v1444_v13, %v1404_v60  ;;  %v1111_v14 = vmul.f32 %v4970_v5, %v6050_v55 }
 0x20b   : > { %v5181_v3 = vld [vmem:[%s5372_s4 + $0x378] sm:$0xff]  ;;  %v1616_v23 = vmul.f32 %v5176_v11, %v6213_v12  ;;  %v1032_v5 = vsub.f32 %v1023_v25, %v1028_v15  ;;  %v1076_v25 = vsub.f32 %v1067_v0, %v1072_v6 }
 0x20c   : > { %v5192_v62 = vld [vmem:[%s5372_s4 + $0x398] sm:$0xff]  ;;  %v948_v34 = vadd.f32 %v944_v19, %v904_v46  ;;  %v1492_v13 = vadd.f32 %v1488_v29, %v1448_v51  ;;  %v1532_v4 = vadd.f32 %v1528_v59, %v1524_v43  ;;  %v1612_v8 = vmul.f32 %v5181_v3, %v6212_v18  ;;  %v6217_v59 = vld [vmem:[#allocation99_spill] sm:$0xff]  ;;  %v6218_v19 = vld [vmem:[#allocation58_spill] sm:$0xff] }
 0x20d   : > { %6208 = vst [vmem:[#allocation10_spill] sm:$0xff] %v5192_v62  ;;  %v5199_v63 = vld [vmem:[%s5371_s3 + $0x398] sm:$0xff]  ;;  %v1576_v29 = vadd.f32 %v1572_v48, %v1568_v39  ;;  %v1155_v22 = vmul.f32 %v6219_v61, %v6218_v19  ;;  %v6220_v39 = vld [vmem:[#allocation69_spill] sm:$0xff] }
 0x20e   : > { %6209 = vst [vmem:[#allocation107_spill] sm:$0xff] %v5199_v63  ;;  %v6210_v38 = vld [vmem:[#allocation68_spill] sm:$0xff]  ;;  %v992_v10 = vadd.f32 %v988_v56, %v948_v34  ;;  %v1536_v43 = vadd.f32 %v1532_v4, %v1492_v13  ;;  %v1660_v46 = vmul.f32 %v5199_v63, %v6217_v59  ;;  %v6221_v48 = vld [vmem:[#allocation9_spill] sm:$0xff]  ;;  %v1620_v13 = vadd.f32 %v1616_v23, %v1612_v8  ;;  %v6226_v23 = vld [vmem:[#allocation70_spill] sm:$0xff] }
 0x20f   : > { %v6211_v37 = vld [vmem:[#allocation76_spill] sm:$0xff]  ;;  %v1160_v34 = vmul.f32 %v6221_v48, %v6220_v39  ;;  %v6222_v4 = vld [vmem:[#allocation89_spill] sm:$0xff]  ;;  %v6228_v39 = vld [vmem:[#allocation90_spill] sm:$0xff]  ;;  %v1243_v63 = vmul.f32 %v5022_v53, %v6181_v47 }
 0x210   : > { %v1116_v20 = vmul.f32 %v6211_v37, %v6210_v38  ;;  %v6214_v28 = vld [vmem:[#allocation88_spill] sm:$0xff]  ;;  %v1036_v56 = vadd.f32 %v1032_v5, %v992_v10  ;;  %v1580_v37 = vadd.f32 %v1576_v29, %v1536_v43  ;;  %v6223_v61 = vld [vmem:[#allocation109_spill] sm:$0xff] }
 0x211   : > { %v1656_v60 = vmul.f32 %v5192_v62, %v6214_v28  ;;  %v5216_v2 = vld [vmem:[%s5371_s3 + $0x3b8] sm:$0xff]  ;;  %v6227_v10 = vld [vmem:[#allocation13_spill] sm:$0xff] }
 0x212   : > { %6215 = vst [vmem:[#allocation108_spill] sm:$0xff] %v5216_v2  ;;  %v5221_v55 = vld [vmem:[%s5372_s4 + $0x3b8] sm:$0xff]  ;;  %v1120_v15 = vsub.f32 %v1111_v14, %v1116_v20  ;;  %v1704_v62 = vmul.f32 %v5216_v2, %v6223_v61  ;;  %v1080_v6 = vadd.f32 %v1076_v25, %v1036_v56  ;;  %v6224_v14 = vld [vmem:[#allocation62_spill] sm:$0xff]  ;;  %v1204_v5 = vmul.f32 %v6227_v10, %v6226_v23  ;;  %v6230_v56 = vld [vmem:[#allocation45_spill] sm:$0xff] }
 0x213   : > { %6216 = vst [vmem:[#allocation42_spill] sm:$0xff] %v5221_v55  ;;  %v5230_v51 = vld [vmem:[%s5371_s3 + $0x3d8] sm:$0xff]  ;;  %v1700_v19 = vmul.f32 %v5221_v55, %v6222_v4  ;;  %v6225_v20 = vld [vmem:[#allocation30_spill] sm:$0xff]  ;;  %v1624_v43 = vadd.f32 %v1620_v13, %v1580_v37  ;;  %v1664_v29 = vadd.f32 %v1660_v46, %v1656_v60  ;;  %v1164_v4 = vsub.f32 %v1155_v22, %v1160_v34  ;;  %v6231_v13 = vld [vmem:[#allocation93_spill] sm:$0xff] }
 0x214   : > { %v5235_v38 = vld [vmem:[%s5372_s4 + $0x3d8] sm:$0xff]  ;;  %v1199_v8 = vmul.f32 %v6225_v20, %v6224_v14  ;;  %v6229_v55 = vld [vmem:[#allocation110_spill] sm:$0xff]  ;;  %v1124_v2 = vadd.f32 %v1120_v15, %v1080_v6  ;;  %v1248_v25 = vmul.f32 %v6230_v56, %v6182_v40  ;;  %v1890_v14 = vld [vmem:[%s5375_s7 + $0x10] sm:$0xff]  ;;  %v1287_v40 = vmul.f32 %v5040_v35, %v6186_v54 }
 0x215   : > { %v5246_v59 = vld [vmem:[%s5371_s3 + $0x3f8] sm:$0xff]  ;;  %v1744_v48 = vmul.f32 %v5235_v38, %v6228_v39  ;;  %v1748_v61 = vmul.f32 %v5230_v51, %v6229_v55  ;;  %v1889_v60 = vld [vmem:[%s5375_s7 + $0x8] sm:$0xff]  ;;  %v1668_v46 = vadd.f32 %v1664_v29, %v1624_v43  ;;  %v1708_v37 = vadd.f32 %v1704_v62, %v1700_v19  ;;  %v6232_v22 = vld [vmem:[#allocation111_spill] sm:$0xff]  ;;  %1904 = vperm.xlu1 %2323, %v1890_v14  }
 0x216   : > { %v5251_v0 = vld [vmem:[%s5372_s4 + $0x3f8] sm:$0xff]  ;;  %v1792_v34 = vmul.f32 %v5246_v59, %v6232_v22  ;;  %v1168_v53 = vadd.f32 %v1164_v4, %v1124_v2  ;;  %v1208_v47 = vsub.f32 %v1199_v8, %v1204_v5  ;;  %v6234_v20 = vld [vmem:[#allocation31_spill] sm:$0xff]  ;;  %1899 = vperm.xlu0 %2322, %v1889_v60   ;;  %v1331_v62 = vmul.f32 %v5064_v33, %v6125_v1  ;;  %v6235_v54 = vld [vmem:[#allocation49_spill] sm:$0xff] }
 0x217   : > { %v1788_v15 = vmul.f32 %v5251_v0, %v6231_v13  ;;  %v6233_v6 = vld [vmem:[#allocation72_spill] sm:$0xff]  ;;  %v1712_v10 = vadd.f32 %v1708_v37, %v1668_v46  ;;  %v1752_v56 = vadd.f32 %v1748_v61, %v1744_v48  ;;  %v1336_v19 = vmul.f32 %v5069_v45, %v6127_v50 }
 0x218   : > { %v1292_v23 = vmul.f32 %v6234_v20, %v6233_v6  ;;  %v1212_v43 = vadd.f32 %v1208_v47, %v1168_v53  ;;  %v1252_v29 = vsub.f32 %v1243_v63, %v1248_v25  ;;  %v1375_v35 = vmul.f32 %v5085_v57, %v6010_v36  ;;  %v1891_v61 = vld [vmem:[%s5375_s7 + $0x18] sm:$0xff]  ;;  %v6239_v47 = vld [vmem:[#allocation89_spill] sm:$0xff] }
 0x219   : > { %v1756_v14 = vadd.f32 %v1752_v56, %v1712_v10  ;;  %v1796_v2 = vadd.f32 %v1792_v34, %v1788_v15  ;;  %v1380_v5 = vmul.f32 %v6235_v54, %v6012_v7  ;;  %v1340_v33 = vsub.f32 %v1331_v62, %v1336_v19  ;;  %v6236_v15 = vld [vmem:[#allocation107_spill] sm:$0xff]  ;;  %v6238_v34 = vld [vmem:[#allocation10_spill] sm:$0xff] }
 0x21a   : > { %v1256_v4 = vadd.f32 %v1252_v29, %v1212_v43  ;;  %v1296_v8 = vsub.f32 %v1287_v40, %v1292_v23  ;;  %v1419_v50 = vmul.f32 %v5105_v44, %v5896_v24  ;;  %v1424_v63 = vmul.f32 %v5096_v17, %v6129_v49  ;;  %v6241_v40 = vld [vmem:[#allocation109_spill] sm:$0xff]  ;;  %v6242_v6 = vld [vmem:[#allocation42_spill] sm:$0xff] }
 0x21b   : > { %v1800_v1 = vadd.f32 %v1796_v2, %v1756_v14  ;;  %v1463_v48 = vmul.f32 %v5112_v9, %v6131_v31  ;;  %v1468_v36 = vmul.f32 %v5117_v27, %v3617_v41  ;;  %v1384_v57 = vsub.f32 %v1375_v35, %v1380_v5 }
 0x21c   : > { %v1300_v45 = vadd.f32 %v1296_v8, %v1256_v4  ;;  %v1507_v25 = vmul.f32 %v5147_v32, %v6202_v58  ;;  %v1428_v24 = vsub.f32 %v1419_v50, %v1424_v63  ;;  %v1512_v49 = vmul.f32 %v5142_v42, %v6203_v26  ;;  %v6237_v26 = vld [vmem:[#allocation99_spill] sm:$0xff] }
 0x21d   : > { %2268 = vmatmul.msk.f32.gmra.mxu2 %vm1805_vm1, %v1800_v1  ;;  %1909 = vperm.xlu1 %2323, %v1891_v61   ;;  %v1472_v44 = vsub.f32 %v1463_v48, %v1468_v36  ;;  %v1551_v31 = vmul.f32 %v5167_v30, %v6204_v16  ;;  %v1556_v41 = vmul.f32 %v5152_v21, %v6207_v52  ;;  %v6240_v21 = vld [vmem:[#allocation108_spill] sm:$0xff] }
 0x21e   : > { %v1344_v7 = vadd.f32 %v1340_v33, %v1300_v45  ;;  %v1516_v27 = vsub.f32 %v1507_v25, %v1512_v49  ;;  %v1595_v46 = vmul.f32 %v5176_v11, %v6212_v18  ;;  %v1600_v32 = vmul.f32 %v5181_v3, %v6213_v12 }
 0x21f   : > { %v1560_v37 = vsub.f32 %v1551_v31, %v1556_v41  ;;  %v1639_v42 = vmul.f32 %v6236_v15, %v6214_v28  ;;  %v1644_v53 = vmul.f32 %v6238_v34, %v6237_v26  ;;  %v1683_v52 = vmul.f32 %v6240_v21, %v6239_v47 }
 0x220   : > { %v1388_v60 = vadd.f32 %v1384_v57, %v1344_v7  ;;  %v1604_v16 = vsub.f32 %v1595_v46, %v1600_v32  ;;  %v1688_v20 = vmul.f32 %v6242_v6, %v6241_v40  ;;  %v1727_v3 = vmul.f32 %v5230_v51, %v6228_v39  ;;  %v1835_v51 = vpop.f32.mrf.mxu2  ;;  %v1876_v39 = vpop.f32.mrf.mxu3 }
 0x221   : > { %v1648_v18 = vsub.f32 %v1639_v42, %v1644_v53  ;;  %v1732_v12 = vmul.f32 %v5235_v38, %v6229_v55  ;;  %v1771_v10 = vmul.f32 %v5246_v59, %v6231_v13  ;;  %v1776_v56 = vmul.f32 %v5251_v0, %v6232_v22 }
 0x222   : > { %v1432_v17 = vadd.f32 %v1428_v24, %v1388_v60  ;;  %v1692_v23 = vsub.f32 %v1683_v52, %v1688_v20  ;;  %v1877_v2 = vadd.f32 %v1876_v39, %v1835_v51 }
 0x223   : > { %v1736_v19 = vsub.f32 %v1727_v3, %v1732_v12  ;;  %v1780_v29 = vsub.f32 %v1771_v10, %v1776_v56 }
 0x224   : > { %v1476_v9 = vadd.f32 %v1472_v44, %v1432_v17 }
 0x226   : > { %v1520_v58 = vadd.f32 %v1516_v27, %v1476_v9 }
 0x228   : > { %v1564_v30 = vadd.f32 %v1560_v37, %v1520_v58  ;;  %v1838_v59 = vpop.f32.mrf.mxu2 }
 0x22a   : > { %v1608_v11 = vadd.f32 %v1604_v16, %v1564_v30 }
 0x22c   : > { %v1652_v28 = vadd.f32 %v1648_v18, %v1608_v11 }
 0x22e   : > { %v1696_v62 = vadd.f32 %v1692_v23, %v1652_v28 }
 0x230   : > { %v1740_v43 = vadd.f32 %v1736_v19, %v1696_v62 }
 0x232   : > { %v1784_v14 = vadd.f32 %v1780_v29, %v1740_v43 }
 0x234   : > { %2272 = vmatmul.msk.f32.gmra.mxu3 %vm1805_vm1, %v1784_v14 }
 0x245   : > { %v1879_v0 = vpop.f32.mrf.mxu3 }
 0x246   : > { %v1880_v13 = vadd.f32 %v1879_v0, %v1838_v59 }
 0x250   : > { %v1895_v55 = vpop.permute.xlu0 %1894 }
 0x251   : > { %v1912_v38 = vadd.f32 %v1895_v55, %v1877_v2 }
 0x253   : > { %v1916_v4 = vmax.f32 %v1912_v38, 0.0 }
 0x255   : > { %1920 = vst.msk [vmem:[%s298_s19] sm:$0xff] %vm316_vm0, %v1916_v4 }
 0x263   : > { %v1841_v22 = vpop.f32.mrf.mxu2 }
 0x282   : > { %v1882_v35 = vpop.f32.mrf.mxu3 }
 0x283   : > { %v1883_v5 = vadd.f32 %v1882_v35, %v1841_v22 }
 0x287   : > { %v1905_v61 = vpop.permute.xlu1 %1904 }
 0x288   : > { %v1900_v8 = vpop.permute.xlu0 %1899  ;;  %v1914_v33 = vadd.f32 %v1905_v61, %v1883_v5 }
 0x289   : > { %v1913_v54 = vadd.f32 %v1900_v8, %v1880_v13 }
 0x28a   : > { %v1918_v50 = vmax.f32 %v1914_v33, 0.0 }
 0x28b   : > { %v1917_v1 = vmax.f32 %v1913_v54, 0.0 }
 0x28c   : > { %1922 = vst.msk [vmem:[%s298_s19 + $0x10] sm:$0xff] %vm316_vm0, %v1918_v50 }
 0x28d   : > { %1921 = vst.msk [vmem:[%s298_s19 + $0x8] sm:$0xff] %vm316_vm0, %v1917_v1 }
 0x28f   : > { %v1910_v36 = vpop.permute.xlu1 %1909 }
 0x2a0   : > { %v1844_v45 = vpop.f32.mrf.mxu2 }
 0x2b7   : > { %v1885_v63 = vpop.f32.mrf.mxu3 }
 0x2b8   : > { %v1886_v48 = vadd.f32 %v1885_v63, %v1844_v45 }
 0x2ba   : > { %v1915_v7 = vadd.f32 %v1910_v36, %v1886_v48 }
 0x2bc   : > { %v1919_v57 = vmax.f32 %v1915_v7, 0.0 }
 0x2be   : > { %1923 = vst.msk [vmem:[%s298_s19 + $0x18] sm:$0xff] %vm316_vm0, %v1919_v57 }
 0x2bf   : > { %2354 = shalt.err (!%p2351_p3)
}
 0x2c0   : > { %s2392_s17 = smov 128   ;;  %s2393_s19 = smov 8  }
 0x2c1   : > { %2280 = dma.vmem_to_hbm [thread:$0]  (%p2477_p5), %s1938_s23, 512, %s1940_s24, %s1925_s26, %s2392_s17, %s2392_s17, %s2393_s19  }
 0x2c2 PF: > { %p2286_p4 = scmp.ge.s32.totalorder %s2389_s30, 2  ;;  %s1954_s22 = sand.u32 1, %s2377_s27  }
 0x2c3   : > { %s1955_s13 = scalar_lea.sflag [#allocation3], %s1954_s22 }
 0x2c4   : > { %p2283_p7 = pnand %p2286_p4, %p2481_p6 }
 0x2c6   : > { %p2284_p8 = pneg %p2283_p7 }
 0x2c8   : > { %2372 = dma.done.wait (%p2284_p8), %s1955_s13, 512  }
 0x2c9   : > { %2374 = vsyncadd (%p2284_p8), %s1955_s13, 4294966784  ;;  %p18_p9 = scmp.ge.s32.totalorder %s2464_s11, 4   ;;  %s6243_s27 = smov %s2381_s28 }
 0x2ca   : > { %s6244_s28 = smov %s2385_s29  ;;  %s6245_s29 = smov %s2475_s14 }
 0x2cb   : > { %s6246_s30 = smov %s2464_s11  ;;  %20 = sbr.rel (!%p18_p9) target bundleno = 3 (0x3), region = 149 }
 0x2d0   :  { %1961 = vsyncpa [#allocation3], 1 }
 0x2d1   :  { %1963 = vsyncpa [#allocation3 + $0x1], 1 }

</bundles_post_ra>
